<compile_context>
chip_gen: v5e
topology: v5e:2x2
jax: 0.10.0
libtpu: 0.0.40
codegen_flags: <defaults>
</compile_context>

<pallas_src>
import jax
import jax.numpy as jnp
from jax.experimental import pallas as pl
from jax.experimental.pallas import tpu as pltpu

# ---------------- configuration (consistent with the module) ----------------
B = 2           # batch
N = 16          # input_size  (sequence length / #tokens)
C = 32          # hidden_size
H = 4           # num_heads
D = C // H      # head dim = 8
P = 8           # proj_size
CH = C // 2     # out_proj width = 16

# The x_SA permute+reshape folding below assumes this ratio (true for this config).
assert N == 2 * D and H % 2 == 0


# ---------------------------------------------------------------------------
# Fused EPA forward kernel (single invocation, everything in VMEM)
# ---------------------------------------------------------------------------
def _epa_fused_kernel(x_ref, wqkvv_ref, we_ref, be_ref, wf_ref, bf_ref,
                      wout_ref, bout_ref, wout2_ref, bout2_ref,
                      t1_ref, t2_ref, s_ref, o_ref):
    f32 = jnp.float32
    eps = 1e-12

    x = x_ref[...]                                                  # (B*N, C)
    # qkvv projection for all tokens/batches in one MXU dot (qkv_bias=False).
    qkvv = jnp.dot(x, wqkvv_ref[...], preferred_element_type=f32)   # (B*N, 4C)

    w_e, b_e = we_ref[...], be_ref[...]
    w_f, b_f = wf_ref[...], bf_ref[...]
    w_out, b_out = wout_ref[...], bout_ref[...]
    w_out2, b_out2 = wout2_ref[...], bout2_ref[...]
    t1_row = t1_ref[...]                                            # (1, C)  temp1 per (h,d) column
    t2_col = t2_ref[...]                                            # (C, 1)  temp2 per (h,d) row
    s_int = s_ref[...]                                              # (N, 2D) row-interleave matrix

    half = H // 2

    for b in range(B):                     # static unroll, B = 2
        r0, r1 = b * N, (b + 1) * N
        q_b   = qkvv[r0:r1, 0 * C:1 * C]   # (N, C)  columns = (head, d)
        k_b   = qkvv[r0:r1, 1 * C:2 * C]
        vca_b = qkvv[r0:r1, 2 * C:3 * C]
        vsa_b = qkvv[r0:r1, 3 * C:4 * C]

        # F.normalize(., dim=-1): L2 norm over the token axis (= axis 0 here).
        # temperature1 is folded into the k scale (exact: per-head scalar).
        q_scale = 1.0 / jnp.maximum(jnp.sqrt(jnp.sum(q_b * q_b, axis=0, keepdims=True)), eps)
        k_scale = t1_row / jnp.maximum(jnp.sqrt(jnp.sum(k_b * k_b, axis=0, keepdims=True)), eps)
        qn_b = q_b * q_scale               # (N, C) normalized
        kn_b = k_b * k_scale               # (N, C) normalized * temperature1

        qnT_b  = qn_b.T                    # (C, N)
        kT_b   = k_b.T                     # (C, N)  un-normalized (E applied pre-norm)
        vsaT_b = vsa_b.T                   # (C, N)

        # Head-batched E / F projections; temperature2 folded into k_proj.
        kproj_b = (jnp.dot(kT_b, w_e, preferred_element_type=f32) + b_e) * t2_col   # (C, P)
        vproj_b = jnp.dot(vsaT_b, w_f, preferred_element_type=f32) + b_f            # (C, P)

        out_ca = jnp.zeros((N, CH), f32)                      # x_CA @ w_out2, head-accumulated
        g = [jnp.zeros((D, CH), f32) for _ in range(2)]       # x_SA @ w_out per row-parity group

        for h in range(H):                 # static unroll, H = 4
            c0, c1 = h * D, (h + 1) * D
            qn_bh    = qn_b[:, c0:c1]      # (N, D)
            qnT_bh   = qnT_b[c0:c1, :]     # (D, N)
            kn_bh    = kn_b[:, c0:c1]      # (N, D)  (already * temperature1)
            vca_bh   = vca_b[:, c0:c1]     # (N, D)
            kproj_bh = kproj_b[c0:c1, :]   # (D, P)  (already * temperature2)
            vproj_bh = vproj_b[c0:c1, :]   # (D, P)

            # ---- channel attention: (D, D) over normalized q/k ----
            attn_ca = jnp.dot(qnT_bh, kn_bh, preferred_element_type=f32)   # (D, D)
            attn_ca = jnp.exp(attn_ca - jnp.max(attn_ca, axis=-1, keepdims=True))
            attn_ca = attn_ca / jnp.sum(attn_ca, axis=-1, keepdims=True)
            # TODO(synk): attn_drop omitted (eval-mode identity).
            # x_CA head block (N, D) = v_CA @ attn_ca.T ; out_proj2 folded per head block.
            ca_blk = jnp.dot(vca_bh, attn_ca.T, preferred_element_type=f32)          # (N, D)
            out_ca = out_ca + jnp.dot(ca_blk, w_out2[c0:c1, :],
                                      preferred_element_type=f32)                    # (N, CH)

            # ---- spatial attention: (N, P) ----
            attn_sa = jnp.dot(qn_bh, kproj_bh, preferred_element_type=f32)           # (N, P)
            attn_sa = jnp.exp(attn_sa - jnp.max(attn_sa, axis=-1, keepdims=True))
            attn_sa = attn_sa / jnp.sum(attn_sa, axis=-1, keepdims=True)
            # TODO(synk): attn_drop_2 omitted (eval-mode identity).
            saT_bh = jnp.dot(vproj_bh, attn_sa.T, preferred_element_type=f32)        # (D, N)
            # PyTorch's (B,H,N,D) -> permute(0,3,1,2) -> reshape(B,N,C) scatter,
            # folded into out_proj weight-row blocks + a row-interleave matmul.
            grp, pos = h // half, h % half
            g[grp] = g[grp] + jnp.dot(saT_bh, w_out[pos * N:(pos + 1) * N, :],
                                      preferred_element_type=f32)                    # (D, CH)

        # Row-interleave the two parity groups: out_sa[2d + r] = g[r][d].
        out_sa = (jnp.dot(s_int[:, 0:D], g[0], preferred_element_type=f32)
                  + jnp.dot(s_int[:, D:2 * D], g[1], preferred_element_type=f32))    # (N, CH)

        # Final concat(out_proj(x_SA), out_proj2(x_CA)) written as two block stores.
        o_ref[r0:r1, 0:CH] = out_sa + b_out
        o_ref[r0:r1, CH:C] = out_ca + b_out2


# ---------------------------------------------------------------------------
# Wrapper: fold temperatures / interleave matrix, one pallas_call, free reshape
# ---------------------------------------------------------------------------
def _epa_forward_impl(x, params):
    Bx, Nx, Cx = x.shape
    assert (Bx, Nx, Cx) == (B, N, C)

    # Per-head temperatures expanded so they can be folded into k / k_proj.
    t1_row = jnp.repeat(params["temp1"], D).reshape(1, C)
    t2_col = jnp.repeat(params["temp2"], D).reshape(C, 1)

    # Constant 0/1 matrix implementing the x_SA row interleave:
    #   s_int[2d,     d] = 1   (heads 0..H/2-1)
    #   s_int[2d + 1, D + d] = 1   (heads H/2..H-1)
    d_idx = jnp.arange(D)
    s_int = jnp.zeros((N, 2 * D), jnp.float32)
    s_int = s_int.at[2 * d_idx, d_idx].set(1.0)
    s_int = s_int.at[2 * d_idx + 1, D + d_idx].set(1.0)

    vmem = pl.BlockSpec(memory_space=pltpu.MemorySpace.VMEM)
    out2d = pl.pallas_call(
        _epa_fused_kernel,
        out_shape=jax.ShapeDtypeStruct((B * N, C), jnp.float32),
        in_specs=[vmem] * 13,
        out_specs=vmem,
    )(x.reshape(B * N, C),
      params["w_qkvv"],
      params["w_E"], params["b_E"],
      params["w_F"], params["b_F"],
      params["w_out"], params["b_out"].reshape(1, CH),
      params["w_out2"], params["b_out2"].reshape(1, CH),
      t1_row, t2_col, s_int)
    return out2d.reshape(B, N, C)


epa_forward = jax.jit(_epa_forward_impl)


# ---------------------------------------------------------------------------
# Pure-JAX reference (mirrors the PyTorch forward line-by-line), for checking
# ---------------------------------------------------------------------------
def epa_reference(x, params):
    Bx, Nx, Cx = x.shape
    qkvv = x @ params["w_qkvv"]                                          # (B,N,4C), bias=False
    qkvv = qkvv.reshape(Bx, Nx, 4, H, D).transpose(2, 0, 3, 1, 4)
    q, k, v_ca, v_sa = qkvv[0], qkvv[1], qkvv[2], qkvv[3]
    q = jnp.swapaxes(q, -2, -1)
    k = jnp.swapaxes(k, -2, -1)
    v_ca = jnp.swapaxes(v_ca, -2, -1)
    v_sa = jnp.swapaxes(v_sa, -2, -1)

    k_proj = k @ params["w_E"] + params["b_E"]                           # (B,H,D,P)
    v_proj = v_sa @ params["w_F"] + params["b_F"]

    qn = q / jnp.maximum(jnp.linalg.norm(q, axis=-1, keepdims=True), 1e-12)
    kn = k / jnp.maximum(jnp.linalg.norm(k, axis=-1, keepdims=True), 1e-12)

    t1 = params["temp1"].reshape(1, H, 1, 1)
    t2 = params["temp2"].reshape(1, H, 1, 1)

    attn_ca = jax.nn.softmax(qn @ jnp.swapaxes(kn, -2, -1) * t1, axis=-1)
    x_CA = (attn_ca @ v_ca).transpose(0, 3, 1, 2).reshape(Bx, Nx, Cx)

    attn_sa = jax.nn.softmax(jnp.swapaxes(qn, -2, -1) @ k_proj * t2, axis=-1)
    x_SA = (attn_sa @ jnp.swapaxes(v_proj, -2, -1)).transpose(0, 3, 1, 2).reshape(Bx, Nx, Cx)

    x_SA = x_SA @ params["w_out"] + params["b_out"]
    x_CA = x_CA @ params["w_out2"] + params["b_out2"]
    return jnp.concatenate([x_SA, x_CA], axis=-1)


# ---------------------------------------------------------------------------
def init_params(key):
    ks = jax.random.split(key, 8)
    s = 0.1
    return {
        # weights stored transposed: (in_features, out_features)
        "w_qkvv": s * jax.random.normal(ks[0], (C, 4 * C), jnp.float32),   # qkv_bias=False
        "w_E":    s * jax.random.normal(ks[1], (N, P), jnp.float32),
        "b_E":    s * jax.random.normal(ks[2], (1, P), jnp.float32),
        "w_F":    s * jax.random.normal(ks[3], (N, P), jnp.float32),
        "b_F":    s * jax.random.normal(ks[4], (1, P), jnp.float32),
        "w_out":  s * jax.random.normal(ks[5], (C, CH), jnp.float32),
        "b_out":  jnp.zeros((CH,), jnp.float32),
        "w_out2": s * jax.random.normal(ks[6], (C, CH), jnp.float32),
        "b_out2": jnp.zeros((CH,), jnp.float32),
        "temp1":  jnp.ones((H,), jnp.float32),                            # nn.Parameter(ones(H,1,1))
        "temp2":  jnp.ones((H,), jnp.float32),
    }


if __name__ == "__main__":
    key = jax.random.PRNGKey(0)
    kx, kp = jax.random.split(key)
    x = jax.random.normal(kx, (B, N, C), jnp.float32)
    params = init_params(kp)

    out = jax.block_until_ready(epa_forward(x, params))
    ref = jax.block_until_ready(epa_reference(x, params))

    assert out.shape == (B, N, C), out.shape
    err = float(jnp.max(jnp.abs(out - ref)))
    assert jnp.allclose(out, ref, atol=2e-2, rtol=2e-2), err
    print("KERNEL_OK")
</pallas_src>

<mosaic_0001>
module attributes {stable_mosaic.version = 11 : i64} {
  func.func @_epa_fused_kernel(%arg0: memref<32x32xf32, #tpu.memory_space<vmem>>, %arg1: memref<32x128xf32, #tpu.memory_space<vmem>>, %arg2: memref<16x8xf32, #tpu.memory_space<vmem>>, %arg3: memref<1x8xf32, #tpu.memory_space<vmem>>, %arg4: memref<16x8xf32, #tpu.memory_space<vmem>>, %arg5: memref<1x8xf32, #tpu.memory_space<vmem>>, %arg6: memref<32x16xf32, #tpu.memory_space<vmem>>, %arg7: memref<1x16xf32, #tpu.memory_space<vmem>>, %arg8: memref<32x16xf32, #tpu.memory_space<vmem>>, %arg9: memref<1x16xf32, #tpu.memory_space<vmem>>, %arg10: memref<1x32xf32, #tpu.memory_space<vmem>>, %arg11: memref<32x1xf32, #tpu.memory_space<vmem>>, %arg12: memref<16x16xf32, #tpu.memory_space<vmem>>, %arg13: memref<32x32xf32, #tpu.memory_space<vmem>>) attributes {dimension_semantics = [], scalar_prefetch = 0 : i64, scratch_operands = 0 : i64, tpu.core_type = #tpu.core_type<tc>} {
    %c0 = arith.constant 0 : index
    %c0_0 = arith.constant 0 : index
    %0 = vector.load %arg0[%c0, %c0_0] : memref<32x32xf32, #tpu.memory_space<vmem>>, vector<32x32xf32>
    %c0_1 = arith.constant 0 : index
    %c0_2 = arith.constant 0 : index
    %1 = vector.load %arg1[%c0_1, %c0_2] : memref<32x128xf32, #tpu.memory_space<vmem>>, vector<32x128xf32>
    %cst = arith.constant dense<0.000000e+00> : vector<32x128xf32>
    %2 = tpu.matmul %0, %1, %cst {dimension_numbers = #tpu.dot_dimension_numbers<[1], [0], [0], [1], [0, 0, 1, 1], [], []>} : vector<32x32xf32>, vector<32x128xf32>, vector<32x128xf32> -> vector<32x128xf32>
    %c0_3 = arith.constant 0 : index
    %c0_4 = arith.constant 0 : index
    %3 = vector.load %arg2[%c0_3, %c0_4] : memref<16x8xf32, #tpu.memory_space<vmem>>, vector<16x8xf32>
    %c0_5 = arith.constant 0 : index
    %c0_6 = arith.constant 0 : index
    %4 = vector.load %arg3[%c0_5, %c0_6] : memref<1x8xf32, #tpu.memory_space<vmem>>, vector<1x8xf32>
    %c0_7 = arith.constant 0 : index
    %c0_8 = arith.constant 0 : index
    %5 = vector.load %arg4[%c0_7, %c0_8] : memref<16x8xf32, #tpu.memory_space<vmem>>, vector<16x8xf32>
    %c0_9 = arith.constant 0 : index
    %c0_10 = arith.constant 0 : index
    %6 = vector.load %arg5[%c0_9, %c0_10] : memref<1x8xf32, #tpu.memory_space<vmem>>, vector<1x8xf32>
    %c0_11 = arith.constant 0 : index
    %c0_12 = arith.constant 0 : index
    %7 = vector.load %arg6[%c0_11, %c0_12] : memref<32x16xf32, #tpu.memory_space<vmem>>, vector<32x16xf32>
    %c0_13 = arith.constant 0 : index
    %c0_14 = arith.constant 0 : index
    %8 = vector.load %arg7[%c0_13, %c0_14] : memref<1x16xf32, #tpu.memory_space<vmem>>, vector<1x16xf32>
    %c0_15 = arith.constant 0 : index
    %c0_16 = arith.constant 0 : index
    %9 = vector.load %arg8[%c0_15, %c0_16] : memref<32x16xf32, #tpu.memory_space<vmem>>, vector<32x16xf32>
    %c0_17 = arith.constant 0 : index
    %c0_18 = arith.constant 0 : index
    %10 = vector.load %arg9[%c0_17, %c0_18] : memref<1x16xf32, #tpu.memory_space<vmem>>, vector<1x16xf32>
    %c0_19 = arith.constant 0 : index
    %c0_20 = arith.constant 0 : index
    %11 = vector.load %arg10[%c0_19, %c0_20] : memref<1x32xf32, #tpu.memory_space<vmem>>, vector<1x32xf32>
    %c0_21 = arith.constant 0 : index
    %c0_22 = arith.constant 0 : index
    %12 = vector.load %arg11[%c0_21, %c0_22] : memref<32x1xf32, #tpu.memory_space<vmem>>, vector<32x1xf32>
    %c0_23 = arith.constant 0 : index
    %c0_24 = arith.constant 0 : index
    %13 = vector.load %arg12[%c0_23, %c0_24] : memref<16x16xf32, #tpu.memory_space<vmem>>, vector<16x16xf32>
    %14 = vector.extract_strided_slice %2 {offsets = [0, 0], sizes = [16, 32], strides = [1, 1]} : vector<32x128xf32> to vector<16x32xf32>
    %15 = vector.extract_strided_slice %2 {offsets = [0, 32], sizes = [16, 32], strides = [1, 1]} : vector<32x128xf32> to vector<16x32xf32>
    %16 = vector.extract_strided_slice %2 {offsets = [0, 64], sizes = [16, 32], strides = [1, 1]} : vector<32x128xf32> to vector<16x32xf32>
    %17 = vector.extract_strided_slice %2 {offsets = [0, 96], sizes = [16, 32], strides = [1, 1]} : vector<32x128xf32> to vector<16x32xf32>
    %18 = arith.mulf %14, %14 : vector<16x32xf32>
    %cst_25 = arith.constant dense<0.000000e+00> : vector<32xf32>
    %19 = vector.multi_reduction <add>, %18, %cst_25 [0] : vector<16x32xf32> to vector<32xf32>
    %20 = vector.shape_cast %19 : vector<32xf32> to vector<1x32xf32>
    %21 = math.sqrt %20 : vector<1x32xf32>
    %cst_26 = arith.constant 9.99999996E-13 : f32
    %22 = vector.broadcast %cst_26 : f32 to vector<1x32xf32>
    %23 = arith.maximumf %21, %22 : vector<1x32xf32>
    %cst_27 = arith.constant 1.000000e+00 : f32
    %24 = vector.broadcast %cst_27 : f32 to vector<1x32xf32>
    %25 = arith.divf %24, %23 : vector<1x32xf32>
    %26 = arith.mulf %15, %15 : vector<16x32xf32>
    %cst_28 = arith.constant dense<0.000000e+00> : vector<32xf32>
    %27 = vector.multi_reduction <add>, %26, %cst_28 [0] : vector<16x32xf32> to vector<32xf32>
    %28 = vector.shape_cast %27 : vector<32xf32> to vector<1x32xf32>
    %29 = math.sqrt %28 : vector<1x32xf32>
    %cst_29 = arith.constant 9.99999996E-13 : f32
    %30 = vector.broadcast %cst_29 : f32 to vector<1x32xf32>
    %31 = arith.maximumf %29, %30 : vector<1x32xf32>
    %32 = arith.divf %11, %31 : vector<1x32xf32>
    %33 = vector.broadcast %25 : vector<1x32xf32> to vector<16x32xf32>
    %34 = arith.mulf %14, %33 : vector<16x32xf32>
    %35 = vector.broadcast %32 : vector<1x32xf32> to vector<16x32xf32>
    %36 = arith.mulf %15, %35 : vector<16x32xf32>
    %37 = tpu.transpose %34, [1, 0] : vector<16x32xf32> -> vector<32x16xf32>
    %38 = tpu.transpose %15, [1, 0] : vector<16x32xf32> -> vector<32x16xf32>
    %39 = tpu.transpose %17, [1, 0] : vector<16x32xf32> -> vector<32x16xf32>
    %cst_30 = arith.constant dense<0.000000e+00> : vector<32x8xf32>
    %40 = tpu.matmul %38, %3, %cst_30 {dimension_numbers = #tpu.dot_dimension_numbers<[1], [0], [0], [1], [0, 0, 1, 1], [], []>} : vector<32x16xf32>, vector<16x8xf32>, vector<32x8xf32> -> vector<32x8xf32>
    %41 = vector.broadcast %4 : vector<1x8xf32> to vector<32x8xf32>
    %42 = arith.addf %40, %41 : vector<32x8xf32>
    %43 = vector.broadcast %12 : vector<32x1xf32> to vector<32x8xf32>
    %44 = arith.mulf %42, %43 : vector<32x8xf32>
    %cst_31 = arith.constant dense<0.000000e+00> : vector<32x8xf32>
    %45 = tpu.matmul %39, %5, %cst_31 {dimension_numbers = #tpu.dot_dimension_numbers<[1], [0], [0], [1], [0, 0, 1, 1], [], []>} : vector<32x16xf32>, vector<16x8xf32>, vector<32x8xf32> -> vector<32x8xf32>
    %46 = vector.broadcast %6 : vector<1x8xf32> to vector<32x8xf32>
    %47 = arith.addf %45, %46 : vector<32x8xf32>
    %cst_32 = arith.constant 0.000000e+00 : f32
    %48 = vector.broadcast %cst_32 : f32 to vector<16x16xf32>
    %cst_33 = arith.constant 0.000000e+00 : f32
    %49 = vector.broadcast %cst_33 : f32 to vector<8x16xf32>
    %cst_34 = arith.constant 0.000000e+00 : f32
    %50 = vector.broadcast %cst_34 : f32 to vector<8x16xf32>
    %51 = vector.extract_strided_slice %34 {offsets = [0, 0], sizes = [16, 8], strides = [1, 1]} : vector<16x32xf32> to vector<16x8xf32>
    %52 = vector.extract_strided_slice %37 {offsets = [0, 0], sizes = [8, 16], strides = [1, 1]} : vector<32x16xf32> to vector<8x16xf32>
    %53 = vector.extract_strided_slice %36 {offsets = [0, 0], sizes = [16, 8], strides = [1, 1]} : vector<16x32xf32> to vector<16x8xf32>
    %54 = vector.extract_strided_slice %16 {offsets = [0, 0], sizes = [16, 8], strides = [1, 1]} : vector<16x32xf32> to vector<16x8xf32>
    %55 = vector.extract_strided_slice %44 {offsets = [0, 0], sizes = [8, 8], strides = [1, 1]} : vector<32x8xf32> to vector<8x8xf32>
    %56 = vector.extract_strided_slice %47 {offsets = [0, 0], sizes = [8, 8], strides = [1, 1]} : vector<32x8xf32> to vector<8x8xf32>
    %cst_35 = arith.constant dense<0.000000e+00> : vector<8x8xf32>
    %57 = tpu.matmul %52, %53, %cst_35 {dimension_numbers = #tpu.dot_dimension_numbers<[1], [0], [0], [1], [0, 0, 1, 1], [], []>} : vector<8x16xf32>, vector<16x8xf32>, vector<8x8xf32> -> vector<8x8xf32>
    %cst_36 = arith.constant dense<0xFF800000> : vector<8xf32>
    %58 = vector.multi_reduction <maximumf>, %57, %cst_36 [1] : vector<8x8xf32> to vector<8xf32>
    %59 = vector.shape_cast %58 : vector<8xf32> to vector<8x1xf32>
    %60 = vector.broadcast %59 : vector<8x1xf32> to vector<8x8xf32>
    %61 = arith.subf %57, %60 : vector<8x8xf32>
    %62 = math.exp %61 : vector<8x8xf32>
    %cst_37 = arith.constant dense<0.000000e+00> : vector<8xf32>
    %63 = vector.multi_reduction <add>, %62, %cst_37 [1] : vector<8x8xf32> to vector<8xf32>
    %64 = vector.shape_cast %63 : vector<8xf32> to vector<8x1xf32>
    %65 = vector.broadcast %64 : vector<8x1xf32> to vector<8x8xf32>
    %66 = arith.divf %62, %65 : vector<8x8xf32>
    %67 = tpu.transpose %66, [1, 0] : vector<8x8xf32> -> vector<8x8xf32>
    %cst_38 = arith.constant dense<0.000000e+00> : vector<16x8xf32>
    %68 = tpu.matmul %54, %67, %cst_38 {dimension_numbers = #tpu.dot_dimension_numbers<[1], [0], [0], [1], [0, 0, 1, 1], [], []>} : vector<16x8xf32>, vector<8x8xf32>, vector<16x8xf32> -> vector<16x8xf32>
    %69 = vector.extract_strided_slice %9 {offsets = [0, 0], sizes = [8, 16], strides = [1, 1]} : vector<32x16xf32> to vector<8x16xf32>
    %cst_39 = arith.constant dense<0.000000e+00> : vector<16x16xf32>
    %70 = tpu.matmul %68, %69, %cst_39 {dimension_numbers = #tpu.dot_dimension_numbers<[1], [0], [0], [1], [0, 0, 1, 1], [], []>} : vector<16x8xf32>, vector<8x16xf32>, vector<16x16xf32> -> vector<16x16xf32>
    %71 = arith.addf %48, %70 : vector<16x16xf32>
    %cst_40 = arith.constant dense<0.000000e+00> : vector<16x8xf32>
    %72 = tpu.matmul %51, %55, %cst_40 {dimension_numbers = #tpu.dot_dimension_numbers<[1], [0], [0], [1], [0, 0, 1, 1], [], []>} : vector<16x8xf32>, vector<8x8xf32>, vector<16x8xf32> -> vector<16x8xf32>
    %cst_41 = arith.constant dense<0xFF800000> : vector<16xf32>
    %73 = vector.multi_reduction <maximumf>, %72, %cst_41 [1] : vector<16x8xf32> to vector<16xf32>
    %74 = vector.shape_cast %73 : vector<16xf32> to vector<16x1xf32>
    %75 = vector.broadcast %74 : vector<16x1xf32> to vector<16x8xf32>
    %76 = arith.subf %72, %75 : vector<16x8xf32>
    %77 = math.exp %76 : vector<16x8xf32>
    %cst_42 = arith.constant dense<0.000000e+00> : vector<16xf32>
    %78 = vector.multi_reduction <add>, %77, %cst_42 [1] : vector<16x8xf32> to vector<16xf32>
    %79 = vector.shape_cast %78 : vector<16xf32> to vector<16x1xf32>
    %80 = vector.broadcast %79 : vector<16x1xf32> to vector<16x8xf32>
    %81 = arith.divf %77, %80 : vector<16x8xf32>
    %82 = tpu.transpose %81, [1, 0] : vector<16x8xf32> -> vector<8x16xf32>
    %cst_43 = arith.constant dense<0.000000e+00> : vector<8x16xf32>
    %83 = tpu.matmul %56, %82, %cst_43 {dimension_numbers = #tpu.dot_dimension_numbers<[1], [0], [0], [1], [0, 0, 1, 1], [], []>} : vector<8x8xf32>, vector<8x16xf32>, vector<8x16xf32> -> vector<8x16xf32>
    %84 = vector.extract_strided_slice %7 {offsets = [0, 0], sizes = [16, 16], strides = [1, 1]} : vector<32x16xf32> to vector<16x16xf32>
    %cst_44 = arith.constant dense<0.000000e+00> : vector<8x16xf32>
    %85 = tpu.matmul %83, %84, %cst_44 {dimension_numbers = #tpu.dot_dimension_numbers<[1], [0], [0], [1], [0, 0, 1, 1], [], []>} : vector<8x16xf32>, vector<16x16xf32>, vector<8x16xf32> -> vector<8x16xf32>
    %86 = arith.addf %49, %85 : vector<8x16xf32>
    %87 = vector.extract_strided_slice %34 {offsets = [0, 8], sizes = [16, 8], strides = [1, 1]} : vector<16x32xf32> to vector<16x8xf32>
    %88 = vector.extract_strided_slice %37 {offsets = [8, 0], sizes = [8, 16], strides = [1, 1]} : vector<32x16xf32> to vector<8x16xf32>
    %89 = vector.extract_strided_slice %36 {offsets = [0, 8], sizes = [16, 8], strides = [1, 1]} : vector<16x32xf32> to vector<16x8xf32>
    %90 = vector.extract_strided_slice %16 {offsets = [0, 8], sizes = [16, 8], strides = [1, 1]} : vector<16x32xf32> to vector<16x8xf32>
    %91 = vector.extract_strided_slice %44 {offsets = [8, 0], sizes = [8, 8], strides = [1, 1]} : vector<32x8xf32> to vector<8x8xf32>
    %92 = vector.extract_strided_slice %47 {offsets = [8, 0], sizes = [8, 8], strides = [1, 1]} : vector<32x8xf32> to vector<8x8xf32>
    %cst_45 = arith.constant dense<0.000000e+00> : vector<8x8xf32>
    %93 = tpu.matmul %88, %89, %cst_45 {dimension_numbers = #tpu.dot_dimension_numbers<[1], [0], [0], [1], [0, 0, 1, 1], [], []>} : vector<8x16xf32>, vector<16x8xf32>, vector<8x8xf32> -> vector<8x8xf32>
    %cst_46 = arith.constant dense<0xFF800000> : vector<8xf32>
    %94 = vector.multi_reduction <maximumf>, %93, %cst_46 [1] : vector<8x8xf32> to vector<8xf32>
    %95 = vector.shape_cast %94 : vector<8xf32> to vector<8x1xf32>
    %96 = vector.broadcast %95 : vector<8x1xf32> to vector<8x8xf32>
    %97 = arith.subf %93, %96 : vector<8x8xf32>
    %98 = math.exp %97 : vector<8x8xf32>
    %cst_47 = arith.constant dense<0.000000e+00> : vector<8xf32>
    %99 = vector.multi_reduction <add>, %98, %cst_47 [1] : vector<8x8xf32> to vector<8xf32>
    %100 = vector.shape_cast %99 : vector<8xf32> to vector<8x1xf32>
    %101 = vector.broadcast %100 : vector<8x1xf32> to vector<8x8xf32>
    %102 = arith.divf %98, %101 : vector<8x8xf32>
    %103 = tpu.transpose %102, [1, 0] : vector<8x8xf32> -> vector<8x8xf32>
    %cst_48 = arith.constant dense<0.000000e+00> : vector<16x8xf32>
    %104 = tpu.matmul %90, %103, %cst_48 {dimension_numbers = #tpu.dot_dimension_numbers<[1], [0], [0], [1], [0, 0, 1, 1], [], []>} : vector<16x8xf32>, vector<8x8xf32>, vector<16x8xf32> -> vector<16x8xf32>
    %105 = vector.extract_strided_slice %9 {offsets = [8, 0], sizes = [8, 16], strides = [1, 1]} : vector<32x16xf32> to vector<8x16xf32>
    %cst_49 = arith.constant dense<0.000000e+00> : vector<16x16xf32>
    %106 = tpu.matmul %104, %105, %cst_49 {dimension_numbers = #tpu.dot_dimension_numbers<[1], [0], [0], [1], [0, 0, 1, 1], [], []>} : vector<16x8xf32>, vector<8x16xf32>, vector<16x16xf32> -> vector<16x16xf32>
    %107 = arith.addf %71, %106 : vector<16x16xf32>
    %cst_50 = arith.constant dense<0.000000e+00> : vector<16x8xf32>
    %108 = tpu.matmul %87, %91, %cst_50 {dimension_numbers = #tpu.dot_dimension_numbers<[1], [0], [0], [1], [0, 0, 1, 1], [], []>} : vector<16x8xf32>, vector<8x8xf32>, vector<16x8xf32> -> vector<16x8xf32>
    %cst_51 = arith.constant dense<0xFF800000> : vector<16xf32>
    %109 = vector.multi_reduction <maximumf>, %108, %cst_51 [1] : vector<16x8xf32> to vector<16xf32>
    %110 = vector.shape_cast %109 : vector<16xf32> to vector<16x1xf32>
    %111 = vector.broadcast %110 : vector<16x1xf32> to vector<16x8xf32>
    %112 = arith.subf %108, %111 : vector<16x8xf32>
    %113 = math.exp %112 : vector<16x8xf32>
    %cst_52 = arith.constant dense<0.000000e+00> : vector<16xf32>
    %114 = vector.multi_reduction <add>, %113, %cst_52 [1] : vector<16x8xf32> to vector<16xf32>
    %115 = vector.shape_cast %114 : vector<16xf32> to vector<16x1xf32>
    %116 = vector.broadcast %115 : vector<16x1xf32> to vector<16x8xf32>
    %117 = arith.divf %113, %116 : vector<16x8xf32>
    %118 = tpu.transpose %117, [1, 0] : vector<16x8xf32> -> vector<8x16xf32>
    %cst_53 = arith.constant dense<0.000000e+00> : vector<8x16xf32>
    %119 = tpu.matmul %92, %118, %cst_53 {dimension_numbers = #tpu.dot_dimension_numbers<[1], [0], [0], [1], [0, 0, 1, 1], [], []>} : vector<8x8xf32>, vector<8x16xf32>, vector<8x16xf32> -> vector<8x16xf32>
    %120 = vector.extract_strided_slice %7 {offsets = [16, 0], sizes = [16, 16], strides = [1, 1]} : vector<32x16xf32> to vector<16x16xf32>
    %cst_54 = arith.constant dense<0.000000e+00> : vector<8x16xf32>
    %121 = tpu.matmul %119, %120, %cst_54 {dimension_numbers = #tpu.dot_dimension_numbers<[1], [0], [0], [1], [0, 0, 1, 1], [], []>} : vector<8x16xf32>, vector<16x16xf32>, vector<8x16xf32> -> vector<8x16xf32>
    %122 = arith.addf %86, %121 : vector<8x16xf32>
    %123 = vector.extract_strided_slice %34 {offsets = [0, 16], sizes = [16, 8], strides = [1, 1]} : vector<16x32xf32> to vector<16x8xf32>
    %124 = vector.extract_strided_slice %37 {offsets = [16, 0], sizes = [8, 16], strides = [1, 1]} : vector<32x16xf32> to vector<8x16xf32>
    %125 = vector.extract_strided_slice %36 {offsets = [0, 16], sizes = [16, 8], strides = [1, 1]} : vector<16x32xf32> to vector<16x8xf32>
    %126 = vector.extract_strided_slice %16 {offsets = [0, 16], sizes = [16, 8], strides = [1, 1]} : vector<16x32xf32> to vector<16x8xf32>
    %127 = vector.extract_strided_slice %44 {offsets = [16, 0], sizes = [8, 8], strides = [1, 1]} : vector<32x8xf32> to vector<8x8xf32>
    %128 = vector.extract_strided_slice %47 {offsets = [16, 0], sizes = [8, 8], strides = [1, 1]} : vector<32x8xf32> to vector<8x8xf32>
    %cst_55 = arith.constant dense<0.000000e+00> : vector<8x8xf32>
    %129 = tpu.matmul %124, %125, %cst_55 {dimension_numbers = #tpu.dot_dimension_numbers<[1], [0], [0], [1], [0, 0, 1, 1], [], []>} : vector<8x16xf32>, vector<16x8xf32>, vector<8x8xf32> -> vector<8x8xf32>
    %cst_56 = arith.constant dense<0xFF800000> : vector<8xf32>
    %130 = vector.multi_reduction <maximumf>, %129, %cst_56 [1] : vector<8x8xf32> to vector<8xf32>
    %131 = vector.shape_cast %130 : vector<8xf32> to vector<8x1xf32>
    %132 = vector.broadcast %131 : vector<8x1xf32> to vector<8x8xf32>
    %133 = arith.subf %129, %132 : vector<8x8xf32>
    %134 = math.exp %133 : vector<8x8xf32>
    %cst_57 = arith.constant dense<0.000000e+00> : vector<8xf32>
    %135 = vector.multi_reduction <add>, %134, %cst_57 [1] : vector<8x8xf32> to vector<8xf32>
    %136 = vector.shape_cast %135 : vector<8xf32> to vector<8x1xf32>
    %137 = vector.broadcast %136 : vector<8x1xf32> to vector<8x8xf32>
    %138 = arith.divf %134, %137 : vector<8x8xf32>
    %139 = tpu.transpose %138, [1, 0] : vector<8x8xf32> -> vector<8x8xf32>
    %cst_58 = arith.constant dense<0.000000e+00> : vector<16x8xf32>
    %140 = tpu.matmul %126, %139, %cst_58 {dimension_numbers = #tpu.dot_dimension_numbers<[1], [0], [0], [1], [0, 0, 1, 1], [], []>} : vector<16x8xf32>, vector<8x8xf32>, vector<16x8xf32> -> vector<16x8xf32>
    %141 = vector.extract_strided_slice %9 {offsets = [16, 0], sizes = [8, 16], strides = [1, 1]} : vector<32x16xf32> to vector<8x16xf32>
    %cst_59 = arith.constant dense<0.000000e+00> : vector<16x16xf32>
    %142 = tpu.matmul %140, %141, %cst_59 {dimension_numbers = #tpu.dot_dimension_numbers<[1], [0], [0], [1], [0, 0, 1, 1], [], []>} : vector<16x8xf32>, vector<8x16xf32>, vector<16x16xf32> -> vector<16x16xf32>
    %143 = arith.addf %107, %142 : vector<16x16xf32>
    %cst_60 = arith.constant dense<0.000000e+00> : vector<16x8xf32>
    %144 = tpu.matmul %123, %127, %cst_60 {dimension_numbers = #tpu.dot_dimension_numbers<[1], [0], [0], [1], [0, 0, 1, 1], [], []>} : vector<16x8xf32>, vector<8x8xf32>, vector<16x8xf32> -> vector<16x8xf32>
    %cst_61 = arith.constant dense<0xFF800000> : vector<16xf32>
    %145 = vector.multi_reduction <maximumf>, %144, %cst_61 [1] : vector<16x8xf32> to vector<16xf32>
    %146 = vector.shape_cast %145 : vector<16xf32> to vector<16x1xf32>
    %147 = vector.broadcast %146 : vector<16x1xf32> to vector<16x8xf32>
    %148 = arith.subf %144, %147 : vector<16x8xf32>
    %149 = math.exp %148 : vector<16x8xf32>
    %cst_62 = arith.constant dense<0.000000e+00> : vector<16xf32>
    %150 = vector.multi_reduction <add>, %149, %cst_62 [1] : vector<16x8xf32> to vector<16xf32>
    %151 = vector.shape_cast %150 : vector<16xf32> to vector<16x1xf32>
    %152 = vector.broadcast %151 : vector<16x1xf32> to vector<16x8xf32>
    %153 = arith.divf %149, %152 : vector<16x8xf32>
    %154 = tpu.transpose %153, [1, 0] : vector<16x8xf32> -> vector<8x16xf32>
    %cst_63 = arith.constant dense<0.000000e+00> : vector<8x16xf32>
    %155 = tpu.matmul %128, %154, %cst_63 {dimension_numbers = #tpu.dot_dimension_numbers<[1], [0], [0], [1], [0, 0, 1, 1], [], []>} : vector<8x8xf32>, vector<8x16xf32>, vector<8x16xf32> -> vector<8x16xf32>
    %156 = vector.extract_strided_slice %7 {offsets = [0, 0], sizes = [16, 16], strides = [1, 1]} : vector<32x16xf32> to vector<16x16xf32>
    %cst_64 = arith.constant dense<0.000000e+00> : vector<8x16xf32>
    %157 = tpu.matmul %155, %156, %cst_64 {dimension_numbers = #tpu.dot_dimension_numbers<[1], [0], [0], [1], [0, 0, 1, 1], [], []>} : vector<8x16xf32>, vector<16x16xf32>, vector<8x16xf32> -> vector<8x16xf32>
    %158 = arith.addf %50, %157 : vector<8x16xf32>
    %159 = vector.extract_strided_slice %34 {offsets = [0, 24], sizes = [16, 8], strides = [1, 1]} : vector<16x32xf32> to vector<16x8xf32>
    %160 = vector.extract_strided_slice %37 {offsets = [24, 0], sizes = [8, 16], strides = [1, 1]} : vector<32x16xf32> to vector<8x16xf32>
    %161 = vector.extract_strided_slice %36 {offsets = [0, 24], sizes = [16, 8], strides = [1, 1]} : vector<16x32xf32> to vector<16x8xf32>
    %162 = vector.extract_strided_slice %16 {offsets = [0, 24], sizes = [16, 8], strides = [1, 1]} : vector<16x32xf32> to vector<16x8xf32>
    %163 = vector.extract_strided_slice %44 {offsets = [24, 0], sizes = [8, 8], strides = [1, 1]} : vector<32x8xf32> to vector<8x8xf32>
    %164 = vector.extract_strided_slice %47 {offsets = [24, 0], sizes = [8, 8], strides = [1, 1]} : vector<32x8xf32> to vector<8x8xf32>
    %cst_65 = arith.constant dense<0.000000e+00> : vector<8x8xf32>
    %165 = tpu.matmul %160, %161, %cst_65 {dimension_numbers = #tpu.dot_dimension_numbers<[1], [0], [0], [1], [0, 0, 1, 1], [], []>} : vector<8x16xf32>, vector<16x8xf32>, vector<8x8xf32> -> vector<8x8xf32>
    %cst_66 = arith.constant dense<0xFF800000> : vector<8xf32>
    %166 = vector.multi_reduction <maximumf>, %165, %cst_66 [1] : vector<8x8xf32> to vector<8xf32>
    %167 = vector.shape_cast %166 : vector<8xf32> to vector<8x1xf32>
    %168 = vector.broadcast %167 : vector<8x1xf32> to vector<8x8xf32>
    %169 = arith.subf %165, %168 : vector<8x8xf32>
    %170 = math.exp %169 : vector<8x8xf32>
    %cst_67 = arith.constant dense<0.000000e+00> : vector<8xf32>
    %171 = vector.multi_reduction <add>, %170, %cst_67 [1] : vector<8x8xf32> to vector<8xf32>
    %172 = vector.shape_cast %171 : vector<8xf32> to vector<8x1xf32>
    %173 = vector.broadcast %172 : vector<8x1xf32> to vector<8x8xf32>
    %174 = arith.divf %170, %173 : vector<8x8xf32>
    %175 = tpu.transpose %174, [1, 0] : vector<8x8xf32> -> vector<8x8xf32>
    %cst_68 = arith.constant dense<0.000000e+00> : vector<16x8xf32>
    %176 = tpu.matmul %162, %175, %cst_68 {dimension_numbers = #tpu.dot_dimension_numbers<[1], [0], [0], [1], [0, 0, 1, 1], [], []>} : vector<16x8xf32>, vector<8x8xf32>, vector<16x8xf32> -> vector<16x8xf32>
    %177 = vector.extract_strided_slice %9 {offsets = [24, 0], sizes = [8, 16], strides = [1, 1]} : vector<32x16xf32> to vector<8x16xf32>
    %cst_69 = arith.constant dense<0.000000e+00> : vector<16x16xf32>
    %178 = tpu.matmul %176, %177, %cst_69 {dimension_numbers = #tpu.dot_dimension_numbers<[1], [0], [0], [1], [0, 0, 1, 1], [], []>} : vector<16x8xf32>, vector<8x16xf32>, vector<16x16xf32> -> vector<16x16xf32>
    %179 = arith.addf %143, %178 : vector<16x16xf32>
    %cst_70 = arith.constant dense<0.000000e+00> : vector<16x8xf32>
    %180 = tpu.matmul %159, %163, %cst_70 {dimension_numbers = #tpu.dot_dimension_numbers<[1], [0], [0], [1], [0, 0, 1, 1], [], []>} : vector<16x8xf32>, vector<8x8xf32>, vector<16x8xf32> -> vector<16x8xf32>
    %cst_71 = arith.constant dense<0xFF800000> : vector<16xf32>
    %181 = vector.multi_reduction <maximumf>, %180, %cst_71 [1] : vector<16x8xf32> to vector<16xf32>
    %182 = vector.shape_cast %181 : vector<16xf32> to vector<16x1xf32>
    %183 = vector.broadcast %182 : vector<16x1xf32> to vector<16x8xf32>
    %184 = arith.subf %180, %183 : vector<16x8xf32>
    %185 = math.exp %184 : vector<16x8xf32>
    %cst_72 = arith.constant dense<0.000000e+00> : vector<16xf32>
    %186 = vector.multi_reduction <add>, %185, %cst_72 [1] : vector<16x8xf32> to vector<16xf32>
    %187 = vector.shape_cast %186 : vector<16xf32> to vector<16x1xf32>
    %188 = vector.broadcast %187 : vector<16x1xf32> to vector<16x8xf32>
    %189 = arith.divf %185, %188 : vector<16x8xf32>
    %190 = tpu.transpose %189, [1, 0] : vector<16x8xf32> -> vector<8x16xf32>
    %cst_73 = arith.constant dense<0.000000e+00> : vector<8x16xf32>
    %191 = tpu.matmul %164, %190, %cst_73 {dimension_numbers = #tpu.dot_dimension_numbers<[1], [0], [0], [1], [0, 0, 1, 1], [], []>} : vector<8x8xf32>, vector<8x16xf32>, vector<8x16xf32> -> vector<8x16xf32>
    %192 = vector.extract_strided_slice %7 {offsets = [16, 0], sizes = [16, 16], strides = [1, 1]} : vector<32x16xf32> to vector<16x16xf32>
    %cst_74 = arith.constant dense<0.000000e+00> : vector<8x16xf32>
    %193 = tpu.matmul %191, %192, %cst_74 {dimension_numbers = #tpu.dot_dimension_numbers<[1], [0], [0], [1], [0, 0, 1, 1], [], []>} : vector<8x16xf32>, vector<16x16xf32>, vector<8x16xf32> -> vector<8x16xf32>
    %194 = arith.addf %158, %193 : vector<8x16xf32>
    %195 = vector.extract_strided_slice %13 {offsets = [0, 0], sizes = [16, 8], strides = [1, 1]} : vector<16x16xf32> to vector<16x8xf32>
    %cst_75 = arith.constant dense<0.000000e+00> : vector<16x16xf32>
    %196 = tpu.matmul %195, %122, %cst_75 {dimension_numbers = #tpu.dot_dimension_numbers<[1], [0], [0], [1], [0, 0, 1, 1], [], []>} : vector<16x8xf32>, vector<8x16xf32>, vector<16x16xf32> -> vector<16x16xf32>
    %197 = vector.extract_strided_slice %13 {offsets = [0, 8], sizes = [16, 8], strides = [1, 1]} : vector<16x16xf32> to vector<16x8xf32>
    %cst_76 = arith.constant dense<0.000000e+00> : vector<16x16xf32>
    %198 = tpu.matmul %197, %194, %cst_76 {dimension_numbers = #tpu.dot_dimension_numbers<[1], [0], [0], [1], [0, 0, 1, 1], [], []>} : vector<16x8xf32>, vector<8x16xf32>, vector<16x16xf32> -> vector<16x16xf32>
    %199 = arith.addf %196, %198 : vector<16x16xf32>
    %200 = vector.broadcast %8 : vector<1x16xf32> to vector<16x16xf32>
    %201 = arith.addf %199, %200 : vector<16x16xf32>
    %c0_77 = arith.constant 0 : index
    %c0_78 = arith.constant 0 : index
    %202 = vector.load %arg13[%c0_77, %c0_78] : memref<32x32xf32, #tpu.memory_space<vmem>>, vector<16x16xf32>
    tpu.vector_store %arg13[%c0_77, %c0_78], %201 {strides = array<i32>} : memref<32x32xf32, #tpu.memory_space<vmem>>, vector<16x16xf32>,
    %203 = vector.broadcast %10 : vector<1x16xf32> to vector<16x16xf32>
    %204 = arith.addf %179, %203 : vector<16x16xf32>
    %c0_79 = arith.constant 0 : index
    %c16 = arith.constant 16 : index
    %205 = vector.load %arg13[%c0_79, %c16] : memref<32x32xf32, #tpu.memory_space<vmem>>, vector<16x16xf32>
    tpu.vector_store %arg13[%c0_79, %c16], %204 {strides = array<i32>} : memref<32x32xf32, #tpu.memory_space<vmem>>, vector<16x16xf32>,
    %206 = vector.extract_strided_slice %2 {offsets = [16, 0], sizes = [16, 32], strides = [1, 1]} : vector<32x128xf32> to vector<16x32xf32>
    %207 = vector.extract_strided_slice %2 {offsets = [16, 32], sizes = [16, 32], strides = [1, 1]} : vector<32x128xf32> to vector<16x32xf32>
    %208 = vector.extract_strided_slice %2 {offsets = [16, 64], sizes = [16, 32], strides = [1, 1]} : vector<32x128xf32> to vector<16x32xf32>
    %209 = vector.extract_strided_slice %2 {offsets = [16, 96], sizes = [16, 32], strides = [1, 1]} : vector<32x128xf32> to vector<16x32xf32>
    %210 = arith.mulf %206, %206 : vector<16x32xf32>
    %cst_80 = arith.constant dense<0.000000e+00> : vector<32xf32>
    %211 = vector.multi_reduction <add>, %210, %cst_80 [0] : vector<16x32xf32> to vector<32xf32>
    %212 = vector.shape_cast %211 : vector<32xf32> to vector<1x32xf32>
    %213 = math.sqrt %212 : vector<1x32xf32>
    %cst_81 = arith.constant 9.99999996E-13 : f32
    %214 = vector.broadcast %cst_81 : f32 to vector<1x32xf32>
    %215 = arith.maximumf %213, %214 : vector<1x32xf32>
    %cst_82 = arith.constant 1.000000e+00 : f32
    %216 = vector.broadcast %cst_82 : f32 to vector<1x32xf32>
    %217 = arith.divf %216, %215 : vector<1x32xf32>
    %218 = arith.mulf %207, %207 : vector<16x32xf32>
    %cst_83 = arith.constant dense<0.000000e+00> : vector<32xf32>
    %219 = vector.multi_reduction <add>, %218, %cst_83 [0] : vector<16x32xf32> to vector<32xf32>
    %220 = vector.shape_cast %219 : vector<32xf32> to vector<1x32xf32>
    %221 = math.sqrt %220 : vector<1x32xf32>
    %cst_84 = arith.constant 9.99999996E-13 : f32
    %222 = vector.broadcast %cst_84 : f32 to vector<1x32xf32>
    %223 = arith.maximumf %221, %222 : vector<1x32xf32>
    %224 = arith.divf %11, %223 : vector<1x32xf32>
    %225 = vector.broadcast %217 : vector<1x32xf32> to vector<16x32xf32>
    %226 = arith.mulf %206, %225 : vector<16x32xf32>
    %227 = vector.broadcast %224 : vector<1x32xf32> to vector<16x32xf32>
    %228 = arith.mulf %207, %227 : vector<16x32xf32>
    %229 = tpu.transpose %226, [1, 0] : vector<16x32xf32> -> vector<32x16xf32>
    %230 = tpu.transpose %207, [1, 0] : vector<16x32xf32> -> vector<32x16xf32>
    %231 = tpu.transpose %209, [1, 0] : vector<16x32xf32> -> vector<32x16xf32>
    %cst_85 = arith.constant dense<0.000000e+00> : vector<32x8xf32>
    %232 = tpu.matmul %230, %3, %cst_85 {dimension_numbers = #tpu.dot_dimension_numbers<[1], [0], [0], [1], [0, 0, 1, 1], [], []>} : vector<32x16xf32>, vector<16x8xf32>, vector<32x8xf32> -> vector<32x8xf32>
    %233 = vector.broadcast %4 : vector<1x8xf32> to vector<32x8xf32>
    %234 = arith.addf %232, %233 : vector<32x8xf32>
    %235 = vector.broadcast %12 : vector<32x1xf32> to vector<32x8xf32>
    %236 = arith.mulf %234, %235 : vector<32x8xf32>
    %cst_86 = arith.constant dense<0.000000e+00> : vector<32x8xf32>
    %237 = tpu.matmul %231, %5, %cst_86 {dimension_numbers = #tpu.dot_dimension_numbers<[1], [0], [0], [1], [0, 0, 1, 1], [], []>} : vector<32x16xf32>, vector<16x8xf32>, vector<32x8xf32> -> vector<32x8xf32>
    %238 = vector.broadcast %6 : vector<1x8xf32> to vector<32x8xf32>
    %239 = arith.addf %237, %238 : vector<32x8xf32>
    %cst_87 = arith.constant 0.000000e+00 : f32
    %240 = vector.broadcast %cst_87 : f32 to vector<16x16xf32>
    %cst_88 = arith.constant 0.000000e+00 : f32
    %241 = vector.broadcast %cst_88 : f32 to vector<8x16xf32>
    %cst_89 = arith.constant 0.000000e+00 : f32
    %242 = vector.broadcast %cst_89 : f32 to vector<8x16xf32>
    %243 = vector.extract_strided_slice %226 {offsets = [0, 0], sizes = [16, 8], strides = [1, 1]} : vector<16x32xf32> to vector<16x8xf32>
    %244 = vector.extract_strided_slice %229 {offsets = [0, 0], sizes = [8, 16], strides = [1, 1]} : vector<32x16xf32> to vector<8x16xf32>
    %245 = vector.extract_strided_slice %228 {offsets = [0, 0], sizes = [16, 8], strides = [1, 1]} : vector<16x32xf32> to vector<16x8xf32>
    %246 = vector.extract_strided_slice %208 {offsets = [0, 0], sizes = [16, 8], strides = [1, 1]} : vector<16x32xf32> to vector<16x8xf32>
    %247 = vector.extract_strided_slice %236 {offsets = [0, 0], sizes = [8, 8], strides = [1, 1]} : vector<32x8xf32> to vector<8x8xf32>
    %248 = vector.extract_strided_slice %239 {offsets = [0, 0], sizes = [8, 8], strides = [1, 1]} : vector<32x8xf32> to vector<8x8xf32>
    %cst_90 = arith.constant dense<0.000000e+00> : vector<8x8xf32>
    %249 = tpu.matmul %244, %245, %cst_90 {dimension_numbers = #tpu.dot_dimension_numbers<[1], [0], [0], [1], [0, 0, 1, 1], [], []>} : vector<8x16xf32>, vector<16x8xf32>, vector<8x8xf32> -> vector<8x8xf32>
    %cst_91 = arith.constant dense<0xFF800000> : vector<8xf32>
    %250 = vector.multi_reduction <maximumf>, %249, %cst_91 [1] : vector<8x8xf32> to vector<8xf32>
    %251 = vector.shape_cast %250 : vector<8xf32> to vector<8x1xf32>
    %252 = vector.broadcast %251 : vector<8x1xf32> to vector<8x8xf32>
    %253 = arith.subf %249, %252 : vector<8x8xf32>
    %254 = math.exp %253 : vector<8x8xf32>
    %cst_92 = arith.constant dense<0.000000e+00> : vector<8xf32>
    %255 = vector.multi_reduction <add>, %254, %cst_92 [1] : vector<8x8xf32> to vector<8xf32>
    %256 = vector.shape_cast %255 : vector<8xf32> to vector<8x1xf32>
    %257 = vector.broadcast %256 : vector<8x1xf32> to vector<8x8xf32>
    %258 = arith.divf %254, %257 : vector<8x8xf32>
    %259 = tpu.transpose %258, [1, 0] : vector<8x8xf32> -> vector<8x8xf32>
    %cst_93 = arith.constant dense<0.000000e+00> : vector<16x8xf32>
    %260 = tpu.matmul %246, %259, %cst_93 {dimension_numbers = #tpu.dot_dimension_numbers<[1], [0], [0], [1], [0, 0, 1, 1], [], []>} : vector<16x8xf32>, vector<8x8xf32>, vector<16x8xf32> -> vector<16x8xf32>
    %261 = vector.extract_strided_slice %9 {offsets = [0, 0], sizes = [8, 16], strides = [1, 1]} : vector<32x16xf32> to vector<8x16xf32>
    %cst_94 = arith.constant dense<0.000000e+00> : vector<16x16xf32>
    %262 = tpu.matmul %260, %261, %cst_94 {dimension_numbers = #tpu.dot_dimension_numbers<[1], [0], [0], [1], [0, 0, 1, 1], [], []>} : vector<16x8xf32>, vector<8x16xf32>, vector<16x16xf32> -> vector<16x16xf32>
    %263 = arith.addf %240, %262 : vector<16x16xf32>
    %cst_95 = arith.constant dense<0.000000e+00> : vector<16x8xf32>
    %264 = tpu.matmul %243, %247, %cst_95 {dimension_numbers = #tpu.dot_dimension_numbers<[1], [0], [0], [1], [0, 0, 1, 1], [], []>} : vector<16x8xf32>, vector<8x8xf32>, vector<16x8xf32> -> vector<16x8xf32>
    %cst_96 = arith.constant dense<0xFF800000> : vector<16xf32>
    %265 = vector.multi_reduction <maximumf>, %264, %cst_96 [1] : vector<16x8xf32> to vector<16xf32>
    %266 = vector.shape_cast %265 : vector<16xf32> to vector<16x1xf32>
    %267 = vector.broadcast %266 : vector<16x1xf32> to vector<16x8xf32>
    %268 = arith.subf %264, %267 : vector<16x8xf32>
    %269 = math.exp %268 : vector<16x8xf32>
    %cst_97 = arith.constant dense<0.000000e+00> : vector<16xf32>
    %270 = vector.multi_reduction <add>, %269, %cst_97 [1] : vector<16x8xf32> to vector<16xf32>
    %271 = vector.shape_cast %270 : vector<16xf32> to vector<16x1xf32>
    %272 = vector.broadcast %271 : vector<16x1xf32> to vector<16x8xf32>
    %273 = arith.divf %269, %272 : vector<16x8xf32>
    %274 = tpu.transpose %273, [1, 0] : vector<16x8xf32> -> vector<8x16xf32>
    %cst_98 = arith.constant dense<0.000000e+00> : vector<8x16xf32>
    %275 = tpu.matmul %248, %274, %cst_98 {dimension_numbers = #tpu.dot_dimension_numbers<[1], [0], [0], [1], [0, 0, 1, 1], [], []>} : vector<8x8xf32>, vector<8x16xf32>, vector<8x16xf32> -> vector<8x16xf32>
    %276 = vector.extract_strided_slice %7 {offsets = [0, 0], sizes = [16, 16], strides = [1, 1]} : vector<32x16xf32> to vector<16x16xf32>
    %cst_99 = arith.constant dense<0.000000e+00> : vector<8x16xf32>
    %277 = tpu.matmul %275, %276, %cst_99 {dimension_numbers = #tpu.dot_dimension_numbers<[1], [0], [0], [1], [0, 0, 1, 1], [], []>} : vector<8x16xf32>, vector<16x16xf32>, vector<8x16xf32> -> vector<8x16xf32>
    %278 = arith.addf %241, %277 : vector<8x16xf32>
    %279 = vector.extract_strided_slice %226 {offsets = [0, 8], sizes = [16, 8], strides = [1, 1]} : vector<16x32xf32> to vector<16x8xf32>
    %280 = vector.extract_strided_slice %229 {offsets = [8, 0], sizes = [8, 16], strides = [1, 1]} : vector<32x16xf32> to vector<8x16xf32>
    %281 = vector.extract_strided_slice %228 {offsets = [0, 8], sizes = [16, 8], strides = [1, 1]} : vector<16x32xf32> to vector<16x8xf32>
    %282 = vector.extract_strided_slice %208 {offsets = [0, 8], sizes = [16, 8], strides = [1, 1]} : vector<16x32xf32> to vector<16x8xf32>
    %283 = vector.extract_strided_slice %236 {offsets = [8, 0], sizes = [8, 8], strides = [1, 1]} : vector<32x8xf32> to vector<8x8xf32>
    %284 = vector.extract_strided_slice %239 {offsets = [8, 0], sizes = [8, 8], strides = [1, 1]} : vector<32x8xf32> to vector<8x8xf32>
    %cst_100 = arith.constant dense<0.000000e+00> : vector<8x8xf32>
    %285 = tpu.matmul %280, %281, %cst_100 {dimension_numbers = #tpu.dot_dimension_numbers<[1], [0], [0], [1], [0, 0, 1, 1], [], []>} : vector<8x16xf32>, vector<16x8xf32>, vector<8x8xf32> -> vector<8x8xf32>
    %cst_101 = arith.constant dense<0xFF800000> : vector<8xf32>
    %286 = vector.multi_reduction <maximumf>, %285, %cst_101 [1] : vector<8x8xf32> to vector<8xf32>
    %287 = vector.shape_cast %286 : vector<8xf32> to vector<8x1xf32>
    %288 = vector.broadcast %287 : vector<8x1xf32> to vector<8x8xf32>
    %289 = arith.subf %285, %288 : vector<8x8xf32>
    %290 = math.exp %289 : vector<8x8xf32>
    %cst_102 = arith.constant dense<0.000000e+00> : vector<8xf32>
    %291 = vector.multi_reduction <add>, %290, %cst_102 [1] : vector<8x8xf32> to vector<8xf32>
    %292 = vector.shape_cast %291 : vector<8xf32> to vector<8x1xf32>
    %293 = vector.broadcast %292 : vector<8x1xf32> to vector<8x8xf32>
    %294 = arith.divf %290, %293 : vector<8x8xf32>
    %295 = tpu.transpose %294, [1, 0] : vector<8x8xf32> -> vector<8x8xf32>
    %cst_103 = arith.constant dense<0.000000e+00> : vector<16x8xf32>
    %296 = tpu.matmul %282, %295, %cst_103 {dimension_numbers = #tpu.dot_dimension_numbers<[1], [0], [0], [1], [0, 0, 1, 1], [], []>} : vector<16x8xf32>, vector<8x8xf32>, vector<16x8xf32> -> vector<16x8xf32>
    %297 = vector.extract_strided_slice %9 {offsets = [8, 0], sizes = [8, 16], strides = [1, 1]} : vector<32x16xf32> to vector<8x16xf32>
    %cst_104 = arith.constant dense<0.000000e+00> : vector<16x16xf32>
    %298 = tpu.matmul %296, %297, %cst_104 {dimension_numbers = #tpu.dot_dimension_numbers<[1], [0], [0], [1], [0, 0, 1, 1], [], []>} : vector<16x8xf32>, vector<8x16xf32>, vector<16x16xf32> -> vector<16x16xf32>
    %299 = arith.addf %263, %298 : vector<16x16xf32>
    %cst_105 = arith.constant dense<0.000000e+00> : vector<16x8xf32>
    %300 = tpu.matmul %279, %283, %cst_105 {dimension_numbers = #tpu.dot_dimension_numbers<[1], [0], [0], [1], [0, 0, 1, 1], [], []>} : vector<16x8xf32>, vector<8x8xf32>, vector<16x8xf32> -> vector<16x8xf32>
    %cst_106 = arith.constant dense<0xFF800000> : vector<16xf32>
    %301 = vector.multi_reduction <maximumf>, %300, %cst_106 [1] : vector<16x8xf32> to vector<16xf32>
    %302 = vector.shape_cast %301 : vector<16xf32> to vector<16x1xf32>
    %303 = vector.broadcast %302 : vector<16x1xf32> to vector<16x8xf32>
    %304 = arith.subf %300, %303 : vector<16x8xf32>
    %305 = math.exp %304 : vector<16x8xf32>
    %cst_107 = arith.constant dense<0.000000e+00> : vector<16xf32>
    %306 = vector.multi_reduction <add>, %305, %cst_107 [1] : vector<16x8xf32> to vector<16xf32>
    %307 = vector.shape_cast %306 : vector<16xf32> to vector<16x1xf32>
    %308 = vector.broadcast %307 : vector<16x1xf32> to vector<16x8xf32>
    %309 = arith.divf %305, %308 : vector<16x8xf32>
    %310 = tpu.transpose %309, [1, 0] : vector<16x8xf32> -> vector<8x16xf32>
    %cst_108 = arith.constant dense<0.000000e+00> : vector<8x16xf32>
    %311 = tpu.matmul %284, %310, %cst_108 {dimension_numbers = #tpu.dot_dimension_numbers<[1], [0], [0], [1], [0, 0, 1, 1], [], []>} : vector<8x8xf32>, vector<8x16xf32>, vector<8x16xf32> -> vector<8x16xf32>
    %312 = vector.extract_strided_slice %7 {offsets = [16, 0], sizes = [16, 16], strides = [1, 1]} : vector<32x16xf32> to vector<16x16xf32>
    %cst_109 = arith.constant dense<0.000000e+00> : vector<8x16xf32>
    %313 = tpu.matmul %311, %312, %cst_109 {dimension_numbers = #tpu.dot_dimension_numbers<[1], [0], [0], [1], [0, 0, 1, 1], [], []>} : vector<8x16xf32>, vector<16x16xf32>, vector<8x16xf32> -> vector<8x16xf32>
    %314 = arith.addf %278, %313 : vector<8x16xf32>
    %315 = vector.extract_strided_slice %226 {offsets = [0, 16], sizes = [16, 8], strides = [1, 1]} : vector<16x32xf32> to vector<16x8xf32>
    %316 = vector.extract_strided_slice %229 {offsets = [16, 0], sizes = [8, 16], strides = [1, 1]} : vector<32x16xf32> to vector<8x16xf32>
    %317 = vector.extract_strided_slice %228 {offsets = [0, 16], sizes = [16, 8], strides = [1, 1]} : vector<16x32xf32> to vector<16x8xf32>
    %318 = vector.extract_strided_slice %208 {offsets = [0, 16], sizes = [16, 8], strides = [1, 1]} : vector<16x32xf32> to vector<16x8xf32>
    %319 = vector.extract_strided_slice %236 {offsets = [16, 0], sizes = [8, 8], strides = [1, 1]} : vector<32x8xf32> to vector<8x8xf32>
    %320 = vector.extract_strided_slice %239 {offsets = [16, 0], sizes = [8, 8], strides = [1, 1]} : vector<32x8xf32> to vector<8x8xf32>
    %cst_110 = arith.constant dense<0.000000e+00> : vector<8x8xf32>
    %321 = tpu.matmul %316, %317, %cst_110 {dimension_numbers = #tpu.dot_dimension_numbers<[1], [0], [0], [1], [0, 0, 1, 1], [], []>} : vector<8x16xf32>, vector<16x8xf32>, vector<8x8xf32> -> vector<8x8xf32>
    %cst_111 = arith.constant dense<0xFF800000> : vector<8xf32>
    %322 = vector.multi_reduction <maximumf>, %321, %cst_111 [1] : vector<8x8xf32> to vector<8xf32>
    %323 = vector.shape_cast %322 : vector<8xf32> to vector<8x1xf32>
    %324 = vector.broadcast %323 : vector<8x1xf32> to vector<8x8xf32>
    %325 = arith.subf %321, %324 : vector<8x8xf32>
    %326 = math.exp %325 : vector<8x8xf32>
    %cst_112 = arith.constant dense<0.000000e+00> : vector<8xf32>
    %327 = vector.multi_reduction <add>, %326, %cst_112 [1] : vector<8x8xf32> to vector<8xf32>
    %328 = vector.shape_cast %327 : vector<8xf32> to vector<8x1xf32>
    %329 = vector.broadcast %328 : vector<8x1xf32> to vector<8x8xf32>
    %330 = arith.divf %326, %329 : vector<8x8xf32>
    %331 = tpu.transpose %330, [1, 0] : vector<8x8xf32> -> vector<8x8xf32>
    %cst_113 = arith.constant dense<0.000000e+00> : vector<16x8xf32>
    %332 = tpu.matmul %318, %331, %cst_113 {dimension_numbers = #tpu.dot_dimension_numbers<[1], [0], [0], [1], [0, 0, 1, 1], [], []>} : vector<16x8xf32>, vector<8x8xf32>, vector<16x8xf32> -> vector<16x8xf32>
    %333 = vector.extract_strided_slice %9 {offsets = [16, 0], sizes = [8, 16], strides = [1, 1]} : vector<32x16xf32> to vector<8x16xf32>
    %cst_114 = arith.constant dense<0.000000e+00> : vector<16x16xf32>
    %334 = tpu.matmul %332, %333, %cst_114 {dimension_numbers = #tpu.dot_dimension_numbers<[1], [0], [0], [1], [0, 0, 1, 1], [], []>} : vector<16x8xf32>, vector<8x16xf32>, vector<16x16xf32> -> vector<16x16xf32>
    %335 = arith.addf %299, %334 : vector<16x16xf32>
    %cst_115 = arith.constant dense<0.000000e+00> : vector<16x8xf32>
    %336 = tpu.matmul %315, %319, %cst_115 {dimension_numbers = #tpu.dot_dimension_numbers<[1], [0], [0], [1], [0, 0, 1, 1], [], []>} : vector<16x8xf32>, vector<8x8xf32>, vector<16x8xf32> -> vector<16x8xf32>
    %cst_116 = arith.constant dense<0xFF800000> : vector<16xf32>
    %337 = vector.multi_reduction <maximumf>, %336, %cst_116 [1] : vector<16x8xf32> to vector<16xf32>
    %338 = vector.shape_cast %337 : vector<16xf32> to vector<16x1xf32>
    %339 = vector.broadcast %338 : vector<16x1xf32> to vector<16x8xf32>
    %340 = arith.subf %336, %339 : vector<16x8xf32>
    %341 = math.exp %340 : vector<16x8xf32>
    %cst_117 = arith.constant dense<0.000000e+00> : vector<16xf32>
    %342 = vector.multi_reduction <add>, %341, %cst_117 [1] : vector<16x8xf32> to vector<16xf32>
    %343 = vector.shape_cast %342 : vector<16xf32> to vector<16x1xf32>
    %344 = vector.broadcast %343 : vector<16x1xf32> to vector<16x8xf32>
    %345 = arith.divf %341, %344 : vector<16x8xf32>
    %346 = tpu.transpose %345, [1, 0] : vector<16x8xf32> -> vector<8x16xf32>
    %cst_118 = arith.constant dense<0.000000e+00> : vector<8x16xf32>
    %347 = tpu.matmul %320, %346, %cst_118 {dimension_numbers = #tpu.dot_dimension_numbers<[1], [0], [0], [1], [0, 0, 1, 1], [], []>} : vector<8x8xf32>, vector<8x16xf32>, vector<8x16xf32> -> vector<8x16xf32>
    %348 = vector.extract_strided_slice %7 {offsets = [0, 0], sizes = [16, 16], strides = [1, 1]} : vector<32x16xf32> to vector<16x16xf32>
    %cst_119 = arith.constant dense<0.000000e+00> : vector<8x16xf32>
    %349 = tpu.matmul %347, %348, %cst_119 {dimension_numbers = #tpu.dot_dimension_numbers<[1], [0], [0], [1], [0, 0, 1, 1], [], []>} : vector<8x16xf32>, vector<16x16xf32>, vector<8x16xf32> -> vector<8x16xf32>
    %350 = arith.addf %242, %349 : vector<8x16xf32>
    %351 = vector.extract_strided_slice %226 {offsets = [0, 24], sizes = [16, 8], strides = [1, 1]} : vector<16x32xf32> to vector<16x8xf32>
    %352 = vector.extract_strided_slice %229 {offsets = [24, 0], sizes = [8, 16], strides = [1, 1]} : vector<32x16xf32> to vector<8x16xf32>
    %353 = vector.extract_strided_slice %228 {offsets = [0, 24], sizes = [16, 8], strides = [1, 1]} : vector<16x32xf32> to vector<16x8xf32>
    %354 = vector.extract_strided_slice %208 {offsets = [0, 24], sizes = [16, 8], strides = [1, 1]} : vector<16x32xf32> to vector<16x8xf32>
    %355 = vector.extract_strided_slice %236 {offsets = [24, 0], sizes = [8, 8], strides = [1, 1]} : vector<32x8xf32> to vector<8x8xf32>
    %356 = vector.extract_strided_slice %239 {offsets = [24, 0], sizes = [8, 8], strides = [1, 1]} : vector<32x8xf32> to vector<8x8xf32>
    %cst_120 = arith.constant dense<0.000000e+00> : vector<8x8xf32>
    %357 = tpu.matmul %352, %353, %cst_120 {dimension_numbers = #tpu.dot_dimension_numbers<[1], [0], [0], [1], [0, 0, 1, 1], [], []>} : vector<8x16xf32>, vector<16x8xf32>, vector<8x8xf32> -> vector<8x8xf32>
    %cst_121 = arith.constant dense<0xFF800000> : vector<8xf32>
    %358 = vector.multi_reduction <maximumf>, %357, %cst_121 [1] : vector<8x8xf32> to vector<8xf32>
    %359 = vector.shape_cast %358 : vector<8xf32> to vector<8x1xf32>
    %360 = vector.broadcast %359 : vector<8x1xf32> to vector<8x8xf32>
    %361 = arith.subf %357, %360 : vector<8x8xf32>
    %362 = math.exp %361 : vector<8x8xf32>
    %cst_122 = arith.constant dense<0.000000e+00> : vector<8xf32>
    %363 = vector.multi_reduction <add>, %362, %cst_122 [1] : vector<8x8xf32> to vector<8xf32>
    %364 = vector.shape_cast %363 : vector<8xf32> to vector<8x1xf32>
    %365 = vector.broadcast %364 : vector<8x1xf32> to vector<8x8xf32>
    %366 = arith.divf %362, %365 : vector<8x8xf32>
    %367 = tpu.transpose %366, [1, 0] : vector<8x8xf32> -> vector<8x8xf32>
    %cst_123 = arith.constant dense<0.000000e+00> : vector<16x8xf32>
    %368 = tpu.matmul %354, %367, %cst_123 {dimension_numbers = #tpu.dot_dimension_numbers<[1], [0], [0], [1], [0, 0, 1, 1], [], []>} : vector<16x8xf32>, vector<8x8xf32>, vector<16x8xf32> -> vector<16x8xf32>
    %369 = vector.extract_strided_slice %9 {offsets = [24, 0], sizes = [8, 16], strides = [1, 1]} : vector<32x16xf32> to vector<8x16xf32>
    %cst_124 = arith.constant dense<0.000000e+00> : vector<16x16xf32>
    %370 = tpu.matmul %368, %369, %cst_124 {dimension_numbers = #tpu.dot_dimension_numbers<[1], [0], [0], [1], [0, 0, 1, 1], [], []>} : vector<16x8xf32>, vector<8x16xf32>, vector<16x16xf32> -> vector<16x16xf32>
    %371 = arith.addf %335, %370 : vector<16x16xf32>
    %cst_125 = arith.constant dense<0.000000e+00> : vector<16x8xf32>
    %372 = tpu.matmul %351, %355, %cst_125 {dimension_numbers = #tpu.dot_dimension_numbers<[1], [0], [0], [1], [0, 0, 1, 1], [], []>} : vector<16x8xf32>, vector<8x8xf32>, vector<16x8xf32> -> vector<16x8xf32>
    %cst_126 = arith.constant dense<0xFF800000> : vector<16xf32>
    %373 = vector.multi_reduction <maximumf>, %372, %cst_126 [1] : vector<16x8xf32> to vector<16xf32>
    %374 = vector.shape_cast %373 : vector<16xf32> to vector<16x1xf32>
    %375 = vector.broadcast %374 : vector<16x1xf32> to vector<16x8xf32>
    %376 = arith.subf %372, %375 : vector<16x8xf32>
    %377 = math.exp %376 : vector<16x8xf32>
    %cst_127 = arith.constant dense<0.000000e+00> : vector<16xf32>
    %378 = vector.multi_reduction <add>, %377, %cst_127 [1] : vector<16x8xf32> to vector<16xf32>
    %379 = vector.shape_cast %378 : vector<16xf32> to vector<16x1xf32>
    %380 = vector.broadcast %379 : vector<16x1xf32> to vector<16x8xf32>
    %381 = arith.divf %377, %380 : vector<16x8xf32>
    %382 = tpu.transpose %381, [1, 0] : vector<16x8xf32> -> vector<8x16xf32>
    %cst_128 = arith.constant dense<0.000000e+00> : vector<8x16xf32>
    %383 = tpu.matmul %356, %382, %cst_128 {dimension_numbers = #tpu.dot_dimension_numbers<[1], [0], [0], [1], [0, 0, 1, 1], [], []>} : vector<8x8xf32>, vector<8x16xf32>, vector<8x16xf32> -> vector<8x16xf32>
    %384 = vector.extract_strided_slice %7 {offsets = [16, 0], sizes = [16, 16], strides = [1, 1]} : vector<32x16xf32> to vector<16x16xf32>
    %cst_129 = arith.constant dense<0.000000e+00> : vector<8x16xf32>
    %385 = tpu.matmul %383, %384, %cst_129 {dimension_numbers = #tpu.dot_dimension_numbers<[1], [0], [0], [1], [0, 0, 1, 1], [], []>} : vector<8x16xf32>, vector<16x16xf32>, vector<8x16xf32> -> vector<8x16xf32>
    %386 = arith.addf %350, %385 : vector<8x16xf32>
    %387 = vector.extract_strided_slice %13 {offsets = [0, 0], sizes = [16, 8], strides = [1, 1]} : vector<16x16xf32> to vector<16x8xf32>
    %cst_130 = arith.constant dense<0.000000e+00> : vector<16x16xf32>
    %388 = tpu.matmul %387, %314, %cst_130 {dimension_numbers = #tpu.dot_dimension_numbers<[1], [0], [0], [1], [0, 0, 1, 1], [], []>} : vector<16x8xf32>, vector<8x16xf32>, vector<16x16xf32> -> vector<16x16xf32>
    %389 = vector.extract_strided_slice %13 {offsets = [0, 8], sizes = [16, 8], strides = [1, 1]} : vector<16x16xf32> to vector<16x8xf32>
    %cst_131 = arith.constant dense<0.000000e+00> : vector<16x16xf32>
    %390 = tpu.matmul %389, %386, %cst_131 {dimension_numbers = #tpu.dot_dimension_numbers<[1], [0], [0], [1], [0, 0, 1, 1], [], []>} : vector<16x8xf32>, vector<8x16xf32>, vector<16x16xf32> -> vector<16x16xf32>
    %391 = arith.addf %388, %390 : vector<16x16xf32>
    %392 = vector.broadcast %8 : vector<1x16xf32> to vector<16x16xf32>
    %393 = arith.addf %391, %392 : vector<16x16xf32>
    %c16_132 = arith.constant 16 : index
    %c0_133 = arith.constant 0 : index
    %394 = vector.load %arg13[%c16_132, %c0_133] : memref<32x32xf32, #tpu.memory_space<vmem>>, vector<16x16xf32>
    tpu.vector_store %arg13[%c16_132, %c0_133], %393 {strides = array<i32>} : memref<32x32xf32, #tpu.memory_space<vmem>>, vector<16x16xf32>,
    %395 = vector.broadcast %10 : vector<1x16xf32> to vector<16x16xf32>
    %396 = arith.addf %371, %395 : vector<16x16xf32>
    %c16_134 = arith.constant 16 : index
    %c16_135 = arith.constant 16 : index
    %397 = vector.load %arg13[%c16_134, %c16_135] : memref<32x32xf32, #tpu.memory_space<vmem>>, vector<16x16xf32>
    tpu.vector_store %arg13[%c16_134, %c16_135], %396 {strides = array<i32>} : memref<32x32xf32, #tpu.memory_space<vmem>>, vector<16x16xf32>,
    return
  }
}

</mosaic_0001>

<bundles_post_ra>
// kernel: _epa_forward_impl.1
= control target key start
LH: loop header
LB: loop body
LE: loop exit
PB: predicated region body
PF: predicated region fallthrough
CT: control target
= control target key end

     0   :  { %s4112_s0 = inlined_call_operand.vmem [shape: f32[32,32], index: 0, kind: input, shape index: {}]   ;;  %s4113_s1 = inlined_call_operand.vmem [shape: f32[32,128], index: 1, kind: input, shape index: {}]   ;;  %s4114_s2 = inlined_call_operand.vmem [shape: f32[16,8], index: 2, kind: input, shape index: {}]   ;;  %s4115_s3 = inlined_call_operand.vmem [shape: f32[1,8], index: 3, kind: input, shape index: {}]   ;;  %s4116_s4 = inlined_call_operand.vmem [shape: f32[16,8], index: 4, kind: input, shape index: {}]   ;;  %s4117_s5 = inlined_call_operand.vmem [shape: f32[1,8], index: 5, kind: input, shape index: {}]   ;;  %s4118_s6 = inlined_call_operand.vmem [shape: f32[32,16], index: 6, kind: input, shape index: {}]   ;;  %s4119_s7 = inlined_call_operand.vmem [shape: f32[1,16], index: 7, kind: input, shape index: {}]   ;;  %s4120_s8 = inlined_call_operand.vmem [shape: f32[32,16], index: 8, kind: input, shape index: {}]   ;;  %s4121_s9 = inlined_call_operand.vmem [shape: f32[1,16], index: 9, kind: input, shape index: {}]   ;;  %s4122_s10 = inlined_call_operand.vmem [shape: f32[1,32], index: 10, kind: input, shape index: {}]   ;;  %s4123_s11 = inlined_call_operand.vmem [shape: f32[32,1], index: 11, kind: input, shape index: {}]   ;;  %s4124_s12 = inlined_call_operand.vmem [shape: f32[16,16], index: 12, kind: input, shape index: {}]   ;;  %s4125_s13 = inlined_call_operand.hbm [shape: f32[32,32], index: 13, kind: output, shape index: {}]  }
   0x1   :  { %v52_v0 = vld [vmem:[%s4113_s1 + $0x18] sm:$0xff]  ;;  %v51_v1 = vld [vmem:[%s4113_s1 + $0x10] sm:$0xff]  ;;  %v50_v2 = vld [vmem:[%s4113_s1 + $0x8] sm:$0xff] }
   0x2   :  { %78 = vmatpush.msra.mxu0 %v52_v0 }
   0x4   :  { %79 = vmatpush.msra.mxu0 %v51_v1 }
   0x5   :  { %18 = vsyncpa [#allocation3], 0  ;;  %v49_v3 = vld [vmem:[%s4113_s1] sm:$0xff]  ;;  %vm53_vm0 = vcmask 261120   ;;  %v46_v5 = vld [vmem:[%s4112_s0 + $0x8] sm:$0xff]  ;;  %s3204_s20 = smov 96  }
   0x6   :  { %80 = vmatpush.msra.mxu0 %v50_v2  ;;  %v45_v4 = vld [vmem:[%s4112_s0] sm:$0xff]  ;;  %vm157_vm1 = vcmask 523520   ;;  %s3205_s22 = smov 32   ;;  %s3206_s23 = smov 64   ;;  %vm321_vm14 = vcmask 130048   ;;  %vm462_vm15 = vcmask 64512  }
   0x7   :  { %v111_v42 = vld [vmem:[%s4122_s10] sm:$0x1]  ;;  %s3208_s24 = smov 120   ;;  %s3209_s27 = smov 112  }
   0x8   :  { %81 = vmatpush.msra.mxu0 %v49_v3  ;;  %s3211_s18 = smov 88   ;;  %s3212_s19 = smov 80  }
   0x9   :  { %2864 = vmatmul.msk.f32.vlgmr.msra.gmra.mxu0 %vm53_vm0, %v45_v4  ;;  %s3213_s1 = smov 72   ;;  %s3215_s29 = smov 40  }
   0xa   :  { %s3216_s30 = smov 48  }
  0x11   :  { %2865 = vmatmul.msk.f32.gmra.mxu0 %vm53_vm0, %v46_v5 }
  0x86   :  { %v3311_v6 = vpop.f32.mrf.mxu0 }
  0x87   :  { %242 = vrot.lane.b32.xlu2 %v3311_v6, %s3204_s20  ;;  %v118_v7 = vmul.f32 %v3311_v6, %v3311_v6 }
  0x89   :  { %v120_v10 = vsel %vm53_vm0, %v118_v7, 0.0  ;;  %v158_v12 = vsel %vm157_vm1, %v118_v7, 0.0 }
  0x8e   :  { %v3317_v8 = vpop.f32.mrf.mxu0 }
  0x8f   :  { %v119_v9 = vmul.f32 %v3317_v8, %v3317_v8  ;;  %244 = vrot.lane.b32.xlu2 %v3317_v8, %s3204_s20 }
  0x91   :  { %v121_v11 = vsel %vm53_vm0, %v119_v9, 0.0  ;;  %v159_v13 = vsel %vm157_vm1, %v119_v9, 0.0 }
  0x92   :  { %v122_v14 = vadd.f32 %v121_v11, %v120_v10  ;;  %v160_v15 = vadd.f32 %v159_v13, %v158_v12 }
  0x94   :  { %v161_v16 = vrot.slane %v160_v15, 4  ;;  %v123_v49 = vrot.slane %v122_v14, 4 }
  0x96   :  { %v162_v17 = vadd.f32 %v161_v16, %v160_v15  ;;  %v124_v50 = vadd.f32 %v123_v49, %v122_v14 }
  0x98   :  { %v163_v18 = vrot.slane %v162_v17, 2  ;;  %v125_v51 = vrot.slane %v124_v50, 2 }
  0x9a   :  { %v164_v19 = vadd.f32 %v163_v18, %v162_v17  ;;  %v126_v52 = vadd.f32 %v125_v51, %v124_v50 }
  0x9c   :  { %v165_v20 = vrot.slane %v164_v19, 1  ;;  %v127_v53 = vrot.slane %v126_v52, 1 }
  0x9e   :  { %v166_v21 = vadd.f32 %v165_v20, %v164_v19  ;;  %v128_v54 = vadd.f32 %v127_v53, %v126_v52 }
  0xa0   :  { %3053 = vrsqrt.f32 %v166_v21  ;;  %vm174_vm2 = vcmp.eq.f32.partialorder %v166_v21, inf  ;;  %v177_v29 = vand.u32 2147483648, %v166_v21  ;;  %vm176_vm3 = vcmp.eq.f32.partialorder %v166_v21, 0.0 }
  0xa1   :  { %vm136_vm8 = vcmp.eq.f32.partialorder %v128_v54, inf  ;;  %v139_v3 = vand.u32 2147483648, %v128_v54  ;;  %vm138_vm9 = vcmp.eq.f32.partialorder %v128_v54, 0.0 }
  0xa6   :  { %v3054_v22 = vpop.eup %3053 }
  0xa7   :  { %v168_v23 = vmul.f32 %v3054_v22, %v166_v21 }
  0xa9   :  { %v169_v24 = vmul.f32 %v3054_v22, %v168_v23 }
  0xab   :  { %v170_v25 = vmul.f32 0.5, %v169_v24 }
  0xad   :  { %v171_v26 = vsub.f32 1.5, %v170_v25 }
  0xaf   :  { %v172_v27 = vmul.f32 %v3054_v22, %v171_v26 }
  0xb1   :  { %v173_v28 = vmul.f32 %v172_v27, %v166_v21  ;;  %v3355_v27 = vld [vmem:[%s4114_s2 + $0x8] sm:$0xff] }
  0xb2   :  { %348 = vmatpush.msra.mxu1 %v3355_v27 }
  0xb3   :  { %v175_v30 = vsel %vm174_vm2, %v166_v21, %v173_v28  ;;  %v3360_v28 = vld [vmem:[%s4114_s2] sm:$0xff]  ;;  %s3210_s2 = smov 104  }
  0xb4   :  { %v178_v31 = vsel %vm176_vm3, %v177_v29, %v175_v30  ;;  %349 = vmatpush.msra.mxu1 %v3360_v28 }
  0xb5   :  { %v179_v32 = vmax.f32 %v178_v31, 1e-12 }
  0xb7   :  { %181 = vrot.lane.b32.xlu0 %v179_v32, %s3204_s20 }
  0xe1   :  { %v243_v47 = vpop.permute.xlu2 %242 }
  0xe9   :  { %v245_v48 = vpop.permute.xlu2 %244 }
 0x129   :  { %v182_v33 = vpop.permute.xlu0 %181 }
 0x12a   :  { %3055 = vrcp.f32 %v182_v33  ;;  %v195_v37 = vand.u32 2147483648, %v182_v33  ;;  %v193_v39 = vand.u32 2147483647, %v182_v33  ;;  %vm189_vm5 = vweird.f32 %v182_v33 }
 0x12b   :  { %3057 = vrsqrt.f32 %v128_v54 }
 0x12c   :  { %v196_v41 = vor.u32 1.1754944e-38, %v195_v37  ;;  %vm194_vm7 = vcmp.eq.f32.partialorder %v193_v39, 8.507059e+37 }
 0x130   :  { %v3056_v34 = vpop.eup %3055 }
 0x131   :  { %v185_v35 = vmul.f32 %v3056_v34, %v182_v33  ;;  %vm190_vm4 = vweird.f32 %v3056_v34  ;;  %v3058_v55 = vpop.eup %3057 }
 0x132   :  { %vm191_vm6 = vmor %vm189_vm5, %vm190_vm4  ;;  %v130_v56 = vmul.f32 %v3058_v55, %v128_v54 }
 0x133   :  { %v186_v36 = vsub.f32 1.0, %v185_v35  ;;  %v3207_v35 = vmov 0  }
 0x134   :  { %v131_v57 = vmul.f32 %v3058_v55, %v130_v56 }
 0x135   :  { %v187_v38 = vmul.f32 %v3056_v34, %v186_v36 }
 0x136   :  { %v132_v58 = vmul.f32 0.5, %v131_v57 }
 0x137   :  { %v188_v40 = vadd.f32 %v3056_v34, %v187_v38 }
 0x138   :  { %v133_v62 = vsub.f32 1.5, %v132_v58 }
 0x139   :  { %v192_v43 = vsel %vm191_vm6, %v3056_v34, %v188_v40  ;;  %v112_v34 = vld [vmem:[%s4123_s11] sm:$0xff] }
 0x13a   :  { %v197_v44 = vsel %vm194_vm7, %v196_v41, %v192_v43  ;;  %v134_v0 = vmul.f32 %v3058_v55, %v133_v62 }
 0x13b   :  { %v198_v45 = vmul.f32 %v197_v44, %v111_v42 }
 0x13c   :  { %v135_v1 = vmul.f32 %v134_v0, %v128_v54  ;;  %v99_v0 = vld [vmem:[%s4116_s4 + $0x8] sm:$0xff] }
 0x13d   :  { %v202_v46 = vperm.slane %v198_v45, 0  ;;  %416 = vmatpush.msra.mxu2 %v99_v0 }
 0x13e   :  { %v137_v2 = vsel %vm136_vm8, %v128_v54, %v135_v1  ;;  %v98_v1 = vld [vmem:[%s4116_s4] sm:$0xff] }
 0x13f   :  { %203 = vrot.lane.b32.xlu0 %v202_v46, %s3205_s22  ;;  %v140_v4 = vsel %vm138_vm9, %v139_v3, %v137_v2  ;;  %417 = vmatpush.msra.mxu2 %v98_v1  ;;  %v106_v3 = vld [vmem:[%s4120_s8] sm:$0xff] }
 0x140   :  { %v141_v5 = vmax.f32 %v140_v4, 1e-12 }
 0x141   :  { %764 = vmatpush.msrb.mxu2 %v106_v3 }
 0x142   :  { %3059 = vrcp.f32 %v141_v5  ;;  %v153_v13 = vand.u32 2147483648, %v141_v5  ;;  %vm147_vm11 = vweird.f32 %v141_v5  ;;  %v151_v14 = vand.u32 2147483647, %v141_v5 }
 0x144   :  { %v154_v16 = vor.u32 1.1754944e-38, %v153_v13  ;;  %vm152_vm13 = vcmp.eq.f32.partialorder %v151_v14, 8.507059e+37 }
 0x148   :  { %v3060_v7 = vpop.eup %3059 }
 0x149   :  { %v143_v9 = vmul.f32 %v3060_v7, %v141_v5  ;;  %vm148_vm10 = vweird.f32 %v3060_v7 }
 0x14a   :  { %vm149_vm12 = vmor %vm147_vm11, %vm148_vm10 }
 0x14b   :  { %v144_v10 = vsub.f32 1.0, %v143_v9 }
 0x14d   :  { %v145_v11 = vmul.f32 %v3060_v7, %v144_v10 }
 0x14f   :  { %v146_v12 = vadd.f32 %v3060_v7, %v145_v11 }
 0x151   :  { %v150_v15 = vsel %vm149_vm12, %v3060_v7, %v146_v12 }
 0x152   :  { %v155_v17 = vsel %vm152_vm13, %v154_v16, %v150_v15  ;;  %v113_v15 = vld [vmem:[%s4123_s11 + $0x8] sm:$0xff] }
 0x153   :  { %v3341_v18 = vmul.f32 %v155_v17, %v3311_v6  ;;  %v3345_v19 = vmul.f32 %v155_v17, %v3317_v8 }
 0x161   :  { %248 = vxpose.xlu0.b32.start [1/2] (short) (narrow) %v243_v47, 32  ;;  %v3386_v47 = vld [vmem:[%s4115_s3] ss:$0 sm:$0xff] }
 0x169   :  { %249 = vxpose.xlu0.b32.end [2/2] (short) (narrow) %v245_v48, 32 }
 0x1b1   :  { %v204_v59 = vpop.permute.xlu0 %203 }
 0x1b2   :  { %v206_v60 = vmul.f32 %v204_v59, %v3311_v6  ;;  %v207_v61 = vmul.f32 %v204_v59, %v3317_v8 }
 0x1b4   :  { %v3334_v63 = vpack.i.bf16 %v206_v60, %v207_v61 }
 0x1b6   :  { %3007 = vrot.lane.b32.xlu1 %v3334_v63, %s3204_s20 }
 0x1e7   :  { %487 = vrot.lane.b32.xlu0 %v3311_v6, %s3206_s23 }
 0x1eb   :  { %208 = vxpose.xlu1.b32.start [1/2] (short) (narrow) %v3341_v18, 32 }
 0x1f3   :  { %209 = vxpose.xlu1.b32.end [2/2] (short) (narrow) %v3345_v19, 32 }
 0x205   :  { %v264_v26 = vpop.trf.xlu0 }
 0x206   :  { %2868 = vmatmul.msk.f32.vlgmr.msra.gmra.mxu1 %vm321_vm14, %v264_v26 }
 0x20d   :  { %v265_v29 = vpop.trf.xlu0 }
 0x20e   :  { %2869 = vmatmul.msk.f32.gmra.mxu1 %vm321_vm14, %v265_v29 }
 0x215   :  { %v266_v30 = vpop.trf.xlu0 }
 0x216   :  { %2870 = vmatmul.msk.f32.gmra.mxu1 %vm321_vm14, %v266_v30  ;;  %v114_v30 = vld [vmem:[%s4123_s11 + $0x10] sm:$0xff] }
 0x21d   :  { %v267_v36 = vpop.trf.xlu0 }
 0x21e   :  { %2871 = vmatmul.msk.f32.gmra.mxu1 %vm321_vm14, %v267_v36 }
 0x228   :  { %v3008_v20 = vpop.permute.xlu1 %3007 }
 0x229   :  { %v3009_v21 = vunpack.i.l.bf16 %v3008_v20  ;;  %v3010_v22 = vunpack.i.h.bf16 %v3008_v20 }
 0x22b   :  { %456 = vmatpush.msra.mxu3 %v3009_v21 }
 0x22d   :  { %457 = vmatpush.msra.mxu3 %v3010_v22 }
 0x246   :  { %3011 = vset.pattern.permute.xlu1 %v3207_v35 }
 0x259   :  { %v488_v62 = vpop.permute.xlu0 %487 }
 0x25d   :  { %365 = vperm.xlu1 %3011, %v112_v34  }
 0x283   :  { %v351_v49 = vpop.f32.mrf.mxu1 }
 0x284   :  { %v352_v53 = vadd.f32 %v3386_v47, %v351_v49 }
 0x28f   :  { %v224_v23 = vpop.trf.xlu1 }
 0x290   :  { %2876 = vmatmul.msk.f32.vlgmr.msra.gmra.mxu3 %vm321_vm14, %v224_v23 }
 0x297   :  { %v3377_v39 = vpop.trf.xlu1 }
 0x29f   :  { %v3379_v41 = vpop.trf.xlu1 }
 0x2a7   :  { %v3381_v43 = vpop.trf.xlu1 }
 0x2cf   :  { %v3389_v55 = vpop.permute.xlu1 %365 }
 0x2d0   :  { %v383_v60 = vmul.f32 %v3389_v55, %v352_v53 }
 0x313   :  { %v459_v24 = vpop.f32.mrf.mxu3 }
 0x314   :  { %v463_v25 = vsel %vm462_vm15, %v459_v24, -inf }
 0x315   :  { %464 = vmax.xlane.f32.xlu2 %v463_v25 }
 0x32d   :  { %489 = vrot.lane.b32.xlu2 %v3317_v8, %s3206_s23 }
 0x388   :  { %v465_v31 = vpop.xlane.xlu2 %464 }
 0x389   :  { %v466_v32 = vsub.f32 %v459_v24, %v465_v31  ;;  %v115_v31 = vld [vmem:[%s4123_s11 + $0x18] sm:$0xff]  ;;  %s3217_s11 = smov 16  }
 0x38b   :  { %v467_v33 = vmul.f32 1.442695, %v466_v32  ;;  %v3444_v32 = vld [vmem:[%s4118_s6 + $0x8] sm:$0xff] }
 0x38d   :  { %3061 = vpow2.f32 %v467_v33  ;;  %v3450_v33 = vld [vmem:[%s4118_s6] sm:$0xff] }
 0x390   :  { %v490_v40 = vpop.permute.xlu2 %489 }
 0x393   :  { %v3062_v37 = vpop.eup %3061 }
 0x394   :  { %v469_v38 = vsel %vm462_vm15, %v3062_v37, 0.0 }
 0x395   :  { %470 = vadd.xlane.f32.xlu2 %v469_v38 }
 0x3ad   :  { %280 = vrot.lane.b32.xlu2 %v3311_v6, %s3205_s22 }
 0x3b5   :  { %282 = vrot.lane.b32.xlu2 %v3317_v8, %s3205_s22 }
 0x408   :  { %v471_v42 = vpop.xlane.xlu2 %470 }
 0x409   :  { %3063 = vrcp.f32 %v471_v42  ;;  %v483_v50 = vand.u32 2147483648, %v471_v42  ;;  %v481_v52 = vand.u32 2147483647, %v471_v42  ;;  %vm477_vm3 = vweird.f32 %v471_v42 }
 0x40b   :  { %v484_v56 = vor.u32 1.1754944e-38, %v483_v50  ;;  %vm482_vm5 = vcmp.eq.f32.partialorder %v481_v52, 8.507059e+37 }
 0x40f   :  { %v3064_v44 = vpop.eup %3063 }
 0x410   :  { %v473_v45 = vmul.f32 %v3064_v44, %v471_v42  ;;  %v281_v46 = vpop.permute.xlu2 %280  ;;  %vm478_vm2 = vweird.f32 %v3064_v44 }
 0x411   :  { %286 = vxpose.xlu2.b32.start [1/2] (short) (narrow) %v281_v46, 32  ;;  %vm479_vm4 = vmor %vm477_vm3, %vm478_vm2 }
 0x412   :  { %v474_v48 = vsub.f32 1.0, %v473_v45 }
 0x414   :  { %v475_v51 = vmul.f32 %v3064_v44, %v474_v48 }
 0x416   :  { %v476_v54 = vadd.f32 %v3064_v44, %v475_v51 }
 0x418   :  { %v283_v57 = vpop.permute.xlu2 %282  ;;  %v480_v58 = vsel %vm479_vm4, %v3064_v44, %v476_v54 }
 0x419   :  { %287 = vxpose.xlu2.b32.end [2/2] (short) (narrow) %v283_v57, 32  ;;  %v485_v59 = vsel %vm482_vm5, %v484_v56, %v480_v58 }
 0x41a   :  { %v486_v61 = vmul.f32 %v3062_v37, %v485_v59 }
 0x41c   :  { %2877 = vmatpush.xpose.msk.msrb.mxu3 %vm462_vm15, %v486_v61 }
 0x41f   :  { %2878 = vmatmul.msk.f32.vlgmr.msrb.gmra.mxu3 %vm462_vm15, %v488_v62 }
 0x420   :  { %542 = vmatpush.msra.mxu3 %v383_v60 }
 0x427   :  { %2879 = vmatmul.msk.f32.gmra.mxu3 %vm462_vm15, %v490_v40 }
 0x42f   :  { %2880 = vmatmul.msk.f32.vlgmr.msra.gmra.mxu3 %vm462_vm15, %v3341_v18 }
 0x437   :  { %2881 = vmatmul.msk.f32.gmra.mxu3 %vm462_vm15, %v3345_v19 }
 0x47b   :  { %3012 = vset.pattern.permute.xlu2 %v3207_v35 }
 0x4a2   :  { %v515_v2 = vpop.f32.mrf.mxu3 }
 0x4aa   :  { %v518_v4 = vpop.f32.mrf.mxu3  ;;  %v302_v5 = vpop.trf.xlu2 }
 0x4ab   :  { %2872 = vmatmul.msk.f32.vlgmr.msra.gmra.mxu2 %vm321_vm14, %v302_v5 }
 0x4ac   :  { %920 = vmatpush.msra.mxu2 %v3444_v32 }
 0x4ae   :  { %921 = vmatpush.msra.mxu2 %v3450_v33 }
 0x4b2   :  { %v303_v7 = vpop.trf.xlu2  ;;  %v544_v9 = vpop.f32.mrf.mxu3 }
 0x4b3   :  { %2873 = vmatmul.msk.f32.gmra.mxu2 %vm321_vm14, %v303_v7  ;;  %v550_v10 = vsel %vm462_vm15, %v544_v9, -inf }
 0x4b4   :  { %551 = vmax.xlane.f32.xlu1 %v550_v10 }
 0x4ba   :  { %v304_v11 = vpop.trf.xlu2  ;;  %v547_v12 = vpop.f32.mrf.mxu3 }
 0x4bb   :  { %2874 = vmatmul.msk.f32.gmra.mxu2 %vm321_vm14, %v304_v11  ;;  %v553_v13 = vsel %vm462_vm15, %v547_v12, -inf }
 0x4bc   :  { %554 = vmax.xlane.f32.xlu2 %v553_v13 }
 0x4c2   :  { %v305_v14 = vpop.trf.xlu2 }
 0x4c3   :  { %2875 = vmatmul.msk.f32.gmra.mxu2 %vm321_vm14, %v305_v14 }
 0x4cb   :  { %2891 = vmatmul.msk.f32.vlgmr.msrb.gmra.mxu2 %vm462_vm15, %v515_v2 }
 0x4d3   :  { %2892 = vmatmul.msk.f32.gmra.mxu2 %vm462_vm15, %v518_v4 }
 0x4d4   :  { %370 = vperm.xlu2 %3012, %v113_v15  }
 0x4dc   :  { %772 = vrot.lane.b32.xlu2 %v3341_v18, %s3208_s24 }
 0x527   :  { %v552_v16 = vpop.xlane.xlu1 %551 }
 0x528   :  { %v556_v17 = vsub.f32 %v544_v9, %v552_v16  ;;  %v3470_v9 = vld [vmem:[%s4117_s5] ss:$0 sm:$0xff] }
 0x52a   :  { %v558_v20 = vmul.f32 1.442695, %v556_v17 }
 0x52c   :  { %3065 = vpow2.f32 %v558_v20 }
 0x52f   :  { %v555_v21 = vpop.xlane.xlu2 %554 }
 0x530   :  { %v557_v22 = vsub.f32 %v547_v12, %v555_v21  ;;  %v419_v12 = vpop.f32.mrf.mxu2 }
 0x531   :  { %v420_v13 = vadd.f32 %v3470_v9, %v419_v12 }
 0x532   :  { %v3422_v23 = vpop.eup %3065  ;;  %v560_v24 = vmul.f32 1.442695, %v557_v22 }
 0x533   :  { %v562_v25 = vsel %vm462_vm15, %v3422_v23, 0.0 }
 0x534   :  { %3067 = vpow2.f32 %v560_v24  ;;  %563 = vadd.xlane.f32.xlu1 %v562_v25 }
 0x537   :  { %v3463_v5 = vpop.permute.xlu2 %370 }
 0x53a   :  { %v3068_v26 = vpop.eup %3067 }
 0x53b   :  { %v565_v29 = vsel %vm462_vm15, %v3068_v26, 0.0 }
 0x53c   :  { %566 = vadd.xlane.f32.xlu0 %v565_v29 }
 0x53f   :  { %v773_v14 = vpop.permute.xlu2 %772 }
 0x54d   :  { %375 = vperm.xlu1 %3011, %v114_v30  }
 0x550   :  { %1044 = vrot.lane.b32.xlu0 %v3341_v18, %s3209_s27 }
 0x555   :  { %380 = vperm.xlu1 %3011, %v115_v31  }
 0x558   :  { %1046 = vrot.lane.b32.xlu0 %v3345_v19, %s3209_s27 }
 0x55d   :  { %1272 = vrot.lane.b32.xlu1 %v3345_v19, %s3210_s2 }
 0x560   :  { %1270 = vrot.lane.b32.xlu0 %v3341_v18, %s3210_s2  ;;  %v354_v18 = vpop.f32.mrf.mxu1 }
 0x561   :  { %v355_v7 = vadd.f32 %v3386_v47, %v354_v18 }
 0x563   :  { %v384_v11 = vmul.f32 %v3463_v5, %v355_v7 }
 0x568   :  { %v357_v49 = vpop.f32.mrf.mxu1 }
 0x569   :  { %v358_v58 = vadd.f32 %v3386_v47, %v357_v49 }
 0x570   :  { %v360_v15 = vpop.f32.mrf.mxu1 }
 0x571   :  { %v361_v17 = vadd.f32 %v3386_v47, %v360_v15 }
 0x5a7   :  { %v564_v34 = vpop.xlane.xlu1 %563 }
 0x5a8   :  { %3069 = vrcp.f32 %v564_v34  ;;  %vm573_vm8 = vweird.f32 %v564_v34  ;;  %v579_v53 = vand.u32 2147483648, %v564_v34  ;;  %v577_v56 = vand.u32 2147483647, %v564_v34 }
 0x5aa   :  { %v580_v0 = vor.u32 1.1754944e-38, %v579_v53  ;;  %vm578_vm13 = vcmp.eq.f32.partialorder %v577_v56, 8.507059e+37 }
 0x5ae   :  { %v3070_v36 = vpop.eup %3069 }
 0x5af   :  { %v569_v37 = vmul.f32 %v3070_v36, %v564_v34  ;;  %v567_v38 = vpop.xlane.xlu0 %566  ;;  %vm574_vm6 = vweird.f32 %v3070_v36 }
 0x5b0   :  { %3071 = vrcp.f32 %v567_v38  ;;  %v594_v48 = vand.u32 2147483648, %v567_v38  ;;  %v592_v52 = vand.u32 2147483647, %v567_v38  ;;  %vm3453_vm9 = vmor %vm573_vm8, %vm574_vm6  ;;  %vm588_vm10 = vweird.f32 %v567_v38 }
 0x5b1   :  { %v570_v40 = vsub.f32 1.0, %v569_v37 }
 0x5b2   :  { %v595_v59 = vor.u32 1.1754944e-38, %v594_v48  ;;  %vm593_vm12 = vcmp.eq.f32.partialorder %v592_v52, 8.507059e+37  ;;  %v47_v48 = vld [vmem:[%s4112_s0 + $0x10] sm:$0xff] }
 0x5b3   :  { %v571_v44 = vmul.f32 %v3070_v36, %v570_v40  ;;  %2866 = vmatmul.msk.f32.gmra.mxu0 %vm53_vm0, %v47_v48 }
 0x5b5   :  { %v572_v50 = vadd.f32 %v3070_v36, %v571_v44 }
 0x5b6   :  { %v3072_v42 = vpop.eup %3071 }
 0x5b7   :  { %v584_v45 = vmul.f32 %v3072_v42, %v567_v38  ;;  %vm589_vm7 = vweird.f32 %v3072_v42  ;;  %v576_v62 = vsel %vm3453_vm9, %v3070_v36, %v572_v50 }
 0x5b8   :  { %vm590_vm11 = vmor %vm588_vm10, %vm589_vm7  ;;  %v581_v4 = vsel %vm578_vm13, %v580_v0, %v576_v62 }
 0x5b9   :  { %v585_v46 = vsub.f32 1.0, %v584_v45  ;;  %v582_v10 = vmul.f32 %v3422_v23, %v581_v4 }
 0x5bb   :  { %v586_v51 = vmul.f32 %v3072_v42, %v585_v46 }
 0x5bd   :  { %v587_v57 = vadd.f32 %v3072_v42, %v586_v51 }
 0x5bf   :  { %v591_v60 = vsel %vm590_vm11, %v3072_v42, %v587_v57  ;;  %v3458_v61 = vpop.permute.xlu1 %375 }
 0x5c0   :  { %v596_v1 = vsel %vm593_vm12, %v595_v59, %v591_v60  ;;  %v385_v2 = vmul.f32 %v3458_v61, %v358_v58 }
 0x5c1   :  { %v597_v3 = vmul.f32 %v3068_v26, %v596_v1  ;;  %v3487_v26 = vpop.f32.mrf.mxu2 }
 0x5c2   :  { %1067 = vmatpush.msrb.mxu2 %v385_v2  ;;  %v1045_v22 = vpop.permute.xlu0 %1044 }
 0x5c3   :  { %2882 = vmatpush.xpose.msk.msrb.mxu3 %vm462_vm15, %v597_v3 }
 0x5c7   :  { %2883 = vmatpush.xpose.msk.msrb.mxu3 %vm462_vm15, %v582_v10  ;;  %v3478_v16 = vpop.permute.xlu1 %380 }
 0x5c8   :  { %v386_v20 = vmul.f32 %v3478_v16, %v361_v17 }
 0x5c9   :  { %v3489_v47 = vpop.f32.mrf.mxu2 }
 0x5ca   :  { %2884 = vmatmul.msk.f32.vlgmr.msrb.gmra.mxu3 %vm462_vm15, %v420_v13  ;;  %v1047_v23 = vpop.permute.xlu0 %1046 }
 0x5cb   :  { %795 = vmatpush.msra.mxu3 %v384_v11 }
 0x5cf   :  { %v1273_v25 = vpop.permute.xlu1 %1272 }
 0x5d1   :  { %v3491_v29 = vpop.f32.mrf.mxu2 }
 0x5d2   :  { %2893 = vmatmul.msk.f32.vlgmr.msra.gmra.mxu3 %vm462_vm15, %v773_v14  ;;  %v1271_v24 = vpop.permute.xlu0 %1270 }
 0x5d9   :  { %v3493_v30 = vpop.f32.mrf.mxu2 }
 0x5e1   :  { %v3495_v31 = vpop.f32.mrf.mxu2 }
 0x630   :  { %v3540_v14 = vpop.f32.mrf.mxu0 }
 0x64d   :  { %v624_v21 = vpop.f32.mrf.mxu3 }
 0x64e   :  { %2899 = vmatmul.msk.f32.vlgmr.msra.gmra.mxu2 %vm321_vm14, %v624_v21 }
 0x64f   :  { %1293 = vmatpush.msra.mxu2 %v386_v20 }
 0x655   :  { %v3510_v45 = vpop.f32.mrf.mxu3 }
 0x656   :  { %2906 = vmatmul.msk.f32.vlgmr.msrb.gmra.mxu2 %vm462_vm15, %v1045_v22  ;;  %v803_v46 = vsel %vm462_vm15, %v3510_v45, -inf }
 0x65e   :  { %2907 = vmatmul.msk.f32.gmra.mxu2 %vm462_vm15, %v1047_v23 }
 0x666   :  { %2917 = vmatmul.msk.f32.vlgmr.msra.gmra.mxu2 %vm462_vm15, %v1271_v24 }
 0x66e   :  { %2918 = vmatmul.msk.f32.gmra.mxu2 %vm462_vm15, %v1273_v25 }
 0x6d1   :  { %v3497_v34 = vpop.f32.mrf.mxu2 }
 0x6d9   :  { %v1069_v36 = vpop.f32.mrf.mxu2 }
 0x6da   :  { %v1075_v37 = vsel %vm462_vm15, %v1069_v36, -inf }
 0x6db   :  { %1076 = vmax.xlane.f32.xlu1 %v1075_v37 }
 0x6e1   :  { %v1072_v38 = vpop.f32.mrf.mxu2 }
 0x6e2   :  { %v1078_v18 = vsel %vm462_vm15, %v1072_v38, -inf }
 0x6e3   :  { %1079 = vmax.xlane.f32.xlu0 %v1078_v18 }
 0x6e9   :  { %v3507_v40 = vpop.f32.mrf.mxu2 }
 0x6ea   :  { %v1301_v11 = vsel %vm462_vm15, %v3507_v40, -inf }
 0x6f1   :  { %v1298_v42 = vpop.f32.mrf.mxu2 }
 0x6f2   :  { %v1304_v44 = vsel %vm462_vm15, %v1298_v42, -inf }
 0x6f7   :  { %3014 = vrot.lane.b32.xlu0 %v3334_v63, %s3211_s18 }
 0x6ff   :  { %3019 = vrot.lane.b32.xlu0 %v3334_v63, %s3212_s19 }
 0x707   :  { %3024 = vrot.lane.b32.xlu0 %v3334_v63, %s3213_s1  ;;  %v48_v63 = vld [vmem:[%s4112_s0 + $0x18] sm:$0xff]  ;;  %s3214_s0 = smov 56  }
 0x708   :  { %2867 = vmatmul.msk.f32.gmra.mxu0 %vm53_vm0, %v48_v63 }
 0x731   :  { %1305 = vmax.xlane.f32.xlu0 %v1304_v44 }
 0x739   :  { %804 = vmax.xlane.f32.xlu0 %v803_v46 }
 0x74e   :  { %v1077_v49 = vpop.xlane.xlu1 %1076 }
 0x74f   :  { %v1081_v50 = vsub.f32 %v1069_v36, %v1077_v49 }
 0x751   :  { %v1083_v51 = vmul.f32 1.442695, %v1081_v50 }
 0x753   :  { %3073 = vpow2.f32 %v1083_v51 }
 0x756   :  { %v1080_v52 = vpop.xlane.xlu0 %1079 }
 0x757   :  { %v1082_v53 = vsub.f32 %v1072_v38, %v1080_v52 }
 0x759   :  { %v3522_v54 = vpop.eup %3073  ;;  %v1085_v56 = vmul.f32 1.442695, %v1082_v53 }
 0x75a   :  { %v1087_v57 = vsel %vm462_vm15, %v3522_v54, 0.0 }
 0x75b   :  { %3075 = vpow2.f32 %v1085_v56  ;;  %1088 = vadd.xlane.f32.xlu2 %v1087_v57 }
 0x761   :  { %v3526_v58 = vpop.eup %3075 }
 0x762   :  { %v1090_v59 = vsel %vm462_vm15, %v3526_v58, 0.0 }
 0x763   :  { %1091 = vadd.xlane.f32.xlu1 %v1090_v59 }
 0x769   :  { %v3015_v60 = vpop.permute.xlu0 %3014 }
 0x76a   :  { %v3016_v62 = vunpack.i.l.bf16 %v3015_v60  ;;  %v3017_v0 = vunpack.i.h.bf16 %v3015_v60 }
 0x76c   :  { %650 = vmatpush.msrb.mxu0 %v3016_v62 }
 0x76e   :  { %651 = vmatpush.msrb.mxu0 %v3017_v0 }
 0x76f   :  { %2885 = vmatmul.msk.f32.vlgmr.msrb.gmra.mxu0 %vm321_vm14, %v3377_v39 }
 0x771   :  { %v3020_v1 = vpop.permute.xlu0 %3019 }
 0x772   :  { %v3021_v2 = vunpack.i.l.bf16 %v3020_v1  ;;  %v3022_v3 = vunpack.i.h.bf16 %v3020_v1 }
 0x774   :  { %949 = vmatpush.msrb.mxu3 %v3021_v2 }
 0x776   :  { %950 = vmatpush.msrb.mxu3 %v3022_v3 }
 0x779   :  { %v3025_v4 = vpop.permute.xlu0 %3024 }
 0x77a   :  { %v3026_v3 = vunpack.i.l.bf16 %v3025_v4 }
 0x77c   :  { %774 = vrot.lane.b32.xlu1 %v3345_v19, %s3208_s24  ;;  %v3546_v19 = vmul.f32 %v3540_v14, %v3540_v14 }
 0x77e   :  { %v1509_v20 = vsel %vm53_vm0, %v3546_v19, 0.0 }
 0x785   :  { %v3542_v15 = vpop.f32.mrf.mxu0 }
 0x786   :  { %v3550_v17 = vmul.f32 %v3542_v15, %v3542_v15 }
 0x788   :  { %v1510_v21 = vsel %vm53_vm0, %v3550_v17, 0.0 }
 0x789   :  { %v3556_v22 = vadd.f32 %v1510_v21, %v1509_v20 }
 0x7a4   :  { %v1306_v7 = vpop.xlane.xlu0 %1305 }
 0x7a5   :  { %v1308_v10 = vsub.f32 %v1298_v42, %v1306_v7  ;;  %v3027_v7 = vunpack.i.h.bf16 %v3025_v4 }
 0x7a6   :  { %1302 = vmax.xlane.f32.xlu1 %v1301_v11 }
 0x7a7   :  { %v1311_v12 = vmul.f32 1.442695, %v1308_v10 }
 0x7a9   :  { %3077 = vpow2.f32 %v1311_v12 }
 0x7af   :  { %v3536_v13 = vpop.eup %3077 }
 0x7b0   :  { %v1316_v39 = vsel %vm462_vm15, %v3536_v13, 0.0 }
 0x7b1   :  { %1317 = vadd.xlane.f32.xlu2 %v1316_v39 }
 0x7ce   :  { %v1089_v23 = vpop.xlane.xlu2 %1088 }
 0x7cf   :  { %3079 = vrcp.f32 %v1089_v23  ;;  %vm1098_vm0 = vweird.f32 %v1089_v23  ;;  %v1104_v50 = vand.u32 2147483648, %v1089_v23  ;;  %v1102_v51 = vand.u32 2147483647, %v1089_v23 }
 0x7d1   :  { %v1105_v59 = vor.u32 1.1754944e-38, %v1104_v50  ;;  %vm1103_vm8 = vcmp.eq.f32.partialorder %v1102_v51, 8.507059e+37  ;;  %v805_v50 = vpop.xlane.xlu0 %804 }
 0x7d2   :  { %v809_v51 = vsub.f32 %v3510_v45, %v805_v50 }
 0x7d5   :  { %v3080_v24 = vpop.eup %3079 }
 0x7d6   :  { %v1094_v25 = vmul.f32 %v3080_v24, %v1089_v23  ;;  %v1092_v36 = vpop.xlane.xlu1 %1091  ;;  %vm1099_vm2 = vweird.f32 %v3080_v24 }
 0x7d7   :  { %3081 = vrcp.f32 %v1092_v36  ;;  %v1119_v46 = vand.u32 2147483648, %v1092_v36  ;;  %v1117_v49 = vand.u32 2147483647, %v1092_v36  ;;  %vm1100_vm4 = vmor %vm1098_vm0, %vm1099_vm2  ;;  %vm1113_vm5 = vweird.f32 %v1092_v36 }
 0x7d8   :  { %v1095_v37 = vsub.f32 1.0, %v1094_v25 }
 0x7d9   :  { %v1120_v53 = vor.u32 1.1754944e-38, %v1119_v46  ;;  %vm1118_vm7 = vcmp.eq.f32.partialorder %v1117_v49, 8.507059e+37 }
 0x7da   :  { %v1096_v18 = vmul.f32 %v3080_v24, %v1095_v37 }
 0x7dc   :  { %v1097_v48 = vadd.f32 %v3080_v24, %v1096_v18 }
 0x7dd   :  { %v3082_v38 = vpop.eup %3081 }
 0x7de   :  { %v1109_v42 = vmul.f32 %v3082_v38, %v1092_v36  ;;  %vm1114_vm3 = vweird.f32 %v3082_v38  ;;  %v1101_v57 = vsel %vm1100_vm4, %v3080_v24, %v1097_v48  ;;  %v1546_v48 = vsel %vm157_vm1, %v3546_v19, 0.0 }
 0x7df   :  { %vm1115_vm6 = vmor %vm1113_vm5, %vm1114_vm3  ;;  %v1106_v0 = vsel %vm1103_vm8, %v1105_v59, %v1101_v57 }
 0x7e0   :  { %v1110_v44 = vsub.f32 1.0, %v1109_v42  ;;  %v1107_v1 = vmul.f32 %v3522_v54, %v1106_v0 }
 0x7e2   :  { %v1111_v63 = vmul.f32 %v3082_v38, %v1110_v44 }
 0x7e4   :  { %v1112_v52 = vadd.f32 %v3082_v38, %v1111_v63  ;;  %v1547_v63 = vsel %vm157_vm1, %v3550_v17, 0.0 }
 0x7e6   :  { %v1116_v56 = vsel %vm1115_vm6, %v3082_v38, %v1112_v52 }
 0x7e7   :  { %v1121_v60 = vsel %vm1118_vm7, %v1120_v53, %v1116_v56  ;;  %v811_v56 = vmul.f32 1.442695, %v809_v51 }
 0x7e8   :  { %v1122_v62 = vmul.f32 %v3526_v58, %v1121_v60  ;;  %v426_v58 = vadd.f32 %v3470_v9, %v3489_v47 }
 0x7ea   :  { %2908 = vmatpush.xpose.msk.msra.mxu3 %vm462_vm15, %v1122_v62 }
 0x7ec   :  { %v653_v47 = vpop.f32.mrf.mxu0 }
 0x7ed   :  { %v656_v23 = vsel %vm462_vm15, %v653_v47, -inf }
 0x7ee   :  { %v775_v2 = vpop.permute.xlu1 %774  ;;  %2909 = vmatpush.xpose.msk.msra.mxu3 %vm462_vm15, %v1107_v1 }
 0x7ef   :  { %2894 = vmatmul.msk.f32.gmra.mxu3 %vm462_vm15, %v775_v2 }
 0x7f7   :  { %2900 = vmatmul.msk.f32.vlgmr.msrb.gmra.mxu3 %vm321_vm14, %v3379_v41 }
 0x7f8   :  { %1175 = vmatpush.msrb.mxu3 %v3026_v3 }
 0x7fa   :  { %1176 = vmatpush.msrb.mxu3 %v3027_v7 }
 0x7ff   :  { %2910 = vmatmul.msk.f32.vlgmr.msra.gmra.mxu3 %vm462_vm15, %v426_v58 }
 0x807   :  { %2911 = vmatmul.msk.f32.vlgmr.msrb.gmra.mxu3 %vm321_vm14, %v3381_v43 }
 0x819   :  { %v1303_v54 = vpop.xlane.xlu1 %1302 }
 0x81a   :  { %v1307_v10 = vsub.f32 %v3507_v40, %v1303_v54 }
 0x81c   :  { %v1309_v11 = vmul.f32 1.442695, %v1307_v10 }
 0x81e   :  { %3083 = vpow2.f32 %v1309_v11 }
 0x824   :  { %v3571_v12 = vpop.eup %3083  ;;  %v1318_v39 = vpop.xlane.xlu2 %1317 }
 0x825   :  { %3085 = vrcp.f32 %v1318_v39  ;;  %v1313_v41 = vsel %vm462_vm15, %v3571_v12, 0.0  ;;  %v1345_v43 = vand.u32 2147483648, %v1318_v39  ;;  %v1343_v40 = vand.u32 2147483647, %v1318_v39 }
 0x826   :  { %1314 = vadd.xlane.f32.xlu2 %v1313_v41  ;;  %vm1339_vm10 = vweird.f32 %v1318_v39  ;;  %3087 = vpow2.f32 %v811_v56 }
 0x827   :  { %v1346_v36 = vor.u32 1.1754944e-38, %v1345_v43  ;;  %vm1344_vm12 = vcmp.eq.f32.partialorder %v1343_v40, 8.507059e+37 }
 0x82b   :  { %v3086_v4 = vpop.eup %3085 }
 0x82c   :  { %v1335_v20 = vmul.f32 %v3086_v4, %v1318_v39  ;;  %vm1340_vm9 = vweird.f32 %v3086_v4  ;;  %v3597_v62 = vpop.eup %3087 }
 0x82d   :  { %vm1341_vm11 = vmor %vm1339_vm10, %vm1340_vm9  ;;  %v815_v45 = vsel %vm462_vm15, %v3597_v62, 0.0 }
 0x82e   :  { %v1336_v21 = vsub.f32 1.0, %v1335_v20  ;;  %657 = vmax.xlane.f32.xlu2 %v656_v23 }
 0x830   :  { %v1337_v24 = vmul.f32 %v3086_v4, %v1336_v21 }
 0x832   :  { %v1338_v25 = vadd.f32 %v3086_v4, %v1337_v24 }
 0x834   :  { %v1342_v37 = vsel %vm1341_vm11, %v3086_v4, %v1338_v25 }
 0x835   :  { %v1347_v38 = vsel %vm1344_vm12, %v1346_v36, %v1342_v37 }
 0x836   :  { %v1348_v18 = vmul.f32 %v3536_v13, %v1347_v38  ;;  %v1548_v13 = vadd.f32 %v1547_v63, %v1546_v48 }
 0x838   :  { %2919 = vmatpush.xpose.msk.msra.mxu3 %vm462_vm15, %v1348_v18  ;;  %v1549_v52 = vrot.slane %v1548_v13, 4  ;;  %v429_v18 = vadd.f32 %v3470_v9, %v3491_v29 }
 0x83a   :  { %v1550_v57 = vadd.f32 %v1549_v52, %v1548_v13 }
 0x83c   :  { %v1551_v59 = vrot.slane %v1550_v57, 2 }
 0x83e   :  { %v1552_v17 = vadd.f32 %v1551_v59, %v1550_v57 }
 0x840   :  { %v1553_v0 = vrot.slane %v1552_v17, 1 }
 0x842   :  { %v1554_v1 = vadd.f32 %v1553_v0, %v1552_v17 }
 0x844   :  { %3089 = vrsqrt.f32 %v1554_v1  ;;  %vm1562_vm0 = vcmp.eq.f32.partialorder %v1554_v1, inf  ;;  %v1565_v63 = vand.u32 2147483648, %v1554_v1  ;;  %vm1564_vm4 = vcmp.eq.f32.partialorder %v1554_v1, 0.0 }
 0x84a   :  { %v3090_v3 = vpop.eup %3089 }
 0x84b   :  { %v1556_v39 = vmul.f32 %v3090_v3, %v1554_v1 }
 0x84d   :  { %v1557_v43 = vmul.f32 %v3090_v3, %v1556_v39  ;;  %v3655_v39 = vld [vmem:[%s4118_s6 + $0x10] sm:$0xff] }
 0x84f   :  { %v1558_v36 = vmul.f32 0.5, %v1557_v43 }
 0x872   :  { %v3578_v42 = vpop.f32.mrf.mxu3 }
 0x873   :  { %v806_v44 = vsel %vm462_vm15, %v3578_v42, -inf }
 0x874   :  { %807 = vmax.xlane.f32.xlu2 %v806_v44  ;;  %v1559_v44 = vsub.f32 1.5, %v1558_v36 }
 0x87a   :  { %v3582_v46 = vpop.f32.mrf.mxu3 }
 0x87b   :  { %v955_v49 = vsel %vm462_vm15, %v3582_v46, -inf }
 0x87c   :  { %956 = vmax.xlane.f32.xlu1 %v955_v49 }
 0x882   :  { %v3591_v53 = vpop.f32.mrf.mxu3 }
 0x88a   :  { %v3593_v60 = vpop.f32.mrf.mxu3 }
 0x88b   :  { %v1181_v19 = vsel %vm462_vm15, %v3593_v60, -inf }
 0x88c   :  { %1182 = vmax.xlane.f32.xlu2 %v1181_v19 }
 0x894   :  { %816 = vadd.xlane.f32.xlu2 %v815_v45 }
 0x899   :  { %v1315_v2 = vpop.xlane.xlu2 %1314 }
 0x89a   :  { %3091 = vrcp.f32 %v1315_v2  ;;  %v1330_v41 = vand.u32 2147483648, %v1315_v2  ;;  %v1328_v21 = vand.u32 2147483647, %v1315_v2  ;;  %vm1324_vm13 = vweird.f32 %v1315_v2 }
 0x89c   :  { %v1331_v24 = vor.u32 1.1754944e-38, %v1330_v41  ;;  %vm1329_vm3 = vcmp.eq.f32.partialorder %v1328_v21, 8.507059e+37 }
 0x8a0   :  { %v3092_v7 = vpop.eup %3091 }
 0x8a1   :  { %v1320_v58 = vmul.f32 %v3092_v7, %v1315_v2  ;;  %v658_v54 = vpop.xlane.xlu2 %657  ;;  %vm1325_vm1 = vweird.f32 %v3092_v7 }
 0x8a2   :  { %v659_v10 = vsub.f32 %v653_v47, %v658_v54  ;;  %vm1326_vm2 = vmor %vm1324_vm13, %vm1325_vm1 }
 0x8a3   :  { %v1321_v11 = vsub.f32 1.0, %v1320_v58 }
 0x8a4   :  { %v660_v4 = vmul.f32 1.442695, %v659_v10 }
 0x8a5   :  { %v1322_v20 = vmul.f32 %v3092_v7, %v1321_v11 }
 0x8a6   :  { %3093 = vpow2.f32 %v660_v4 }
 0x8a7   :  { %v1323_v23 = vadd.f32 %v3092_v7, %v1322_v20 }
 0x8a9   :  { %v1327_v40 = vsel %vm1326_vm2, %v3092_v7, %v1323_v23 }
 0x8aa   :  { %v1332_v25 = vsel %vm1329_vm3, %v1331_v24, %v1327_v40 }
 0x8ab   :  { %v1333_v47 = vmul.f32 %v3571_v12, %v1332_v25  ;;  %v1560_v12 = vmul.f32 %v3090_v3, %v1559_v44 }
 0x8ac   :  { %682 = vrot.lane.b32.xlu2 %v3317_v8, %s3214_s0  ;;  %v3604_v37 = vpop.eup %3093 }
 0x8ad   :  { %2920 = vmatpush.xpose.msk.msra.mxu3 %vm462_vm15, %v1333_v47  ;;  %v662_v38 = vsel %vm462_vm15, %v3604_v37, 0.0  ;;  %v1561_v48 = vmul.f32 %v1560_v12, %v1554_v1 }
 0x8ae   :  { %663 = vadd.xlane.f32.xlu0 %v662_v38 }
 0x8af   :  { %v1563_v49 = vsel %vm1562_vm0, %v1554_v1, %v1561_v48 }
 0x8b0   :  { %2921 = vmatmul.msk.f32.vlgmr.msra.gmra.mxu3 %vm462_vm15, %v429_v18  ;;  %v1566_v13 = vsel %vm1564_vm4, %v1565_v63, %v1563_v49 }
 0x8b1   :  { %v1567_v50 = vmax.f32 %v1566_v13, 1e-12 }
 0x8b4   :  { %1205 = vrot.lane.b32.xlu2 %v3311_v6, %s3215_s29 }
 0x8bc   :  { %1630 = vrot.lane.b32.xlu2 %v3540_v14, %s3204_s20 }
 0x8c2   :  { %680 = vrot.lane.b32.xlu0 %v3311_v6, %s3214_s0 }
 0x8c4   :  { %1569 = vrot.lane.b32.xlu2 %v1567_v50, %s3204_s20 }
 0x8ca   :  { %981 = vrot.lane.b32.xlu0 %v3317_v8, %s3216_s30 }
 0x8d2   :  { %1207 = vrot.lane.b32.xlu0 %v3317_v8, %s3215_s29 }
 0x8da   :  { %1632 = vrot.lane.b32.xlu0 %v3542_v15, %s3204_s20 }
 0x8e7   :  { %v808_v29 = vpop.xlane.xlu2 %807 }
 0x8e8   :  { %v810_v51 = vsub.f32 %v3578_v42, %v808_v29 }
 0x8ea   :  { %v813_v52 = vmul.f32 1.442695, %v810_v51 }
 0x8ec   :  { %3095 = vpow2.f32 %v813_v52 }
 0x8ef   :  { %v957_v56 = vpop.xlane.xlu1 %956 }
 0x8f0   :  { %v958_v57 = vsub.f32 %v3582_v46, %v957_v56  ;;  %v1512_v46 = vrot.slane %v3556_v22, 4 }
 0x8f2   :  { %v3627_v59 = vpop.eup %3095  ;;  %v959_v19 = vmul.f32 1.442695, %v958_v57  ;;  %v1513_v2 = vadd.f32 %v1512_v46, %v3556_v22 }
 0x8f3   :  { %v818_v17 = vsel %vm462_vm15, %v3627_v59, 0.0 }
 0x8f4   :  { %3097 = vpow2.f32 %v959_v19  ;;  %819 = vadd.xlane.f32.xlu1 %v818_v17  ;;  %v1514_v58 = vrot.slane %v1513_v2, 2 }
 0x8f6   :  { %v1515_v10 = vadd.f32 %v1514_v58, %v1513_v2 }
 0x8f8   :  { %v1516_v22 = vrot.slane %v1515_v10, 1 }
 0x8fa   :  { %v3631_v8 = vpop.eup %3097  ;;  %v1517_v41 = vadd.f32 %v1516_v22, %v1515_v10 }
 0x8fb   :  { %v961_v0 = vsel %vm462_vm15, %v3631_v8, 0.0 }
 0x8fc   :  { %962 = vadd.xlane.f32.xlu1 %v961_v0  ;;  %vm1525_vm1 = vcmp.eq.f32.partialorder %v1517_v41, inf  ;;  %vm1527_vm13 = vcmp.eq.f32.partialorder %v1517_v41, 0.0 }
 0x8ff   :  { %v1183_v42 = vpop.xlane.xlu2 %1182 }
 0x900   :  { %v1184_v45 = vsub.f32 %v3593_v60, %v1183_v42  ;;  %v3649_v60 = vld [vmem:[%s4118_s6 + $0x18] sm:$0xff] }
 0x901   :  { %1395 = vmatpush.msrb.mxu3 %v3649_v60 }
 0x902   :  { %v1185_v1 = vmul.f32 1.442695, %v1184_v45 }
 0x903   :  { %1396 = vmatpush.msrb.mxu3 %v3655_v39 }
 0x904   :  { %3099 = vpow2.f32 %v1185_v1 }
 0x905   :  { %1732 = vmatpush.msra.mxu3 %v3355_v27  ;;  %3101 = vrsqrt.f32 %v1517_v41 }
 0x907   :  { %v3638_v3 = vpop.xlane.xlu2 %816  ;;  %1733 = vmatpush.msra.mxu3 %v3360_v28 }
 0x90a   :  { %v3640_v7 = vpop.eup %3099 }
 0x90b   :  { %v1187_v54 = vsel %vm462_vm15, %v3640_v7, 0.0  ;;  %v3102_v21 = vpop.eup %3101 }
 0x90c   :  { %1188 = vadd.xlane.f32.xlu1 %v1187_v54  ;;  %v1519_v43 = vmul.f32 %v3102_v21, %v1517_v41  ;;  %v1528_v54 = vand.u32 2147483648, %v1517_v41 }
 0x90e   :  { %v1520_v40 = vmul.f32 %v3102_v21, %v1519_v43 }
 0x90f   :  { %v3644_v11 = vpop.permute.xlu2 %682 }
 0x910   :  { %v1521_v36 = vmul.f32 0.5, %v1520_v40 }
 0x912   :  { %v1522_v63 = vsub.f32 1.5, %v1521_v36 }
 0x914   :  { %v1523_v19 = vmul.f32 %v3102_v21, %v1522_v63  ;;  %v3679_v21 = vld [vmem:[%s4124_s12 + $0x8] sm:$0xff] }
 0x916   :  { %v1524_v46 = vmul.f32 %v1523_v19, %v1517_v41 }
 0x917   :  { %v3659_v4 = vpop.permute.xlu2 %1205 }
 0x918   :  { %v1526_v10 = vsel %vm1525_vm1, %v1517_v41, %v1524_v46 }
 0x919   :  { %v1529_v22 = vsel %vm1527_vm13, %v1528_v54, %v1526_v10 }
 0x91f   :  { %v3662_v20 = vpop.permute.xlu2 %1630 }
 0x921   :  { %v664_v23 = vpop.xlane.xlu0 %663 }
 0x922   :  { %3103 = vrcp.f32 %v664_v23  ;;  %v676_v38 = vand.u32 2147483648, %v664_v23  ;;  %v674_v44 = vand.u32 2147483647, %v664_v23  ;;  %vm670_vm6 = vweird.f32 %v664_v23 }
 0x924   :  { %v677_v49 = vor.u32 1.1754944e-38, %v676_v38  ;;  %vm675_vm8 = vcmp.eq.f32.partialorder %v674_v44, 8.507059e+37 }
 0x925   :  { %979 = vrot.lane.b32.xlu1 %v3311_v6, %s3216_s30 }
 0x927   :  { %v1570_v24 = vpop.permute.xlu2 %1569 }
 0x928   :  { %3105 = vrcp.f32 %v1570_v24  ;;  %v3104_v25 = vpop.eup %3103  ;;  %v1583_v50 = vand.u32 2147483648, %v1570_v24  ;;  %v1581_v52 = vand.u32 2147483647, %v1570_v24  ;;  %vm1577_vm10 = vweird.f32 %v1570_v24 }
 0x929   :  { %v666_v27 = vmul.f32 %v3104_v25, %v664_v23  ;;  %vm671_vm5 = vweird.f32 %v3104_v25  ;;  %v1530_v23 = vmax.f32 %v1529_v22, 1e-12 }
 0x92a   :  { %vm672_vm7 = vmor %vm670_vm6, %vm671_vm5  ;;  %v1584_v0 = vor.u32 1.1754944e-38, %v1583_v50  ;;  %vm1582_vm12 = vcmp.eq.f32.partialorder %v1581_v52, 8.507059e+37 }
 0x92b   :  { %v667_v47 = vsub.f32 1.0, %v666_v27  ;;  %3107 = vrcp.f32 %v1530_v23  ;;  %vm1536_vm2 = vweird.f32 %v1530_v23  ;;  %v1540_v36 = vand.u32 2147483647, %v1530_v23 }
 0x92c   :  { %3109 = vrcp.f32 %v3638_v3 }
 0x92d   :  { %v668_v28 = vmul.f32 %v3104_v25, %v667_v47  ;;  %vm1541_vm4 = vcmp.eq.f32.partialorder %v1540_v36, 8.507059e+37 }
 0x92e   :  { %v3106_v18 = vpop.eup %3105 }
 0x92f   :  { %v1573_v12 = vmul.f32 %v3106_v18, %v1570_v24  ;;  %v669_v48 = vadd.f32 %v3104_v25, %v668_v28  ;;  %vm1578_vm9 = vweird.f32 %v3106_v18 }
 0x930   :  { %vm1579_vm11 = vmor %vm1577_vm10, %vm1578_vm9 }
 0x931   :  { %v1574_v13 = vsub.f32 1.0, %v1573_v12  ;;  %v673_v6 = vsel %vm672_vm7, %v3104_v25, %v669_v48  ;;  %v3108_v43 = vpop.eup %3107  ;;  %vm826_vm7 = vweird.f32 %v3638_v3 }
 0x932   :  { %v678_v29 = vsel %vm675_vm8, %v677_v49, %v673_v6  ;;  %v1532_v41 = vmul.f32 %v3108_v43, %v1530_v23  ;;  %vm1537_vm3 = vweird.f32 %v3108_v43  ;;  %v3110_v12 = vpop.eup %3109 }
 0x933   :  { %v1575_v51 = vmul.f32 %v3106_v18, %v1574_v13  ;;  %v1375_v56 = vpop.f32.mrf.mxu3  ;;  %v679_v57 = vmul.f32 %v3604_v37, %v678_v29  ;;  %v3165_v37 = vld [vmem:[%s4122_s10] sm:$0x1]  ;;  %vm1538_vm0 = vmor %vm1536_vm2, %vm1537_vm3  ;;  %v822_v63 = vmul.f32 %v3110_v12, %v3638_v3  ;;  %vm827_vm5 = vweird.f32 %v3110_v12  ;;  %s3220_s10 = smov 8  }
 0x934   :  { %2922 = vmatmul.msk.f32.vlgmr.msrb.gmra.mxu3 %vm321_vm14, %v1375_v56  ;;  %v681_v45 = vpop.permute.xlu0 %680  ;;  %v1533_v40 = vsub.f32 1.0, %v1532_v41  ;;  %vm3700_vm8 = vmor %vm826_vm7, %vm827_vm5 }
 0x935   :  { %v1576_v17 = vadd.f32 %v3106_v18, %v1575_v51  ;;  %2886 = vmatpush.xpose.msk.msra.mxu0 %vm462_vm15, %v679_v57 }
 0x936   :  { %v1534_v27 = vmul.f32 %v3108_v43, %v1533_v40 }
 0x937   :  { %v1580_v42 = vsel %vm1579_vm11, %v3106_v18, %v1576_v17 }
 0x938   :  { %v1585_v1 = vsel %vm1582_vm12, %v1584_v0, %v1580_v42  ;;  %2887 = vmatmul.msk.f32.vlgmr.msra.gmra.mxu0 %vm462_vm15, %v681_v45  ;;  %v1535_v47 = vadd.f32 %v3108_v43, %v1534_v27  ;;  %v832_v0 = vand.u32 2147483648, %v3638_v3  ;;  %v830_v45 = vand.u32 2147483647, %v3638_v3 }
 0x939   :  { %v1586_v2 = vmul.f32 %v3165_v37, %v1585_v1 }
 0x93a   :  { %v1539_v18 = vsel %vm1538_vm0, %v3108_v43, %v1535_v47  ;;  %v833_v10 = vor.u32 1.1754944e-38, %v832_v0  ;;  %vm831_vm12 = vcmp.eq.f32.partialorder %v830_v45, 8.507059e+37  ;;  %v3776_v45 = vld [vmem:[%s4120_s8 + $0x18] sm:$0xff] }
 0x93b   :  { %v1590_v58 = vperm.slane %v1586_v2, 0 }
 0x93c   :  { %v3683_v24 = vpop.permute.xlu0 %981 }
 0x93d   :  { %1591 = vrot.lane.b32.xlu0 %v1590_v58, %s3205_s22 }
 0x940   :  { %2888 = vmatmul.msk.f32.gmra.mxu0 %vm462_vm15, %v3644_v11  ;;  %v1542_v11 = vand.u32 2147483648, %v1530_v23 }
 0x942   :  { %v1543_v38 = vor.u32 1.1754944e-38, %v1542_v11 }
 0x944   :  { %v3685_v25 = vpop.permute.xlu0 %1207  ;;  %v1544_v44 = vsel %vm1541_vm4, %v1543_v38, %v1539_v18 }
 0x945   :  { %1428 = vrot.lane.b32.xlu0 %v3679_v21, %s3208_s24  ;;  %v3690_v48 = vmul.f32 %v1544_v44, %v3540_v14  ;;  %v3695_v13 = vmul.f32 %v1544_v44, %v3542_v15 }
 0x94c   :  { %v1633_v28 = vpop.permute.xlu0 %1632 }
 0x95a   :  { %1636 = vxpose.xlu1.b32.start [1/2] (short) (narrow) %v3662_v20, 32  ;;  %v823_v20 = vsub.f32 1.0, %v822_v63  ;;  %v3719_v63 = vld [vmem:[%s4124_s12] sm:$0xff] }
 0x95b   :  { %1426 = vrot.lane.b32.xlu2 %v3719_v63, %s3208_s24 }
 0x95c   :  { %v824_v50 = vmul.f32 %v3110_v12, %v823_v20 }
 0x95e   :  { %v825_v57 = vadd.f32 %v3110_v12, %v824_v50 }
 0x960   :  { %v829_v54 = vsel %vm3700_vm8, %v3110_v12, %v825_v57  ;;  %v3167_v57 = vld [vmem:[%s4116_s4] sm:$0xff] }
 0x961   :  { %v834_v40 = vsel %vm831_vm12, %v833_v10, %v829_v54 }
 0x962   :  { %1637 = vxpose.xlu1.b32.end [2/2] (short) (narrow) %v1633_v28, 32  ;;  %v835_v47 = vmul.f32 %v3597_v62, %v834_v40 }
 0x967   :  { %v820_v49 = vpop.xlane.xlu1 %819  ;;  %1596 = vxpose.xlu0.b32.start [1/2] (short) (narrow) %v3690_v48, 32 }
 0x968   :  { %3111 = vrcp.f32 %v820_v49  ;;  %v847_v56 = vand.u32 2147483648, %v820_v49  ;;  %v845_v17 = vand.u32 2147483647, %v820_v49  ;;  %vm841_vm9 = vweird.f32 %v820_v49 }
 0x96a   :  { %v848_v37 = vor.u32 1.1754944e-38, %v847_v56  ;;  %vm846_vm11 = vcmp.eq.f32.partialorder %v845_v17, 8.507059e+37 }
 0x96e   :  { %v3112_v6 = vpop.eup %3111 }
 0x96f   :  { %v837_v29 = vmul.f32 %v3112_v6, %v820_v49  ;;  %v963_v51 = vpop.xlane.xlu1 %962  ;;  %1597 = vxpose.xlu0.b32.end [2/2] (short) (narrow) %v3695_v13, 32  ;;  %vm842_vm6 = vweird.f32 %v3112_v6 }
 0x970   :  { %3113 = vrcp.f32 %v963_v51  ;;  %vm843_vm10 = vmor %vm841_vm9, %vm842_vm6  ;;  %v975_v41 = vand.u32 2147483648, %v963_v51  ;;  %v973_v27 = vand.u32 2147483647, %v963_v51  ;;  %vm969_vm13 = vweird.f32 %v963_v51 }
 0x971   :  { %v838_v52 = vsub.f32 1.0, %v837_v29 }
 0x972   :  { %v976_v36 = vor.u32 1.1754944e-38, %v975_v41  ;;  %vm974_vm3 = vcmp.eq.f32.partialorder %v973_v27, 8.507059e+37 }
 0x973   :  { %v839_v19 = vmul.f32 %v3112_v6, %v838_v52  ;;  %v3728_v52 = vld [vmem:[%s4120_s8 + $0x8] sm:$0xff] }
 0x974   :  { %735 = vmatpush.msrb.mxu1 %v3728_v52 }
 0x975   :  { %v840_v1 = vadd.f32 %v3112_v6, %v839_v19 }
 0x976   :  { %v3114_v46 = vpop.eup %3113  ;;  %897 = vmatpush.msra.mxu1 %v3649_v60 }
 0x977   :  { %v844_v2 = vsel %vm843_vm10, %v3112_v6, %v840_v1  ;;  %v965_v58 = vmul.f32 %v3114_v46, %v963_v51  ;;  %vm970_vm1 = vweird.f32 %v3114_v46 }
 0x978   :  { %v849_v22 = vsel %vm846_vm11, %v848_v37, %v844_v2  ;;  %vm971_vm2 = vmor %vm969_vm13, %vm970_vm1  ;;  %898 = vmatpush.msra.mxu1 %v3655_v39 }
 0x979   :  { %v966_v23 = vsub.f32 1.0, %v965_v58  ;;  %v850_v43 = vmul.f32 %v3627_v59, %v849_v22  ;;  %v423_v59 = vadd.f32 %v3470_v9, %v3487_v26 }
 0x97b   :  { %v967_v3 = vmul.f32 %v3114_v46, %v966_v23  ;;  %2895 = vmatpush.xpose.msk.msrb.mxu0 %vm462_vm15, %v850_v43 }
 0x97d   :  { %v968_v11 = vadd.f32 %v3114_v46, %v967_v3 }
 0x97f   :  { %v972_v38 = vsel %vm971_vm2, %v3114_v46, %v968_v11  ;;  %v1189_v18 = vpop.xlane.xlu1 %1188  ;;  %2896 = vmatpush.xpose.msk.msrb.mxu0 %vm462_vm15, %v835_v47 }
 0x980   :  { %v977_v28 = vsel %vm974_vm3, %v976_v36, %v972_v38  ;;  %3115 = vrcp.f32 %v1189_v18  ;;  %v1201_v9 = vand.u32 2147483648, %v1189_v18  ;;  %v1199_v20 = vand.u32 2147483647, %v1189_v18 }
 0x981   :  { %v978_v44 = vmul.f32 %v3631_v8, %v977_v28  ;;  %vm1195_vm4 = vweird.f32 %v1189_v18 }
 0x982   :  { %2897 = vmatmul.msk.f32.vlgmr.msrb.gmra.mxu0 %vm462_vm15, %v423_v59  ;;  %v1202_v6 = vor.u32 1.1754944e-38, %v1201_v9  ;;  %vm1200_vm6 = vcmp.eq.f32.partialorder %v1199_v20, 8.507059e+37 }
 0x983   :  { %2901 = vmatpush.xpose.msk.msra.mxu0 %vm462_vm15, %v978_v44  ;;  %v3799_v44 = vld [vmem:[%s4115_s3] ss:$0 sm:$0xff] }
 0x986   :  { %v3116_v12 = vpop.eup %3115 }
 0x987   :  { %v1191_v62 = vmul.f32 %v3116_v12, %v1189_v18  ;;  %vm1196_vm0 = vweird.f32 %v3116_v12 }
 0x988   :  { %vm1197_vm5 = vmor %vm1195_vm4, %vm1196_vm0 }
 0x989   :  { %v1192_v49 = vsub.f32 1.0, %v1191_v62 }
 0x98b   :  { %v1193_v26 = vmul.f32 %v3116_v12, %v1192_v49 }
 0x98d   :  { %v1194_v8 = vadd.f32 %v3116_v12, %v1193_v26 }
 0x98f   :  { %v1198_v50 = vsel %vm1197_vm5, %v3116_v12, %v1194_v8  ;;  %vm1504_vm5 = vcmask 261248  }
 0x990   :  { %v1203_v29 = vsel %vm1200_vm6, %v1202_v6, %v1198_v50 }
 0x991   :  { %v1204_v51 = vmul.f32 %v3640_v7, %v1203_v29  ;;  %v3166_v7 = vld [vmem:[%s4116_s4 + $0x8] sm:$0xff]  ;;  %s3218_s4 = smov [#allocation2]  }
 0x992   :  { %s2850_s25 = sshll.u32 %s3218_s4, 4  ;;  %s2851_s25 = int_to_ptr.vmem [resolvable:$true] %s2850_s25 }
 0x993   :  { %2912 = vmatpush.xpose.msk.msrb.mxu0 %vm462_vm15, %v1204_v51 }
 0x997   :  { %v980_v56 = vpop.permute.xlu1 %979 }
 0x998   :  { %2902 = vmatmul.msk.f32.vlgmr.msra.gmra.mxu0 %vm462_vm15, %v980_v56 }
 0x999   :  { %1418 = vmatpush.msra.mxu0 %v3444_v32 }
 0x99b   :  { %1419 = vmatpush.msra.mxu0 %v3450_v33 }
 0x9a0   :  { %2903 = vmatmul.msk.f32.gmra.mxu0 %vm462_vm15, %v3683_v24 }
 0x9a8   :  { %2913 = vmatmul.msk.f32.vlgmr.msrb.gmra.mxu0 %vm462_vm15, %v3659_v4 }
 0x9a9   :  { %1777 = vmatpush.msrb.mxu0 %v3166_v7 }
 0x9ab   :  { %1778 = vmatpush.msrb.mxu0 %v3167_v57 }
 0x9af   :  { %v1592_v32 = vpop.permute.xlu0 %1591 }
 0x9b0   :  { %v1594_v19 = vmul.f32 %v1592_v32, %v3540_v14  ;;  %v1595_v33 = vmul.f32 %v1592_v32, %v3542_v15  ;;  %2914 = vmatmul.msk.f32.gmra.mxu0 %vm462_vm15, %v3685_v25  ;;  %v3766_v25 = vld [vmem:[%s4120_s8 + $0x10] sm:$0xff] }
 0x9b2   :  { %v3750_v24 = vpack.i.bf16 %v1594_v19, %v1595_v33 }
 0x9b4   :  { %3029 = vrot.lane.b32.xlu2 %v3750_v24, %s3204_s20 }
 0x9b5   :  { %v708_v4 = vpop.f32.mrf.mxu0  ;;  %v3771_v42 = vpop.permute.xlu2 %1426 }
 0x9b6   :  { %2889 = vmatmul.msk.f32.vlgmr.msrb.gmra.mxu1 %vm462_vm15, %v708_v4 }
 0x9b7   :  { %1034 = vmatpush.msrb.mxu1 %v3766_v25  ;;  %v1398_v43 = vpop.f32.mrf.mxu3  ;;  %v3788_v11 = vpop.permute.xlu0 %1428 }
 0x9b8   :  { %2923 = vmatmul.msk.f32.vlgmr.msra.gmra.mxu0 %vm321_vm14, %v3591_v53 }
 0x9bc   :  { %1668 = vrot.lane.b32.xlu2 %v3540_v14, %s3205_s22 }
 0x9bd   :  { %v711_v17 = vpop.f32.mrf.mxu0 }
 0x9be   :  { %2890 = vmatmul.msk.f32.gmra.mxu1 %vm462_vm15, %v711_v17 }
 0x9c4   :  { %1670 = vrot.lane.b32.xlu2 %v3542_v15, %s3205_s22  ;;  %s2852_s22 = sshll.u32 %s4125_s13, 4  ;;  %s2853_s22 = int_to_ptr.hbm [resolvable:$true] %s2852_s22 }
 0x9d6   :  { %3048 = vset.pattern.permute.xlu0 %v3207_v35 }
 0x9fe   :  { %v1652_v0 = vpop.trf.xlu1 }
 0x9ff   :  { %v877_v53 = vpop.f32.mrf.mxu0  ;;  %2928 = vmatmul.msk.f32.vlgmr.msra.gmra.mxu3 %vm321_vm14, %v1652_v0 }
 0xa00   :  { %2898 = vmatmul.msk.f32.vlgmr.msra.gmra.mxu1 %vm321_vm14, %v877_v53 }
 0xa01   :  { %1260 = vmatpush.msra.mxu1 %v3776_v45 }
 0xa06   :  { %v1653_v35 = vpop.trf.xlu1 }
 0xa07   :  { %2929 = vmatmul.msk.f32.gmra.mxu3 %vm321_vm14, %v1653_v35 }
 0xa0b   :  { %v1612_v47 = vpop.trf.xlu0 }
 0xa0e   :  { %v3030_v1 = vpop.permute.xlu2 %3029  ;;  %v1654_v46 = vpop.trf.xlu1 }
 0xa0f   :  { %2930 = vmatmul.msk.f32.gmra.mxu3 %vm321_vm14, %v1654_v46  ;;  %v3031_v3 = vunpack.i.l.bf16 %v3030_v1  ;;  %v3032_v27 = vunpack.i.h.bf16 %v3030_v1 }
 0xa13   :  { %v3826_v17 = vpop.trf.xlu0 }
 0xa15   :  { %v1007_v37 = vpop.f32.mrf.mxu0 }
 0xa16   :  { %2904 = vmatmul.msk.f32.vlgmr.msrb.gmra.mxu1 %vm462_vm15, %v1007_v37  ;;  %v1669_v2 = vpop.permute.xlu2 %1668  ;;  %v1655_v58 = vpop.trf.xlu1 }
 0xa17   :  { %1674 = vxpose.xlu2.b32.start [1/2] (short) (narrow) %v1669_v2, 32  ;;  %2931 = vmatmul.msk.f32.gmra.mxu3 %vm321_vm14, %v1655_v58 }
 0xa1b   :  { %v3830_v0 = vpop.trf.xlu0 }
 0xa1d   :  { %v1010_v54 = vpop.f32.mrf.mxu0 }
 0xa1e   :  { %2905 = vmatmul.msk.f32.gmra.mxu1 %vm462_vm15, %v1010_v54  ;;  %v1671_v10 = vpop.permute.xlu2 %1670 }
 0xa1f   :  { %1675 = vxpose.xlu2.b32.end [2/2] (short) (narrow) %v1671_v10, 32 }
 0xa23   :  { %v3833_v1 = vpop.trf.xlu0 }
 0xa25   :  { %v1233_v22 = vpop.f32.mrf.mxu0 }
 0xa26   :  { %2915 = vmatmul.msk.f32.vlgmr.msra.gmra.mxu1 %vm462_vm15, %v1233_v22 }
 0xa2d   :  { %v1236_v23 = vpop.f32.mrf.mxu0 }
 0xa2e   :  { %2916 = vmatmul.msk.f32.gmra.mxu1 %vm462_vm15, %v1236_v23 }
 0xa33   :  { %v737_v36 = vpop.f32.mrf.mxu1 }
 0xa35   :  { %v1421_v41 = vpop.f32.mrf.mxu0 }
 0xa36   :  { %v1422_v40 = vadd.f32 %v1421_v41, %v1398_v43 }
 0xa38   :  { %1449 = vmatpush.msrb.mxu1 %v1422_v40 }
 0xa39   :  { %2924 = vmatmul.msk.f32.vlgmr.msrb.gmra.mxu1 %vm462_vm15, %v3771_v42 }
 0xa3a   :  { %1817 = vmatpush.msra.mxu1 %v3031_v3 }
 0xa3b   :  { %v740_v38 = vpop.f32.mrf.mxu1 }
 0xa3c   :  { %1818 = vmatpush.msra.mxu1 %v3032_v27  ;;  %v770_v49 = vadd.f32 %v3495_v31, %v740_v38 }
 0xa41   :  { %2925 = vmatmul.msk.f32.gmra.mxu1 %vm462_vm15, %v3788_v11 }
 0xa49   :  { %2936 = vmatmul.msk.f32.vlgmr.msra.gmra.mxu1 %vm321_vm14, %v1612_v47 }
 0xa7d   :  { %v900_v18 = vpop.f32.mrf.mxu1 }
 0xa7e   :  { %v924_v59 = vadd.f32 %v3497_v34, %v900_v18  ;;  %v767_v34 = vadd.f32 %v3493_v30, %v737_v36  ;;  %v3052_v30 = vld [vmem:[%s4119_s7] ss:$0 sm:$0xff] }
 0xa80   :  { %1476 = vmatpush.msrb.mxu2 %v924_v59 }
 0xa81   :  { %2926 = vmatmul.msk.f32.vlgmr.msrb.gmra.mxu2 %vm462_vm15, %v3719_v63 }
 0xa82   :  { %v1735_v28 = vpop.f32.mrf.mxu3 }
 0xa83   :  { %v1736_v12 = vadd.f32 %v3799_v44, %v1735_v28 }
 0xa85   :  { %v1747_v62 = vmul.f32 %v1736_v12, %v3389_v55 }
 0xa87   :  { %1902 = vmatpush.msrb.mxu1 %v1747_v62 }
 0xa88   :  { %2940 = vmatmul.msk.f32.vlgmr.msrb.gmra.mxu1 %vm462_vm15, %v3690_v48 }
 0xa89   :  { %2927 = vmatmul.msk.f32.gmra.mxu2 %vm462_vm15, %v3679_v21  ;;  %2095 = vmatpush.msra.mxu1 %v3728_v52 }
 0xa8b   :  { %2257 = vmatpush.msrb.mxu1 %v3649_v60 }
 0xa8d   :  { %2258 = vmatpush.msrb.mxu1 %v3655_v39 }
 0xa90   :  { %2941 = vmatmul.msk.f32.gmra.mxu1 %vm462_vm15, %v3695_v13 }
 0xa93   :  { %v1036_v63 = vpop.f32.mrf.mxu1 }
 0xa94   :  { %v1042_v55 = vadd.f32 %v1036_v63, %v767_v34 }
 0xa9b   :  { %v1039_v9 = vpop.f32.mrf.mxu1 }
 0xa9c   :  { %v1043_v26 = vadd.f32 %v1039_v9, %v770_v49 }
 0xaa3   :  { %v1262_v20 = vpop.f32.mrf.mxu1 }
 0xaa4   :  { %v3814_v8 = vadd.f32 %v1262_v20, %v1042_v55 }
 0xaab   :  { %v1265_v21 = vpop.f32.mrf.mxu1 }
 0xaac   :  { %v3816_v6 = vadd.f32 %v1265_v21, %v1043_v26 }
 0xab0   :  { %v1690_v53 = vpop.trf.xlu2 }
 0xab1   :  { %2932 = vmatmul.msk.f32.vlgmr.msrb.gmra.mxu0 %vm321_vm14, %v1690_v53 }
 0xab6   :  { %v1451_v60 = vpop.f32.mrf.mxu1 }
 0xab8   :  { %v1691_v35 = vpop.trf.xlu2 }
 0xab9   :  { %2933 = vmatmul.msk.f32.gmra.mxu0 %vm321_vm14, %v1691_v35 }
 0xabe   :  { %v1454_v50 = vpop.f32.mrf.mxu1 }
 0xac0   :  { %v1692_v46 = vpop.trf.xlu2 }
 0xac1   :  { %2934 = vmatmul.msk.f32.gmra.mxu0 %vm321_vm14, %v1692_v46 }
 0xac6   :  { %v1820_v39 = vpop.f32.mrf.mxu1 }
 0xac7   :  { %v1823_v29 = vsel %vm462_vm15, %v1820_v39, -inf }
 0xac8   :  { %1824 = vmax.xlane.f32.xlu0 %v1823_v29  ;;  %v1693_v54 = vpop.trf.xlu2 }
 0xac9   :  { %2935 = vmatmul.msk.f32.gmra.mxu0 %vm321_vm14, %v1693_v54 }
 0xb04   :  { %v1478_v51 = vpop.f32.mrf.mxu2 }
 0xb05   :  { %v1479_v31 = vadd.f32 %v1478_v51, %v1451_v60  ;;  %v1904_v52 = vpop.f32.mrf.mxu1 }
 0xb06   :  { %v1910_v56 = vsel %vm462_vm15, %v1904_v52, -inf }
 0xb07   :  { %v1487_v7 = vadd.f32 %v3052_v30, %v1479_v31  ;;  %1911 = vmax.xlane.f32.xlu2 %v1910_v56 }
 0xb09   :  { %1489 = vst.msk [vmem:[#allocation2] sm:$0xff] %vm321_vm14, %v1487_v7 }
 0xb0c   :  { %v1481_v57 = vpop.f32.mrf.mxu2 }
 0xb0d   :  { %v1482_v32 = vadd.f32 %v1481_v57, %v1454_v50  ;;  %v1907_v19 = vpop.f32.mrf.mxu1 }
 0xb0e   :  { %v1913_v33 = vsel %vm462_vm15, %v1907_v19, -inf }
 0xb0f   :  { %v1488_v4 = vadd.f32 %v3052_v30, %v1482_v32  ;;  %1914 = vmax.xlane.f32.xlu1 %v1913_v33 }
 0xb11   :  { %1490 = vst.msk [vmem:[#allocation2 + $0x8] sm:$0xff] %vm321_vm14, %v1488_v4 }
 0xb1f   :  { %2406 = vrot.lane.b32.xlu2 %v3695_v13, %s3209_s27 }
 0xb3b   :  { %v1825_v37 = vpop.xlane.xlu0 %1824 }
 0xb3c   :  { %v1826_v2 = vsub.f32 %v1820_v39, %v1825_v37 }
 0xb3e   :  { %v1827_v58 = vmul.f32 1.442695, %v1826_v2  ;;  %v1738_v2 = vpop.f32.mrf.mxu3 }
 0xb40   :  { %3117 = vpow2.f32 %v1827_v58 }
 0xb46   :  { %v3118_v10 = vpop.eup %3117 }
 0xb47   :  { %v1829_v22 = vsel %vm462_vm15, %v3118_v10, 0.0 }
 0xb48   :  { %1830 = vadd.xlane.f32.xlu1 %v1829_v22 }
 0xb7a   :  { %v1912_v23 = vpop.xlane.xlu2 %1911 }
 0xb7b   :  { %v1916_v43 = vsub.f32 %v1904_v52, %v1912_v23 }
 0xb7d   :  { %v1918_v41 = vmul.f32 1.442695, %v1916_v43  ;;  %v1739_v43 = vadd.f32 %v3799_v44, %v1738_v2 }
 0xb7f   :  { %3119 = vpow2.f32 %v1918_v41 }
 0xb82   :  { %v1915_v40 = vpop.xlane.xlu1 %1914 }
 0xb83   :  { %v1917_v3 = vsub.f32 %v1907_v19, %v1915_v40 }
 0xb85   :  { %v3839_v27 = vpop.eup %3119  ;;  %v1920_v47 = vmul.f32 1.442695, %v1917_v3 }
 0xb86   :  { %v1922_v36 = vsel %vm462_vm15, %v3839_v27, 0.0 }
 0xb87   :  { %3121 = vpow2.f32 %v1920_v47  ;;  %1923 = vadd.xlane.f32.xlu0 %v1922_v36  ;;  %v1748_v47 = vmul.f32 %v1739_v43, %v3463_v5  ;;  %v1780_v5 = vpop.f32.mrf.mxu0 }
 0xb8d   :  { %v3122_v38 = vpop.eup %3121 }
 0xb8e   :  { %v1925_v18 = vsel %vm462_vm15, %v3122_v38, 0.0 }
 0xb8f   :  { %1926 = vadd.xlane.f32.xlu1 %v1925_v18 }
 0xb9b   :  { %1849 = vrot.lane.b32.xlu0 %v3542_v15, %s3206_s23 }
 0xba3   :  { %3034 = vrot.lane.b32.xlu0 %v3750_v24, %s3211_s18 }
 0xba8   :  { %1847 = vrot.lane.b32.xlu1 %v3540_v14, %s3206_s23 }
 0xbab   :  { %2132 = vrot.lane.b32.xlu0 %v3690_v48, %s3208_s24 }
 0xbb0   :  { %2404 = vrot.lane.b32.xlu1 %v3690_v48, %s3209_s27 }
 0xbb3   :  { %2134 = vrot.lane.b32.xlu0 %v3695_v13, %s3208_s24 }
 0xbb8   :  { %2630 = vrot.lane.b32.xlu1 %v3690_v48, %s3210_s2 }
 0xbbb   :  { %v1831_v59 = vpop.xlane.xlu1 %1830 }
 0xbbc   :  { %3123 = vrcp.f32 %v1831_v59  ;;  %v1843_v34 = vand.u32 2147483648, %v1831_v59  ;;  %v1841_v55 = vand.u32 2147483647, %v1831_v59  ;;  %vm1837_vm8 = vweird.f32 %v1831_v59 }
 0xbbe   :  { %v1844_v9 = vor.u32 1.1754944e-38, %v1843_v34  ;;  %vm1842_vm10 = vcmp.eq.f32.partialorder %v1841_v55, 8.507059e+37 }
 0xbc0   :  { %2632 = vrot.lane.b32.xlu1 %v3695_v13, %s3210_s2 }
 0xbc2   :  { %v3124_v28 = vpop.eup %3123 }
 0xbc3   :  { %v1833_v12 = vmul.f32 %v3124_v28, %v1831_v59  ;;  %vm1838_vm7 = vweird.f32 %v3124_v28 }
 0xbc4   :  { %vm1839_vm9 = vmor %vm1837_vm8, %vm1838_vm7 }
 0xbc5   :  { %v1834_v62 = vsub.f32 1.0, %v1833_v12  ;;  %v3897_v12 = vld [vmem:[%s4118_s6] sm:$0xff] }
 0xbc7   :  { %v1835_v63 = vmul.f32 %v3124_v28, %v1834_v62  ;;  %v1741_v62 = vpop.f32.mrf.mxu3 }
 0xbc8   :  { %v1742_v34 = vadd.f32 %v3799_v44, %v1741_v62 }
 0xbc9   :  { %v1836_v49 = vadd.f32 %v3124_v28, %v1835_v63 }
 0xbca   :  { %v1749_v63 = vmul.f32 %v1742_v34, %v3458_v61  ;;  %v2407_v61 = vpop.permute.xlu2 %2406 }
 0xbcb   :  { %v1840_v26 = vsel %vm1839_vm9, %v3124_v28, %v1836_v49  ;;  %v3891_v28 = vld [vmem:[%s4118_s6 + $0x8] sm:$0xff] }
 0xbcc   :  { %v1845_v20 = vsel %vm1842_vm10, %v1844_v9, %v1840_v26 }
 0xbcd   :  { %v1846_v48 = vmul.f32 %v3118_v10, %v1845_v20 }
 0xbcf   :  { %2937 = vmatpush.xpose.msk.msra.mxu2 %vm462_vm15, %v1846_v48  ;;  %v1744_v9 = vpop.f32.mrf.mxu3 }
 0xbd0   :  { %v1745_v26 = vadd.f32 %v3799_v44, %v1744_v9 }
 0xbd2   :  { %v1750_v20 = vmul.f32 %v1745_v26, %v3478_v16 }
 0xbfa   :  { %v1924_v21 = vpop.xlane.xlu0 %1923 }
 0xbfb   :  { %3125 = vrcp.f32 %v1924_v21  ;;  %vm1933_vm1 = vweird.f32 %v1924_v21  ;;  %v1939_v19 = vand.u32 2147483648, %v1924_v21  ;;  %v1937_v4 = vand.u32 2147483647, %v1924_v21 }
 0xbfd   :  { %v1940_v58 = vor.u32 1.1754944e-38, %v1939_v19  ;;  %vm1938_vm4 = vcmp.eq.f32.partialorder %v1937_v4, 8.507059e+37 }
 0xc01   :  { %v3126_v13 = vpop.eup %3125 }
 0xc02   :  { %v1929_v60 = vmul.f32 %v3126_v13, %v1924_v21  ;;  %v1927_v50 = vpop.xlane.xlu1 %1926  ;;  %vm1934_vm11 = vweird.f32 %v3126_v13 }
 0xc03   :  { %3127 = vrcp.f32 %v1927_v50  ;;  %v1954_v52 = vand.u32 2147483648, %v1927_v50  ;;  %v1952_v32 = vand.u32 2147483647, %v1927_v50  ;;  %vm3861_vm13 = vmor %vm1933_vm1, %vm1934_vm11  ;;  %vm1948_vm2 = vweird.f32 %v1927_v50 }
 0xc04   :  { %v1930_v39 = vsub.f32 1.0, %v1929_v60 }
 0xc05   :  { %v1955_v35 = vor.u32 1.1754944e-38, %v1954_v52  ;;  %vm1953_vm0 = vcmp.eq.f32.partialorder %v1952_v32, 8.507059e+37 }
 0xc06   :  { %v1931_v30 = vmul.f32 %v3126_v13, %v1930_v39 }
 0xc08   :  { %v1932_v7 = vadd.f32 %v3126_v13, %v1931_v30 }
 0xc09   :  { %v3128_v29 = vpop.eup %3127 }
 0xc0a   :  { %v1944_v51 = vmul.f32 %v3128_v29, %v1927_v50  ;;  %vm1949_vm12 = vweird.f32 %v3128_v29  ;;  %v1936_v37 = vsel %vm3861_vm13, %v3126_v13, %v1932_v7  ;;  %v3936_v7 = vld [vmem:[%s4121_s9] ss:$0 sm:$0xff] }
 0xc0b   :  { %vm1950_vm3 = vmor %vm1948_vm2, %vm1949_vm12  ;;  %v1941_v23 = vsel %vm1938_vm4, %v1940_v58, %v1936_v37  ;;  %v1494_v33 = vadd.f32 %v3936_v7, %v3814_v8 }
 0xc0c   :  { %v1945_v31 = vsub.f32 1.0, %v1944_v51  ;;  %v1942_v3 = vmul.f32 %v3839_v27, %v1941_v23  ;;  %v3883_v27 = vld [vmem:[%s4117_s5] ss:$0 sm:$0xff] }
 0xc0d   :  { %v1850_v56 = vpop.permute.xlu0 %1849  ;;  %v1781_v59 = vadd.f32 %v3883_v27, %v1780_v5 }
 0xc0e   :  { %v1946_v57 = vmul.f32 %v3128_v29, %v1945_v31 }
 0xc10   :  { %v1947_v53 = vadd.f32 %v3128_v29, %v1946_v57 }
 0xc12   :  { %v1951_v46 = vsel %vm1950_vm3, %v3128_v29, %v1947_v53 }
 0xc13   :  { %v1956_v54 = vsel %vm1953_vm0, %v1955_v35, %v1951_v46 }
 0xc14   :  { %v1957_v10 = vmul.f32 %v3122_v38, %v1956_v54  ;;  %v3169_v38 = vld [vmem:[%s4120_s8] sm:$0xff] }
 0xc15   :  { %v3035_v22 = vpop.permute.xlu0 %3034 }
 0xc16   :  { %v3036_v41 = vunpack.i.l.bf16 %v3035_v22  ;;  %2942 = vmatpush.xpose.msk.msrb.mxu2 %vm462_vm15, %v1957_v10  ;;  %v3037_v40 = vunpack.i.h.bf16 %v3035_v22 }
 0xc18   :  { %2010 = vmatpush.msrb.mxu3 %v3036_v41 }
 0xc1a   :  { %2943 = vmatpush.xpose.msk.msrb.mxu2 %vm462_vm15, %v1942_v3  ;;  %2011 = vmatpush.msrb.mxu3 %v3037_v40  ;;  %v1848_v36 = vpop.permute.xlu1 %1847 }
 0xc1b   :  { %2938 = vmatmul.msk.f32.vlgmr.msra.gmra.mxu2 %vm462_vm15, %v1848_v36  ;;  %2945 = vmatmul.msk.f32.vlgmr.msrb.gmra.mxu3 %vm321_vm14, %v3826_v17 }
 0xc1c   :  { %2155 = vmatpush.msra.mxu3 %v1748_v47 }
 0xc1d   :  { %v2133_v18 = vpop.permute.xlu0 %2132 }
 0xc1e   :  { %2124 = vmatpush.msra.mxu2 %v3169_v38 }
 0xc22   :  { %v2405_v21 = vpop.permute.xlu1 %2404 }
 0xc23   :  { %2939 = vmatmul.msk.f32.gmra.mxu2 %vm462_vm15, %v1850_v56  ;;  %2953 = vmatmul.msk.f32.vlgmr.msra.gmra.mxu3 %vm462_vm15, %v2133_v18 }
 0xc25   :  { %v2135_v17 = vpop.permute.xlu0 %2134 }
 0xc2a   :  { %v2631_v13 = vpop.permute.xlu1 %2630 }
 0xc2b   :  { %2944 = vmatmul.msk.f32.vlgmr.msrb.gmra.mxu2 %vm462_vm15, %v1781_v59  ;;  %2954 = vmatmul.msk.f32.gmra.mxu3 %vm462_vm15, %v2135_v17 }
 0xc2c   :  { %2280 = vmatpush.msrb.mxu2 %v3891_v28 }
 0xc2e   :  { %2281 = vmatpush.msrb.mxu2 %v3897_v12 }
 0xc32   :  { %v2633_v60 = vpop.permute.xlu1 %2632 }
 0xc9e   :  { %v1875_v55 = vpop.f32.mrf.mxu2  ;;  %v2013_v31 = vpop.f32.mrf.mxu3 }
 0xc9f   :  { %2951 = vmatmul.msk.f32.vlgmr.msra.gmra.mxu2 %vm462_vm15, %v1875_v55  ;;  %v2016_v22 = vsel %vm462_vm15, %v2013_v31, -inf }
 0xca0   :  { %2427 = vmatpush.msra.mxu2 %v1749_v63 }
 0xca6   :  { %v1878_v49 = vpop.f32.mrf.mxu2  ;;  %v3921_v52 = vpop.f32.mrf.mxu3 }
 0xca7   :  { %2952 = vmatmul.msk.f32.gmra.mxu2 %vm462_vm15, %v1878_v49  ;;  %v2163_v56 = vsel %vm462_vm15, %v3921_v52, -inf }
 0xcae   :  { %v1984_v48 = vpop.f32.mrf.mxu2  ;;  %v3955_v40 = vpop.f32.mrf.mxu3 }
 0xcaf   :  { %2959 = vmatmul.msk.f32.vlgmr.msrb.gmra.mxu2 %vm321_vm14, %v1984_v48 }
 0xcb0   :  { %2653 = vmatpush.msrb.mxu2 %v1750_v20 }
 0xcb7   :  { %2966 = vmatmul.msk.f32.vlgmr.msra.gmra.mxu2 %vm462_vm15, %v2405_v21 }
 0xcbf   :  { %2967 = vmatmul.msk.f32.gmra.mxu2 %vm462_vm15, %v2407_v61 }
 0xcc7   :  { %2977 = vmatmul.msk.f32.vlgmr.msrb.gmra.mxu2 %vm462_vm15, %v2631_v13  ;;  %v3978_v13 = vpop.f32.mrf.mxu0 }
 0xccf   :  { %2978 = vmatmul.msk.f32.gmra.mxu2 %vm462_vm15, %v2633_v60 }
 0xd22   :  { %v3911_v50 = vpop.f32.mrf.mxu2 }
 0xd2a   :  { %v3913_v44 = vpop.f32.mrf.mxu2 }
 0xd32   :  { %v3915_v16 = vpop.f32.mrf.mxu2 }
 0xd3a   :  { %v2429_v39 = vpop.f32.mrf.mxu2 }
 0xd3b   :  { %v2435_v29 = vsel %vm462_vm15, %v2429_v39, -inf }
 0xd3c   :  { %2436 = vmax.xlane.f32.xlu2 %v2435_v29 }
 0xd42   :  { %v2432_v30 = vpop.f32.mrf.mxu2 }
 0xd43   :  { %v2438_v51 = vsel %vm462_vm15, %v2432_v30, -inf }
 0xd44   :  { %2439 = vmax.xlane.f32.xlu1 %v2438_v51 }
 0xd4a   :  { %v3947_v8 = vpop.f32.mrf.mxu2 }
 0xd4b   :  { %v2661_v38 = vsel %vm462_vm15, %v3947_v8, -inf }
 0xd52   :  { %v3951_v43 = vpop.f32.mrf.mxu2 }
 0xd53   :  { %v2664_v41 = vsel %vm462_vm15, %v3951_v43, -inf }
 0xd54   :  { %3039 = vrot.lane.b32.xlu2 %v3750_v24, %s3212_s19 }
 0xd7d   :  { %2164 = vmax.xlane.f32.xlu2 %v2163_v56 }
 0xd95   :  { %2042 = vrot.lane.b32.xlu2 %v3542_v15, %s3214_s0 }
 0xd9d   :  { %2339 = vrot.lane.b32.xlu2 %v3540_v14, %s3216_s30 }
 0xda5   :  { %2565 = vrot.lane.b32.xlu2 %v3540_v14, %s3215_s29 }
 0xdad   :  { %2567 = vrot.lane.b32.xlu2 %v3542_v15, %s3215_s29 }
 0xdaf   :  { %v2437_v57 = vpop.xlane.xlu2 %2436 }
 0xdb0   :  { %v2441_v32 = vsub.f32 %v2429_v39, %v2437_v57 }
 0xdb2   :  { %v2443_v19 = vmul.f32 1.442695, %v2441_v32 }
 0xdb4   :  { %3129 = vpow2.f32 %v2443_v19 }
 0xdb5   :  { %1498 = vrot.lane.b32.xlu2 %v1494_v33, %s3217_s11 }
 0xdb7   :  { %v3040_v4 = vpop.permute.xlu2 %3039  ;;  %v2440_v53 = vpop.xlane.xlu1 %2439 }
 0xdb8   :  { %v3041_v35 = vunpack.i.l.bf16 %v3040_v4  ;;  %v2442_v46 = vsub.f32 %v2432_v30, %v2440_v53  ;;  %v3042_v2 = vunpack.i.h.bf16 %v3040_v4 }
 0xdba   :  { %v3941_v37 = vpop.eup %3129  ;;  %v2445_v58 = vmul.f32 1.442695, %v2442_v46  ;;  %2309 = vmatpush.msrb.mxu3 %v3041_v35 }
 0xdbb   :  { %v2447_v54 = vsel %vm462_vm15, %v3941_v37, 0.0 }
 0xdbc   :  { %3131 = vpow2.f32 %v2445_v58  ;;  %2310 = vmatpush.msrb.mxu3 %v3042_v2  ;;  %2448 = vadd.xlane.f32.xlu1 %v2447_v54  ;;  %v1786_v2 = vpop.f32.mrf.mxu0 }
 0xdbd   :  { %2960 = vmatmul.msk.f32.vlgmr.msrb.gmra.mxu3 %vm321_vm14, %v3830_v0  ;;  %v2166_v0 = vsel %vm462_vm15, %v3955_v40, -inf }
 0xdc2   :  { %v3132_v10 = vpop.eup %3131 }
 0xdc3   :  { %v2450_v23 = vsel %vm462_vm15, %v3132_v10, 0.0 }
 0xdc4   :  { %2017 = vmax.xlane.f32.xlu1 %v2016_v22  ;;  %2451 = vadd.xlane.f32.xlu0 %v2450_v23  ;;  %v1787_v22 = vadd.f32 %v3883_v27, %v1786_v2 }
 0xdcc   :  { %2665 = vmax.xlane.f32.xlu1 %v2664_v41 }
 0xdd4   :  { %2167 = vmax.xlane.f32.xlu1 %v2166_v0 }
 0xdd8   :  { %3044 = vrot.lane.b32.xlu0 %v3750_v24, %s3213_s1 }
 0xdf0   :  { %v3961_v3 = vpop.xlane.xlu2 %2164 }
 0xdf8   :  { %v3963_v47 = vpop.permute.xlu2 %2042 }
 0xe00   :  { %v3965_v36 = vpop.permute.xlu2 %2339 }
 0xe02   :  { %2662 = vmax.xlane.f32.xlu0 %v2661_v38 }
 0xe08   :  { %v3969_v18 = vpop.permute.xlu2 %2565 }
 0xe10   :  { %v3971_v5 = vpop.permute.xlu2 %2567 }
 0xe16   :  { %2040 = vrot.lane.b32.xlu0 %v3540_v14, %s3214_s0 }
 0xe18   :  { %v1499_v59 = vpop.permute.xlu2 %1498 }
 0xe19   :  { %1505 = vst.msk [vmem:[#allocation2] sm:$0xff] %vm1504_vm5, %v1499_v59 }
 0xe2f   :  { %v2449_v24 = vpop.xlane.xlu1 %2448 }
 0xe30   :  { %3133 = vrcp.f32 %v2449_v24  ;;  %vm2458_vm8 = vweird.f32 %v2449_v24  ;;  %v2464_v30 = vand.u32 2147483648, %v2449_v24 }
 0xe32   :  { %v2465_v33 = vor.u32 1.1754944e-38, %v2464_v30 }
 0xe36   :  { %v3134_v17 = vpop.eup %3133 }
 0xe37   :  { %v2454_v62 = vmul.f32 %v3134_v17, %v2449_v24  ;;  %v2452_v34 = vpop.xlane.xlu0 %2451  ;;  %v2018_v63 = vpop.xlane.xlu1 %2017  ;;  %vm2459_vm6 = vweird.f32 %v3134_v17 }
 0xe38   :  { %3135 = vrcp.f32 %v2452_v34  ;;  %v2019_v55 = vsub.f32 %v2013_v31, %v2018_v63  ;;  %v2479_v14 = vand.u32 2147483648, %v2452_v34  ;;  %v2477_v29 = vand.u32 2147483647, %v2452_v34  ;;  %vm2460_vm9 = vmor %vm2458_vm8, %vm2459_vm6 }
 0xe39   :  { %v2455_v49 = vsub.f32 1.0, %v2454_v62  ;;  %v2462_v31 = vand.u32 2147483647, %v2449_v24  ;;  %vm2473_vm10 = vweird.f32 %v2452_v34 }
 0xe3a   :  { %v2020_v9 = vmul.f32 1.442695, %v2019_v55  ;;  %v2480_v57 = vor.u32 1.1754944e-38, %v2479_v14  ;;  %vm2478_vm12 = vcmp.eq.f32.partialorder %v2477_v29, 8.507059e+37 }
 0xe3b   :  { %v2456_v20 = vmul.f32 %v3134_v17, %v2455_v49  ;;  %vm2463_vm1 = vcmp.eq.f32.partialorder %v2462_v31, 8.507059e+37 }
 0xe3c   :  { %3137 = vpow2.f32 %v2020_v9 }
 0xe3d   :  { %v2457_v60 = vadd.f32 %v3134_v17, %v2456_v20 }
 0xe3e   :  { %v3136_v26 = vpop.eup %3135 }
 0xe3f   :  { %v2469_v48 = vmul.f32 %v3136_v26, %v2452_v34  ;;  %vm2474_vm7 = vweird.f32 %v3136_v26  ;;  %v2461_v19 = vsel %vm2460_vm9, %v3134_v17, %v2457_v60 }
 0xe40   :  { %vm2475_vm11 = vmor %vm2473_vm10, %vm2474_vm7  ;;  %v2466_v35 = vsel %vm2463_vm1, %v2465_v33, %v2461_v19 }
 0xe41   :  { %v2470_v21 = vsub.f32 1.0, %v2469_v48  ;;  %v2467_v58 = vmul.f32 %v3941_v37, %v2466_v35 }
 0xe42   :  { %v3976_v61 = vpop.eup %3137 }
 0xe43   :  { %v2471_v39 = vmul.f32 %v3136_v26, %v2470_v21  ;;  %v2022_v51 = vsel %vm462_vm15, %v3976_v61, 0.0 }
 0xe44   :  { %2023 = vadd.xlane.f32.xlu1 %v2022_v51 }
 0xe45   :  { %v2472_v56 = vadd.f32 %v3136_v26, %v2471_v39 }
 0xe47   :  { %v2476_v32 = vsel %vm2475_vm11, %v3136_v26, %v2472_v56 }
 0xe48   :  { %v2481_v4 = vsel %vm2478_vm12, %v2480_v57, %v2476_v32 }
 0xe49   :  { %v2482_v53 = vmul.f32 %v3132_v10, %v2481_v4  ;;  %v2666_v10 = vpop.xlane.xlu1 %2665 }
 0xe4a   :  { %v3045_v46 = vpop.permute.xlu0 %3044  ;;  %v2668_v38 = vsub.f32 %v3951_v43, %v2666_v10 }
 0xe4b   :  { %2968 = vmatpush.xpose.msk.msra.mxu3 %vm462_vm15, %v2482_v53  ;;  %v3046_v54 = vunpack.i.l.bf16 %v3045_v46  ;;  %v3047_v23 = vunpack.i.h.bf16 %v3045_v46 }
 0xe4c   :  { %v2671_v59 = vmul.f32 1.442695, %v2668_v38 }
 0xe4f   :  { %2969 = vmatpush.xpose.msk.msra.mxu3 %vm462_vm15, %v2467_v58 }
 0xe51   :  { %v2168_v24 = vpop.xlane.xlu1 %2167 }
 0xe52   :  { %2970 = vmatmul.msk.f32.vlgmr.msra.gmra.mxu3 %vm462_vm15, %v1787_v22  ;;  %v2170_v62 = vsub.f32 %v3955_v40, %v2168_v24 }
 0xe53   :  { %2535 = vmatpush.msrb.mxu3 %v3046_v54 }
 0xe55   :  { %2536 = vmatpush.msrb.mxu3 %v3047_v23 }
 0xe5a   :  { %2971 = vmatmul.msk.f32.vlgmr.msrb.gmra.mxu3 %vm321_vm14, %v3833_v1  ;;  %v2173_v1 = vmul.f32 1.442695, %v2170_v62 }
 0xe75   :  { %v2663_v41 = vpop.xlane.xlu0 %2662 }
 0xe76   :  { %v2667_v0 = vsub.f32 %v3947_v8, %v2663_v41  ;;  %v2169_v8 = vsub.f32 %v3921_v52, %v3961_v3  ;;  %v4010_v52 = vpop.f32.mrf.mxu3 }
 0xe77   :  { %v2315_v3 = vsel %vm462_vm15, %v4010_v52, -inf }
 0xe78   :  { %v2669_v37 = vmul.f32 1.442695, %v2667_v0  ;;  %v2171_v55 = vmul.f32 1.442695, %v2169_v8 }
 0xe7a   :  { %3139 = vpow2.f32 %v2669_v37 }
 0xe7b   :  { %3141 = vpow2.f32 %v2671_v59 }
 0xe7c   :  { %3143 = vpow2.f32 %v2173_v1 }
 0xe7d   :  { %3145 = vpow2.f32 %v2171_v55 }
 0xe80   :  { %v3991_v17 = vpop.eup %3139 }
 0xe81   :  { %v2673_v34 = vsel %vm462_vm15, %v3991_v17, 0.0  ;;  %v3996_v63 = vpop.eup %3141 }
 0xe82   :  { %2674 = vadd.xlane.f32.xlu1 %v2673_v34  ;;  %v2676_v43 = vsel %vm462_vm15, %v3996_v63, 0.0  ;;  %v4002_v49 = vpop.eup %3143 }
 0xe83   :  { %v2178_v40 = vsel %vm462_vm15, %v4002_v49, 0.0  ;;  %v4006_v9 = vpop.eup %3145 }
 0xe84   :  { %v2175_v26 = vsel %vm462_vm15, %v4006_v9, 0.0 }
 0xe88   :  { %v2041_v32 = vpop.permute.xlu0 %2040 }
 0xe8a   :  { %2677 = vadd.xlane.f32.xlu1 %v2676_v43 }
 0xe92   :  { %2179 = vadd.xlane.f32.xlu1 %v2178_v40 }
 0xe9a   :  { %2176 = vadd.xlane.f32.xlu1 %v2175_v26 }
 0xea2   :  { %2316 = vmax.xlane.f32.xlu1 %v2315_v3 }
 0xeb7   :  { %v2024_v20 = vpop.xlane.xlu1 %2023 }
 0xeb8   :  { %3147 = vrcp.f32 %v2024_v20  ;;  %v2036_v60 = vand.u32 2147483648, %v2024_v20  ;;  %v2034_v29 = vand.u32 2147483647, %v2024_v20  ;;  %vm2030_vm2 = vweird.f32 %v2024_v20 }
 0xeba   :  { %v2037_v51 = vor.u32 1.1754944e-38, %v2036_v60  ;;  %vm2035_vm0 = vcmp.eq.f32.partialorder %v2034_v29, 8.507059e+37  ;;  %v1789_v29 = vpop.f32.mrf.mxu0 }
 0xebe   :  { %v3148_v48 = vpop.eup %3147 }
 0xebf   :  { %v2026_v21 = vmul.f32 %v3148_v48, %v2024_v20  ;;  %vm2031_vm13 = vweird.f32 %v3148_v48 }
 0xec0   :  { %vm2032_vm3 = vmor %vm2030_vm2, %vm2031_vm13 }
 0xec1   :  { %v2027_v14 = vsub.f32 1.0, %v2026_v21 }
 0xec3   :  { %v2028_v39 = vmul.f32 %v3148_v48, %v2027_v14 }
 0xec5   :  { %v2029_v30 = vadd.f32 %v3148_v48, %v2028_v39 }
 0xec7   :  { %v2033_v31 = vsel %vm2032_vm3, %v3148_v48, %v2029_v30 }
 0xec8   :  { %v2038_v56 = vsel %vm2035_vm0, %v2037_v51, %v2033_v31 }
 0xec9   :  { %v2039_v57 = vmul.f32 %v3976_v61, %v2038_v56 }
 0xecb   :  { %2946 = vmatpush.xpose.msk.msra.mxu0 %vm462_vm15, %v2039_v57 }
 0xece   :  { %2947 = vmatmul.msk.f32.vlgmr.msra.gmra.mxu0 %vm462_vm15, %v2041_v32 }
 0xed5   :  { %v4017_v19 = vpop.f32.mrf.mxu3 }
 0xed6   :  { %2948 = vmatmul.msk.f32.gmra.mxu0 %vm462_vm15, %v3963_v47 }
 0xedd   :  { %v4021_v33 = vpop.f32.mrf.mxu3 }
 0xede   :  { %v2541_v4 = vsel %vm462_vm15, %v4021_v33, -inf }
 0xedf   :  { %2542 = vmax.xlane.f32.xlu1 %v2541_v4  ;;  %v1790_v4 = vadd.f32 %v3883_v27, %v1789_v29 }
 0xef5   :  { %v2675_v53 = vpop.xlane.xlu1 %2674 }
 0xef6   :  { %3149 = vrcp.f32 %v2675_v53  ;;  %vm2684_vm7 = vweird.f32 %v2675_v53  ;;  %v2690_v37 = vand.u32 2147483648, %v2675_v53  ;;  %v2688_v24 = vand.u32 2147483647, %v2675_v53 }
 0xef8   :  { %v2691_v26 = vor.u32 1.1754944e-38, %v2690_v37  ;;  %vm2689_vm12 = vcmp.eq.f32.partialorder %v2688_v24, 8.507059e+37  ;;  %v1784_v37 = vadd.f32 %v3883_v27, %v3978_v13  ;;  %v1495_v27 = vadd.f32 %v3936_v7, %v3816_v6 }
 0xefc   :  { %v3150_v35 = vpop.eup %3149 }
 0xefd   :  { %v2680_v61 = vmul.f32 %v3150_v35, %v2675_v53  ;;  %v2678_v46 = vpop.xlane.xlu1 %2677  ;;  %vm2685_vm4 = vweird.f32 %v3150_v35 }
 0xefe   :  { %3151 = vrcp.f32 %v2678_v46  ;;  %v2705_v47 = vand.u32 2147483648, %v2678_v46  ;;  %v2703_v38 = vand.u32 2147483647, %v2678_v46  ;;  %vm4025_vm8 = vmor %vm2684_vm7, %vm2685_vm4  ;;  %vm2699_vm9 = vweird.f32 %v2678_v46 }
 0xeff   :  { %v2681_v2 = vsub.f32 1.0, %v2680_v61  ;;  %v3173_v61 = vld [vmem:[%s4118_s6 + $0x18] sm:$0xff] }
 0xf00   :  { %v2706_v1 = vor.u32 1.1754944e-38, %v2705_v47  ;;  %vm2704_vm11 = vcmp.eq.f32.partialorder %v2703_v38, 8.507059e+37 }
 0xf01   :  { %v2682_v54 = vmul.f32 %v3150_v35, %v2681_v2 }
 0xf03   :  { %v2683_v41 = vadd.f32 %v3150_v35, %v2682_v54 }
 0xf04   :  { %v3152_v58 = vpop.eup %3151 }
 0xf05   :  { %v2695_v22 = vmul.f32 %v3152_v58, %v2678_v46  ;;  %v2180_v23 = vpop.xlane.xlu1 %2179  ;;  %vm2700_vm6 = vweird.f32 %v3152_v58  ;;  %v2687_v40 = vsel %vm4025_vm8, %v3150_v35, %v2683_v41 }
 0xf06   :  { %3153 = vrcp.f32 %v2180_v23  ;;  %vm2701_vm10 = vmor %vm2699_vm9, %vm2700_vm6  ;;  %v2207_v21 = vand.u32 2147483648, %v2180_v23  ;;  %v2692_v14 = vsel %vm2689_vm12, %v2691_v26, %v2687_v40  ;;  %v2205_v39 = vand.u32 2147483647, %v2180_v23 }
 0xf07   :  { %v2696_v10 = vsub.f32 1.0, %v2695_v22  ;;  %vm2201_vm13 = vweird.f32 %v2180_v23  ;;  %v2693_v51 = vmul.f32 %v3991_v17, %v2692_v14 }
 0xf08   :  { %v2208_v56 = vor.u32 1.1754944e-38, %v2207_v21  ;;  %vm2206_vm3 = vcmp.eq.f32.partialorder %v2205_v39, 8.507059e+37 }
 0xf09   :  { %v2697_v0 = vmul.f32 %v3152_v58, %v2696_v10 }
 0xf0b   :  { %v2698_v62 = vadd.f32 %v3152_v58, %v2697_v0 }
 0xf0c   :  { %v3154_v34 = vpop.eup %3153 }
 0xf0d   :  { %v2702_v8 = vsel %vm2701_vm10, %v3152_v58, %v2698_v62  ;;  %v2197_v43 = vmul.f32 %v3154_v34, %v2180_v23  ;;  %v2177_v55 = vpop.xlane.xlu1 %2176  ;;  %vm2202_vm1 = vweird.f32 %v3154_v34 }
 0xf0e   :  { %v2707_v3 = vsel %vm2704_vm11, %v2706_v1, %v2702_v8  ;;  %3155 = vrcp.f32 %v2177_v55  ;;  %vm2203_vm2 = vmor %vm2201_vm13, %vm2202_vm1  ;;  %v2192_v2 = vand.u32 2147483648, %v2177_v55  ;;  %v2190_v22 = vand.u32 2147483647, %v2177_v55 }
 0xf0f   :  { %v2198_v20 = vsub.f32 1.0, %v2197_v43  ;;  %v2708_v48 = vmul.f32 %v3996_v63, %v2707_v3  ;;  %vm2186_vm4 = vweird.f32 %v2177_v55 }
 0xf10   :  { %v2193_v10 = vor.u32 1.1754944e-38, %v2192_v2  ;;  %vm2191_vm7 = vcmp.eq.f32.partialorder %v2190_v22, 8.507059e+37 }
 0xf11   :  { %v2199_v60 = vmul.f32 %v3154_v34, %v2198_v20  ;;  %2979 = vmatpush.xpose.msk.msra.mxu3 %vm462_vm15, %v2708_v48 }
 0xf13   :  { %v2200_v30 = vadd.f32 %v3154_v34, %v2199_v60 }
 0xf14   :  { %v3156_v31 = vpop.eup %3155 }
 0xf15   :  { %v2204_v57 = vsel %vm2203_vm2, %v3154_v34, %v2200_v30  ;;  %v2182_v32 = vmul.f32 %v3156_v31, %v2177_v55  ;;  %2980 = vmatpush.xpose.msk.msra.mxu3 %vm462_vm15, %v2693_v51  ;;  %v2317_v63 = vpop.xlane.xlu1 %2316  ;;  %vm2187_vm0 = vweird.f32 %v3156_v31 }
 0xf16   :  { %v2209_v53 = vsel %vm2206_vm3, %v2208_v56, %v2204_v57  ;;  %v2318_v35 = vsub.f32 %v4010_v52, %v2317_v63  ;;  %v3174_v52 = vld [vmem:[%s4118_s6 + $0x10] sm:$0xff]  ;;  %vm2188_vm6 = vmor %vm2186_vm4, %vm2187_vm0 }
 0xf17   :  { %v2183_v17 = vsub.f32 1.0, %v2182_v32  ;;  %v2210_v46 = vmul.f32 %v4002_v49, %v2209_v53 }
 0xf18   :  { %v2319_v58 = vmul.f32 1.442695, %v2318_v35  ;;  %2981 = vmatmul.msk.f32.vlgmr.msra.gmra.mxu3 %vm462_vm15, %v1790_v4 }
 0xf19   :  { %2755 = vmatpush.msrb.mxu3 %v3173_v61  ;;  %v2184_v54 = vmul.f32 %v3156_v31, %v2183_v17  ;;  %2955 = vmatpush.xpose.msk.msrb.mxu0 %vm462_vm15, %v2210_v46  ;;  %v3175_v17 = vld [vmem:[%s4124_s12] sm:$0xff] }
 0xf1a   :  { %3157 = vpow2.f32 %v2319_v58 }
 0xf1b   :  { %2756 = vmatpush.msrb.mxu3 %v3174_v52  ;;  %v2185_v23 = vadd.f32 %v3156_v31, %v2184_v54 }
 0xf1d   :  { %v2189_v49 = vsel %vm2188_vm6, %v3156_v31, %v2185_v23 }
 0xf1e   :  { %v2194_v47 = vsel %vm2191_vm7, %v2193_v10, %v2189_v49 }
 0xf1f   :  { %v2195_v41 = vmul.f32 %v4006_v9, %v2194_v47 }
 0xf20   :  { %v3158_v0 = vpop.eup %3157 }
 0xf21   :  { %2956 = vmatpush.xpose.msk.msrb.mxu0 %vm462_vm15, %v2195_v41  ;;  %v2321_v38 = vsel %vm462_vm15, %v3158_v0, 0.0 }
 0xf22   :  { %2322 = vadd.xlane.f32.xlu0 %v2321_v38 }
 0xf24   :  { %2957 = vmatmul.msk.f32.vlgmr.msrb.gmra.mxu0 %vm462_vm15, %v1784_v37 }
 0xf4b   :  { %v2068_v59 = vpop.f32.mrf.mxu0 }
 0xf4c   :  { %2949 = vmatmul.msk.f32.vlgmr.msra.gmra.mxu1 %vm462_vm15, %v2068_v59 }
 0xf4d   :  { %2394 = vmatpush.msra.mxu1 %v3766_v25 }
 0xf52   :  { %v2543_v24 = vpop.xlane.xlu1 %2542 }
 0xf53   :  { %v2544_v62 = vsub.f32 %v4021_v33, %v2543_v24  ;;  %v2071_v9 = vpop.f32.mrf.mxu0 }
 0xf54   :  { %2950 = vmatmul.msk.f32.gmra.mxu1 %vm462_vm15, %v2071_v9 }
 0xf55   :  { %v2545_v34 = vmul.f32 1.442695, %v2544_v62 }
 0xf57   :  { %3159 = vpow2.f32 %v2545_v34 }
 0xf5d   :  { %v3160_v1 = vpop.eup %3159 }
 0xf5e   :  { %v2547_v8 = vsel %vm462_vm15, %v3160_v1, 0.0 }
 0xf5f   :  { %2548 = vadd.xlane.f32.xlu1 %v2547_v8 }
 0xf78   :  { %2341 = vrot.lane.b32.xlu1 %v3542_v15, %s3216_s30 }
 0xf80   :  { %1500 = vrot.lane.b32.xlu1 %v1495_v27, %s3217_s11 }
 0xf95   :  { %v2323_v25 = vpop.xlane.xlu0 %2322 }
 0xf96   :  { %3161 = vrcp.f32 %v2323_v25  ;;  %v2335_v40 = vand.u32 2147483648, %v2323_v25  ;;  %v2333_v3 = vand.u32 2147483647, %v2323_v25  ;;  %vm2329_vm9 = vweird.f32 %v2323_v25 }
 0xf98   :  { %v2336_v6 = vor.u32 1.1754944e-38, %v2335_v40  ;;  %vm2334_vm11 = vcmp.eq.f32.partialorder %v2333_v3, 8.507059e+37 }
 0xf9b   :  { %v2735_v13 = vpop.f32.mrf.mxu3 }
 0xf9c   :  { %v3162_v33 = vpop.eup %3161  ;;  %2982 = vmatmul.msk.f32.vlgmr.msrb.gmra.mxu3 %vm321_vm14, %v2735_v13 }
 0xf9d   :  { %v2325_v43 = vmul.f32 %v3162_v33, %v2323_v25  ;;  %vm2330_vm8 = vweird.f32 %v3162_v33 }
 0xf9e   :  { %vm2331_vm10 = vmor %vm2329_vm9, %vm2330_vm8 }
 0xf9f   :  { %v2326_v55 = vsub.f32 1.0, %v2325_v43 }
 0xfa1   :  { %v2327_v26 = vmul.f32 %v3162_v33, %v2326_v55  ;;  %v2237_v20 = vpop.f32.mrf.mxu0 }
 0xfa2   :  { %2958 = vmatmul.msk.f32.vlgmr.msrb.gmra.mxu1 %vm321_vm14, %v2237_v20 }
 0xfa3   :  { %v2328_v15 = vadd.f32 %v3162_v33, %v2327_v26  ;;  %2620 = vmatpush.msrb.mxu1 %v3776_v45 }
 0xfa5   :  { %v2332_v48 = vsel %vm2331_vm10, %v3162_v33, %v2328_v15 }
 0xfa6   :  { %v2337_v21 = vsel %vm2334_vm11, %v2336_v6, %v2332_v48 }
 0xfa7   :  { %v2338_v14 = vmul.f32 %v3158_v0, %v2337_v21 }
 0xfa9   :  { %2961 = vmatpush.xpose.msk.msra.mxu0 %vm462_vm15, %v2338_v14 }
 0xfac   :  { %2962 = vmatmul.msk.f32.vlgmr.msra.gmra.mxu0 %vm462_vm15, %v3965_v36 }
 0xfc9   :  { %v2097_v35 = vpop.f32.mrf.mxu1 }
 0xfca   :  { %v2127_v23 = vadd.f32 %v3911_v50, %v2097_v35  ;;  %v3177_v50 = vld [vmem:[%s4119_s7] ss:$0 sm:$0xff]  ;;  %s3219_s7 = smov 128  }
 0xfd1   :  { %v2100_v61 = vpop.f32.mrf.mxu1 }
 0xfd2   :  { %v2549_v60 = vpop.xlane.xlu1 %2548  ;;  %v2130_v0 = vadd.f32 %v3913_v44, %v2100_v61 }
 0xfd3   :  { %3163 = vrcp.f32 %v2549_v60  ;;  %v2561_v51 = vand.u32 2147483648, %v2549_v60  ;;  %v2559_v45 = vand.u32 2147483647, %v2549_v60  ;;  %vm2555_vm1 = vweird.f32 %v2549_v60 }
 0xfd5   :  { %v2562_v57 = vor.u32 1.1754944e-38, %v2561_v51  ;;  %vm2560_vm2 = vcmp.eq.f32.partialorder %v2559_v45, 8.507059e+37 }
 0xfd9   :  { %v3164_v39 = vpop.eup %3163 }
 0xfda   :  { %v2551_v29 = vmul.f32 %v3164_v39, %v2549_v60  ;;  %vm2556_vm12 = vweird.f32 %v3164_v39 }
 0xfdb   :  { %vm2557_vm13 = vmor %vm2555_vm1, %vm2556_vm12 }
 0xfdc   :  { %v2552_v30 = vsub.f32 1.0, %v2551_v29 }
 0xfde   :  { %v2553_v31 = vmul.f32 %v3164_v39, %v2552_v30 }
 0xfe0   :  { %v2554_v56 = vadd.f32 %v3164_v39, %v2553_v31 }
 0xfe2   :  { %v2558_v32 = vsel %vm2557_vm13, %v3164_v39, %v2554_v56 }
 0xfe3   :  { %v2563_v63 = vsel %vm2560_vm2, %v2562_v57, %v2558_v32 }
 0xfe4   :  { %v2564_v4 = vmul.f32 %v3160_v1, %v2563_v63 }
 0xfe6   :  { %2972 = vmatpush.xpose.msk.msrb.mxu0 %vm462_vm15, %v2564_v4 }
 0xfea   :  { %2778 = vmatpush.msra.mxu0 %v3891_v28  ;;  %v2342_v36 = vpop.permute.xlu1 %2341 }
 0xfeb   :  { %2963 = vmatmul.msk.f32.gmra.mxu0 %vm462_vm15, %v2342_v36 }
 0xfec   :  { %2779 = vmatpush.msra.mxu0 %v3897_v12 }
 0xff2   :  { %v1501_v53 = vpop.permute.xlu1 %1500 }
 0xff3   :  { %1506 = vst.msk [vmem:[#allocation2 + $0x8] sm:$0xff] %vm1504_vm5, %v1501_v53  ;;  %2973 = vmatmul.msk.f32.vlgmr.msrb.gmra.mxu0 %vm462_vm15, %v3969_v18  ;;  %v3176_v18 = vld [vmem:[%s4124_s12 + $0x8] sm:$0xff] }
 0xffb   :  { %2974 = vmatmul.msk.f32.gmra.mxu0 %vm462_vm15, %v3971_v5 }
0x1003   :  { %2983 = vmatmul.msk.f32.vlgmr.msra.gmra.mxu0 %vm321_vm14, %v4017_v19 }
0x101f   :  { %v2260_v28 = vpop.f32.mrf.mxu1  ;;  %v2758_v2 = vpop.f32.mrf.mxu3 }
0x1020   :  { %v2284_v12 = vadd.f32 %v3915_v16, %v2260_v28 }
0x1022   :  { %2822 = vmatpush.msra.mxu2 %v2284_v12 }
0x1023   :  { %2986 = vmatmul.msk.f32.vlgmr.msra.gmra.mxu2 %vm462_vm15, %v3175_v17 }
0x1029   :  { %v2367_v46 = vpop.f32.mrf.mxu0 }
0x102a   :  { %2964 = vmatmul.msk.f32.vlgmr.msra.gmra.mxu1 %vm462_vm15, %v2367_v46 }
0x102b   :  { %2987 = vmatmul.msk.f32.gmra.mxu2 %vm462_vm15, %v3176_v18 }
0x1068   :  { %v2370_v5 = vpop.f32.mrf.mxu0 }
0x1069   :  { %2965 = vmatmul.msk.f32.gmra.mxu1 %vm462_vm15, %v2370_v5 }
0x1070   :  { %v2593_v16 = vpop.f32.mrf.mxu0 }
0x1071   :  { %2975 = vmatmul.msk.f32.vlgmr.msrb.gmra.mxu1 %vm462_vm15, %v2593_v16 }
0x1078   :  { %v2596_v19 = vpop.f32.mrf.mxu0 }
0x1079   :  { %2976 = vmatmul.msk.f32.gmra.mxu1 %vm462_vm15, %v2596_v19 }
0x1080   :  { %v2781_v58 = vpop.f32.mrf.mxu0 }
0x1081   :  { %v2782_v54 = vadd.f32 %v2781_v58, %v2758_v2 }
0x1083   :  { %2799 = vmatpush.msra.mxu1 %v2782_v54 }
0x1084   :  { %2984 = vmatmul.msk.f32.vlgmr.msra.gmra.mxu1 %vm462_vm15, %v3771_v42 }
0x108c   :  { %2985 = vmatmul.msk.f32.gmra.mxu1 %vm462_vm15, %v3788_v11 }
0x10a6   :  { %v2824_v11 = vpop.f32.mrf.mxu2 }
0x10a7   :  { %v2396_v22 = vpop.f32.mrf.mxu1 }
0x10a8   :  { %v2402_v10 = vadd.f32 %v2396_v22, %v2127_v23 }
0x10ae   :  { %v2827_v44 = vpop.f32.mrf.mxu2 }
0x10e6   :  { %v2399_v52 = vpop.f32.mrf.mxu1 }
0x10e7   :  { %v2403_v38 = vadd.f32 %v2399_v52, %v2130_v0 }
0x10ee   :  { %v2622_v49 = vpop.f32.mrf.mxu1 }
0x10ef   :  { %v2628_v47 = vadd.f32 %v2622_v49, %v2402_v10 }
0x10f1   :  { %v2834_v41 = vadd.f32 %v3936_v7, %v2628_v47 }
0x10f3   :  { %2838 = vrot.lane.b32.xlu2 %v2834_v41, %s3217_s11 }
0x10f6   :  { %v2625_v37 = vpop.f32.mrf.mxu1 }
0x10f7   :  { %v2629_v59 = vadd.f32 %v2625_v37, %v2403_v38 }
0x10f9   :  { %v2835_v42 = vadd.f32 %v3936_v7, %v2629_v59 }
0x10fb   :  { %2840 = vrot.lane.b32.xlu0 %v2835_v42, %s3217_s11 }
0x1101   :  { %v2801_v24 = vpop.f32.mrf.mxu1 }
0x1102   :  { %v2825_v62 = vadd.f32 %v2824_v11, %v2801_v24 }
0x1104   :  { %v2830_v9 = vadd.f32 %v3177_v50, %v2825_v62 }
0x1106   :  { %2832 = vst.msk [vmem:[#allocation2 + $0x10] sm:$0xff] %vm321_vm14, %v2830_v9 }
0x1109   :  { %v2804_v34 = vpop.f32.mrf.mxu1 }
0x110a   :  { %v2828_v1 = vadd.f32 %v2827_v44, %v2804_v34 }
0x110c   :  { %v2831_v8 = vadd.f32 %v3177_v50, %v2828_v1 }
0x110e   :  { %2833 = vst.msk [vmem:[#allocation2 + $0x18] sm:$0xff] %vm321_vm14, %v2831_v8 }
0x114d   :  { %v2839_v27 = vpop.permute.xlu2 %2838 }
0x114e   :  { %2844 = vst.msk [vmem:[#allocation2 + $0x10] sm:$0xff] %vm1504_vm5, %v2839_v27 }
0x116d   :  { %v2841_v7 = vpop.permute.xlu0 %2840 }
0x116e   :  { %2845 = vst.msk [vmem:[#allocation2 + $0x18] sm:$0xff] %vm1504_vm5, %v2841_v7 }
0x116f   :  { %2858 = dma.vmem_to_hbm [thread:$0]  %s2851_s25, 512, %s2853_s22, [#allocation3], %s3219_s7, %s3219_s7, %s3220_s10  }
0x1170   :  { %3202 = dma.done.wait [#allocation3], 512  }
0x1171   :  { %3203 = vsyncadd [#allocation3], 4294966784 }
0x1172   :  { %2863 = vsyncpa [#allocation3], 1 }

</bundles_post_ra>
